<compile_context>
chip_gen: v7x
topology: tpu7x:2x2x1
jax: 0.10.0
libtpu: 0.0.40
codegen_flags: <defaults>
</compile_context>

<pallas_src>
import functools

import jax
import jax.numpy as jnp
from jax import lax
from jax.experimental import pallas as pl
from jax.experimental.pallas import tpu as pltpu


# ----------------------------------------------------------------------------
# In-kernel helpers
# ----------------------------------------------------------------------------
def _dot_bf16(a, b):
    """a @ b with bf16 MXU operands and f32 accumulation."""
    return jnp.dot(a.astype(jnp.bfloat16), b.astype(jnp.bfloat16),
                   preferred_element_type=jnp.float32)


def _dot_nt_bf16(a, b):
    """a @ b.T with bf16 MXU operands and f32 accumulation."""
    return lax.dot_general(a.astype(jnp.bfloat16), b.astype(jnp.bfloat16),
                           (((1,), (1,)), ((), ())),
                           preferred_element_type=jnp.float32)


def _softmax(s):
    m = jnp.max(s, axis=-1, keepdims=True)
    p = jnp.exp(s - m)
    return p / jnp.sum(p, axis=-1, keepdims=True)


def _l2_normalize(x):
    n = jnp.sqrt(jnp.sum(x * x, axis=-1, keepdims=True))
    return x / jnp.maximum(n, 1e-12)


# ----------------------------------------------------------------------------
# Kernel A: fused physico branch (per batch element)
#   Conv1d(k=6)+ReLU -> single-head self-attention -> out proj
#   -> physico_proj + L2 normalize
# ----------------------------------------------------------------------------
def _physico_kernel(x_ref, convw_ref, convb_ref, wqkv_ref, bqkv_ref,
                    wp_ref, bp_ref, wproj_ref, bproj_ref,
                    ep_ref, attn_ref, *, ksize, scale):
    lout, e_dim = ep_ref.shape
    x = x_ref[...]                                             # (Lpad, Cin) f32

    # Conv1d realized as `ksize` shifted (Lout, Cin) @ (Cin, E) matmuls.
    acc = _dot_bf16(x[0:lout, :], convw_ref[0])
    for k in range(1, ksize):
        acc = acc + _dot_bf16(x[k:k + lout, :], convw_ref[k])
    conv = jnp.maximum(acc + convb_ref[...], 0.0)              # (Lout, E) ReLU fused

    # single-head self-attention with fused QKV projection
    qkv = _dot_bf16(conv, wqkv_ref[...]) + bqkv_ref[...]       # (Lout, 3E)
    q = qkv[:, :e_dim]
    k_ = qkv[:, e_dim:2 * e_dim]
    v = qkv[:, 2 * e_dim:]
    attn = _softmax(_dot_nt_bf16(q, k_) * scale)               # (Lout, Lout) f32
    o = _dot_bf16(attn, v)                                     # (Lout, E)
    conv_embed = _dot_bf16(o, wp_ref[...]) + bp_ref[...]       # attention out proj

    # physico_proj + F.normalize(..., dim=-1)
    ep = _l2_normalize(_dot_bf16(conv_embed, wproj_ref[...]) + bproj_ref[...])

    ep_ref[...] = ep.astype(ep_ref.dtype)
    attn_ref[...] = attn.astype(attn_ref.dtype)


def pallas_physico(physico_embed, conv_w_taps, conv_b, wqkv, bqkv,
                   wp, bp, wproj, bproj, *, e_dim, ksize):
    B, Lpad, Cin = physico_embed.shape
    Lout = Lpad - ksize + 1

    def const2(a):  # full-array weight block, never re-DMA'd across grid steps
        return pl.BlockSpec(a.shape, lambda b: (0, 0))

    kernel = functools.partial(_physico_kernel, ksize=ksize, scale=e_dim ** -0.5)
    return pl.pallas_call(
        kernel,
        out_shape=(jax.ShapeDtypeStruct((B, Lout, e_dim), jnp.float32),
                   jax.ShapeDtypeStruct((B, Lout, Lout), jnp.float32)),
        grid=(B,),
        in_specs=[
            pl.BlockSpec((pl.Squeezed(), Lpad, Cin), lambda b: (b, 0, 0)),
            pl.BlockSpec(conv_w_taps.shape, lambda b: (0, 0, 0)),
            const2(conv_b), const2(wqkv), const2(bqkv),
            const2(wp), const2(bp), const2(wproj), const2(bproj),
        ],
        out_specs=(
            pl.BlockSpec((pl.Squeezed(), Lout, e_dim), lambda b: (b, 0, 0)),
            pl.BlockSpec((pl.Squeezed(), Lout, Lout), lambda b: (b, 0, 0)),
        ),
        compiler_params=pltpu.CompilerParams(dimension_semantics=("parallel",)),
    )(physico_embed, conv_w_taps, conv_b, wqkv, bqkv, wp, bp, wproj, bproj)


# ----------------------------------------------------------------------------
# Kernel B: fused head (per batch element)
#   pos_proj + L2 norm -> contrastive diagonals (single sim matrix)
#   -> multi-head attention (all heads, no attention-map writeback)
#   -> out proj -> seq-sum + L2 norm + classifier MLP
# ----------------------------------------------------------------------------
def _fusion_kernel(temp_ref, e768_ref, ep_ref, posw_ref, posb_ref,
                   wqkv_ref, bqkv_ref, wo_ref, bo_ref,
                   w1_ref, b1_ref, w2_ref, b2_ref,
                   contr_ref, logits_ref, *, n_head):
    L, e_dim = ep_ref.shape
    dh = e_dim // n_head

    # pos_proj + L2 normalize
    e = _l2_normalize(_dot_bf16(e768_ref[...], posw_ref[...]) + posb_ref[...])  # (L, E)
    p = ep_ref[...]                                                             # (L, E)

    # ---- contrastive diagonals: one sim matrix, row/col log-sum-exp ----
    inv_t = 1.0 / temp_ref[0]
    # kept in f32: logits are amplified by 1/temp before the softmax
    s = lax.dot_general(e, p, (((1,), (1,)), ((), ())),
                        preferred_element_type=jnp.float32) * inv_t             # (L, L)
    diag_sum = jnp.sum(e * p) * inv_t                                           # sum_i s[i, i]
    m_row = jnp.max(s, axis=-1, keepdims=True)
    lse_row = jnp.log(jnp.sum(jnp.exp(s - m_row), axis=-1, keepdims=True)) + m_row
    m_col = jnp.max(s, axis=0, keepdims=True)
    lse_col = jnp.log(jnp.sum(jnp.exp(s - m_col), axis=0, keepdims=True)) + m_col
    mean_o2r = (diag_sum - jnp.sum(lse_row)) / L      # mean_i log_softmax(s)[i, i]
    mean_r2o = (diag_sum - jnp.sum(lse_col)) / L      # mean_i log_softmax(s.T)[i, i]
    contr_ref[...] = jnp.concatenate(
        [mean_o2r.reshape(1, 1), mean_r2o.reshape(1, 1)], axis=1
    ).astype(contr_ref.dtype)

    # ---- multi-head attention, all heads in one invocation ----
    x = e + p                                                                   # (L, E)
    qkv = _dot_bf16(x, wqkv_ref[...]) + bqkv_ref[...]                           # (L, 3E)
    scale = dh ** -0.5
    heads = []
    for h in range(n_head):
        qh = qkv[:, h * dh:(h + 1) * dh]
        kh = qkv[:, e_dim + h * dh:e_dim + (h + 1) * dh]
        vh = qkv[:, 2 * e_dim + h * dh:2 * e_dim + (h + 1) * dh]
        ah = _softmax(_dot_nt_bf16(qh, kh) * scale)
        heads.append(_dot_bf16(ah, vh))
    o = jnp.concatenate(heads, axis=-1)                                         # (L, E)
    x = _dot_bf16(o, wo_ref[...]) + bo_ref[...]                                 # (L, E)

    # ---- classifier head: seq-sum -> L2 normalize -> Linear/ReLU -> Linear ----
    pooled = _l2_normalize(jnp.sum(x, axis=0, keepdims=True))                   # (1, E)
    h1 = jnp.maximum(_dot_bf16(pooled, w1_ref[...]) + b1_ref[...], 0.0)         # (1, 32)
    y = _dot_bf16(h1, w2_ref[...]) + b2_ref[...]                                # (1, 1)
    logits_ref[...] = y.astype(logits_ref.dtype)


def pallas_fused_head(temp, emb768, emb_phys, pos_w, pos_b,
                      mha_wqkv, mha_bqkv, mha_wo, mha_bo,
                      cls_w1, cls_b1, cls_w2, cls_b2, *, n_head):
    B, L, D768 = emb768.shape
    E = emb_phys.shape[-1]

    def const2(a):
        return pl.BlockSpec(a.shape, lambda b: (0, 0))

    kernel = functools.partial(_fusion_kernel, n_head=n_head)
    return pl.pallas_call(
        kernel,
        out_shape=(jax.ShapeDtypeStruct((B, 1, 2), jnp.float32),   # contrastive diag means
                   jax.ShapeDtypeStruct((B, 1, 1), jnp.float32)),  # logits
        grid=(B,),
        in_specs=[
            pl.BlockSpec(memory_space=pltpu.MemorySpace.SMEM),     # temperature scalar
            pl.BlockSpec((pl.Squeezed(), L, D768), lambda b: (b, 0, 0)),
            pl.BlockSpec((pl.Squeezed(), L, E), lambda b: (b, 0, 0)),
            const2(pos_w), const2(pos_b),
            const2(mha_wqkv), const2(mha_bqkv),
            const2(mha_wo), const2(mha_bo),
            const2(cls_w1), const2(cls_b1),
            const2(cls_w2), const2(cls_b2),
        ],
        out_specs=(
            pl.BlockSpec((pl.Squeezed(), 1, 2), lambda b: (b, 0, 0)),
            pl.BlockSpec((pl.Squeezed(), 1, 1), lambda b: (b, 0, 0)),
        ),
        compiler_params=pltpu.CompilerParams(dimension_semantics=("parallel",)),
    )(temp, emb768, emb_phys, pos_w, pos_b, mha_wqkv, mha_bqkv,
      mha_wo, mha_bo, cls_w1, cls_b1, cls_w2, cls_b2)


# ----------------------------------------------------------------------------
# Parameters (deterministic synthetic init)
# ----------------------------------------------------------------------------
def init_params(key, E, bert_dim=768, vocab=32, max_pos=64, c_in=14, ksize=6):
    keys = iter(jax.random.split(key, 24))

    def w(shape, scale=0.05):
        return (scale * jax.random.normal(next(keys), shape)).astype(jnp.float32)

    def z(shape):
        return jnp.zeros(shape, jnp.float32)

    return dict(
        tok_emb=w((vocab, bert_dim)), posn_emb=w((max_pos, bert_dim)),
        conv_w=w((E, c_in, ksize)), conv_b=z((E,)),
        phy_wq=w((E, E)), phy_bq=z((E,)),
        phy_wk=w((E, E)), phy_bk=z((E,)),
        phy_wv=w((E, E)), phy_bv=z((E,)),
        phy_wp=w((E, E)), phy_bp=z((E,)),
        pos_proj_w=w((bert_dim, E)), pos_proj_b=z((E,)),
        phys_proj_w=w((E, E)), phys_proj_b=z((E,)),
        mha_wq=w((E, E)), mha_bq=z((E,)),
        mha_wk=w((E, E)), mha_bk=z((E,)),
        mha_wv=w((E, E)), mha_bv=z((E,)),
        mha_wo=w((E, E)), mha_bo=z((E,)),
        cls_w1=w((E, 32)), cls_b1=z((32,)),
        cls_w2=w((32, 1)), cls_b2=z((1,)),
        temp=jnp.array(0.07, jnp.float32),
    )


# ----------------------------------------------------------------------------
# MIXBend forward
# ----------------------------------------------------------------------------
def mix_bend_forward(params, sent, physico_embed, position_ids, n_head):
    B, S = sent.shape
    E = params["pos_proj_w"].shape[1]
    ksize = params["conv_w"].shape[2]
    bf16 = jnp.bfloat16

    # TODO(synk): pretrained DNABERT encoder has no Pallas equivalent; stubbed as
    # deterministic token+position embedding lookup with uniform last-layer attention.
    hidden = params["tok_emb"][sent] + params["posn_emb"][position_ids]   # (B, S, 768)
    attn_bert = jnp.full((B, 12, S, S), 1.0 / S, jnp.float32)
    embedding768 = hidden[:, 1:-1, :]                                     # (B, L, 768)

    # ---- fused physico branch (one pallas_call, grid=(B,)) ----
    conv_w_taps = jnp.transpose(params["conv_w"], (2, 1, 0)).astype(bf16)  # (K, Cin, E)
    conv_b = params["conv_b"].reshape(1, E)
    phy_wqkv = jnp.concatenate(
        [params["phy_wq"], params["phy_wk"], params["phy_wv"]], axis=1).astype(bf16)
    phy_bqkv = jnp.concatenate(
        [params["phy_bq"], params["phy_bk"], params["phy_bv"]]).reshape(1, 3 * E)

    embedding_physico, phy_attn = pallas_physico(
        physico_embed, conv_w_taps, conv_b, phy_wqkv, phy_bqkv,
        params["phy_wp"].astype(bf16), params["phy_bp"].reshape(1, E),
        params["phys_proj_w"].astype(bf16), params["phys_proj_b"].reshape(1, E),
        e_dim=E, ksize=ksize)

    # ---- fused head: pos_proj + contrastive + MHA + classifier ----
    mha_wqkv = jnp.concatenate(
        [params["mha_wq"], params["mha_wk"], params["mha_wv"]], axis=1).astype(bf16)
    mha_bqkv = jnp.concatenate(
        [params["mha_bq"], params["mha_bk"], params["mha_bv"]]).reshape(1, 3 * E)
    temp = jnp.clip(params["temp"], 0.001, 0.5).reshape(1)

    contr, logits = pallas_fused_head(
        temp, embedding768, embedding_physico,
        params["pos_proj_w"].astype(bf16), params["pos_proj_b"].reshape(1, E),
        mha_wqkv, mha_bqkv,
        params["mha_wo"].astype(bf16), params["mha_bo"].reshape(1, E),
        params["cls_w1"].astype(bf16), params["cls_b1"].reshape(1, -1),
        params["cls_w2"].astype(bf16), params["cls_b2"].reshape(1, 1),
        n_head=n_head)

    loss_o2r = -jnp.mean(contr[:, 0, 0])
    loss_r2o = -jnp.mean(contr[:, 0, 1])
    loss_contras = (loss_o2r + loss_r2o) / 2.0
    logits = logits.reshape(B, 1)
    return logits, attn_bert, phy_attn, loss_contras


# ----------------------------------------------------------------------------
if __name__ == "__main__":
    B = 2
    E = 32          # param['embedding_dim']
    N_HEAD = 4      # param['n_head']
    PAD_LEN, KSIZE, C_IN = 50, 6, 14
    L = PAD_LEN - KSIZE + 1                  # 45 (conv output length)
    S = L + 2                                # 47 BERT tokens (CLS/SEP stripped)

    key = jax.random.PRNGKey(0)
    k_inp, k_par = jax.random.split(key)
    k1, k2 = jax.random.split(k_inp)

    sent = jax.random.randint(k1, (B, S), 0, 32)
    position_ids = jnp.broadcast_to(jnp.arange(S, dtype=jnp.int32), (B, S))
    physico_embed = jax.random.normal(k2, (B, PAD_LEN, C_IN), jnp.float32)

    params = init_params(k_par, E, c_in=C_IN, ksize=KSIZE)

    fwd = jax.jit(functools.partial(mix_bend_forward, n_head=N_HEAD))
    logits, attn_bert, phy_attn, loss_contras = fwd(
        params, sent, physico_embed, position_ids)
    jax.block_until_ready((logits, attn_bert, phy_attn, loss_contras))

    assert logits.shape == (B, 1)
    assert phy_attn.shape == (B, L, L)
    assert loss_contras.shape == ()
    print("KERNEL_OK")
</pallas_src>

<mosaic_0001>
module attributes {stable_mosaic.version = 11 : i64} {
  func.func @_physico_kernel(%arg0: i32, %arg1: memref<1x50x14xf32, #tpu.memory_space<vmem>>, %arg2: memref<6x14x32xbf16, #tpu.memory_space<vmem>>, %arg3: memref<1x32xf32, #tpu.memory_space<vmem>>, %arg4: memref<32x96xbf16, #tpu.memory_space<vmem>>, %arg5: memref<1x96xf32, #tpu.memory_space<vmem>>, %arg6: memref<32x32xbf16, #tpu.memory_space<vmem>>, %arg7: memref<1x32xf32, #tpu.memory_space<vmem>>, %arg8: memref<32x32xbf16, #tpu.memory_space<vmem>>, %arg9: memref<1x32xf32, #tpu.memory_space<vmem>>, %arg10: memref<1x45x32xf32, #tpu.memory_space<vmem>>, %arg11: memref<1x45x45xf32, #tpu.memory_space<vmem>>) attributes {dimension_semantics = [#tpu.dimension_semantics<parallel>], iteration_bounds = array<i64: 2>, scalar_prefetch = 0 : i64, scratch_operands = 0 : i64, tpu.core_type = #tpu.core_type<tc>, window_params = [{transform_indices = @transform_0, window_bounds = array<i64: 1, 50, 14>}, {pipeline_mode = #tpu.pipeline_mode<synchronous>, transform_indices = @transform_1, window_bounds = array<i64: 6, 14, 32>}, {pipeline_mode = #tpu.pipeline_mode<synchronous>, transform_indices = @transform_2, window_bounds = array<i64: 1, 32>}, {pipeline_mode = #tpu.pipeline_mode<synchronous>, transform_indices = @transform_3, window_bounds = array<i64: 32, 96>}, {pipeline_mode = #tpu.pipeline_mode<synchronous>, transform_indices = @transform_4, window_bounds = array<i64: 1, 96>}, {pipeline_mode = #tpu.pipeline_mode<synchronous>, transform_indices = @transform_5, window_bounds = array<i64: 32, 32>}, {pipeline_mode = #tpu.pipeline_mode<synchronous>, transform_indices = @transform_6, window_bounds = array<i64: 1, 32>}, {pipeline_mode = #tpu.pipeline_mode<synchronous>, transform_indices = @transform_7, window_bounds = array<i64: 32, 32>}, {pipeline_mode = #tpu.pipeline_mode<synchronous>, transform_indices = @transform_8, window_bounds = array<i64: 1, 32>}, {transform_indices = @transform_9, window_bounds = array<i64: 1, 45, 32>}, {transform_indices = @transform_10, window_bounds = array<i64: 1, 45, 45>}]} {
    %c0 = arith.constant 0 : index
    %c0_0 = arith.constant 0 : index
    %c0_1 = arith.constant 0 : index
    %0 = vector.load %arg1[%c0, %c0_0, %c0_1] : memref<1x50x14xf32, #tpu.memory_space<vmem>>, vector<1x50x14xf32>
    %1 = vector.shape_cast %0 : vector<1x50x14xf32> to vector<50x14xf32>
    %2 = vector.extract_strided_slice %1 {offsets = [0, 0], sizes = [45, 14], strides = [1, 1]} : vector<50x14xf32> to vector<45x14xf32>
    %c0_2 = arith.constant 0 : index
    %c0_3 = arith.constant 0 : index
    %c0_4 = arith.constant 0 : index
    %3 = vector.load %arg2[%c0_2, %c0_3, %c0_4] : memref<6x14x32xbf16, #tpu.memory_space<vmem>>, vector<1x14x32xbf16>
    %4 = vector.shape_cast %3 : vector<1x14x32xbf16> to vector<14x32xbf16>
    %5 = arith.truncf %2 : vector<45x14xf32> to vector<45x14xbf16>
    %cst = arith.constant dense<0.000000e+00> : vector<45x32xf32>
    %6 = tpu.matmul %5, %4, %cst {dimension_numbers = #tpu.dot_dimension_numbers<[1], [0], [0], [1], [0, 0, 1, 1], [], []>} : vector<45x14xbf16>, vector<14x32xbf16>, vector<45x32xf32> -> vector<45x32xf32>
    %7 = vector.extract_strided_slice %1 {offsets = [1, 0], sizes = [45, 14], strides = [1, 1]} : vector<50x14xf32> to vector<45x14xf32>
    %c1 = arith.constant 1 : index
    %c0_5 = arith.constant 0 : index
    %c0_6 = arith.constant 0 : index
    %8 = vector.load %arg2[%c1, %c0_5, %c0_6] : memref<6x14x32xbf16, #tpu.memory_space<vmem>>, vector<1x14x32xbf16>
    %9 = vector.shape_cast %8 : vector<1x14x32xbf16> to vector<14x32xbf16>
    %10 = arith.truncf %7 : vector<45x14xf32> to vector<45x14xbf16>
    %cst_7 = arith.constant dense<0.000000e+00> : vector<45x32xf32>
    %11 = tpu.matmul %10, %9, %cst_7 {dimension_numbers = #tpu.dot_dimension_numbers<[1], [0], [0], [1], [0, 0, 1, 1], [], []>} : vector<45x14xbf16>, vector<14x32xbf16>, vector<45x32xf32> -> vector<45x32xf32>
    %12 = arith.addf %6, %11 : vector<45x32xf32>
    %13 = vector.extract_strided_slice %1 {offsets = [2, 0], sizes = [45, 14], strides = [1, 1]} : vector<50x14xf32> to vector<45x14xf32>
    %c2 = arith.constant 2 : index
    %c0_8 = arith.constant 0 : index
    %c0_9 = arith.constant 0 : index
    %14 = vector.load %arg2[%c2, %c0_8, %c0_9] : memref<6x14x32xbf16, #tpu.memory_space<vmem>>, vector<1x14x32xbf16>
    %15 = vector.shape_cast %14 : vector<1x14x32xbf16> to vector<14x32xbf16>
    %16 = arith.truncf %13 : vector<45x14xf32> to vector<45x14xbf16>
    %cst_10 = arith.constant dense<0.000000e+00> : vector<45x32xf32>
    %17 = tpu.matmul %16, %15, %cst_10 {dimension_numbers = #tpu.dot_dimension_numbers<[1], [0], [0], [1], [0, 0, 1, 1], [], []>} : vector<45x14xbf16>, vector<14x32xbf16>, vector<45x32xf32> -> vector<45x32xf32>
    %18 = arith.addf %12, %17 : vector<45x32xf32>
    %19 = vector.extract_strided_slice %1 {offsets = [3, 0], sizes = [45, 14], strides = [1, 1]} : vector<50x14xf32> to vector<45x14xf32>
    %c3 = arith.constant 3 : index
    %c0_11 = arith.constant 0 : index
    %c0_12 = arith.constant 0 : index
    %20 = vector.load %arg2[%c3, %c0_11, %c0_12] : memref<6x14x32xbf16, #tpu.memory_space<vmem>>, vector<1x14x32xbf16>
    %21 = vector.shape_cast %20 : vector<1x14x32xbf16> to vector<14x32xbf16>
    %22 = arith.truncf %19 : vector<45x14xf32> to vector<45x14xbf16>
    %cst_13 = arith.constant dense<0.000000e+00> : vector<45x32xf32>
    %23 = tpu.matmul %22, %21, %cst_13 {dimension_numbers = #tpu.dot_dimension_numbers<[1], [0], [0], [1], [0, 0, 1, 1], [], []>} : vector<45x14xbf16>, vector<14x32xbf16>, vector<45x32xf32> -> vector<45x32xf32>
    %24 = arith.addf %18, %23 : vector<45x32xf32>
    %25 = vector.extract_strided_slice %1 {offsets = [4, 0], sizes = [45, 14], strides = [1, 1]} : vector<50x14xf32> to vector<45x14xf32>
    %c4 = arith.constant 4 : index
    %c0_14 = arith.constant 0 : index
    %c0_15 = arith.constant 0 : index
    %26 = vector.load %arg2[%c4, %c0_14, %c0_15] : memref<6x14x32xbf16, #tpu.memory_space<vmem>>, vector<1x14x32xbf16>
    %27 = vector.shape_cast %26 : vector<1x14x32xbf16> to vector<14x32xbf16>
    %28 = arith.truncf %25 : vector<45x14xf32> to vector<45x14xbf16>
    %cst_16 = arith.constant dense<0.000000e+00> : vector<45x32xf32>
    %29 = tpu.matmul %28, %27, %cst_16 {dimension_numbers = #tpu.dot_dimension_numbers<[1], [0], [0], [1], [0, 0, 1, 1], [], []>} : vector<45x14xbf16>, vector<14x32xbf16>, vector<45x32xf32> -> vector<45x32xf32>
    %30 = arith.addf %24, %29 : vector<45x32xf32>
    %31 = vector.extract_strided_slice %1 {offsets = [5, 0], sizes = [45, 14], strides = [1, 1]} : vector<50x14xf32> to vector<45x14xf32>
    %c5 = arith.constant 5 : index
    %c0_17 = arith.constant 0 : index
    %c0_18 = arith.constant 0 : index
    %32 = vector.load %arg2[%c5, %c0_17, %c0_18] : memref<6x14x32xbf16, #tpu.memory_space<vmem>>, vector<1x14x32xbf16>
    %33 = vector.shape_cast %32 : vector<1x14x32xbf16> to vector<14x32xbf16>
    %34 = arith.truncf %31 : vector<45x14xf32> to vector<45x14xbf16>
    %cst_19 = arith.constant dense<0.000000e+00> : vector<45x32xf32>
    %35 = tpu.matmul %34, %33, %cst_19 {dimension_numbers = #tpu.dot_dimension_numbers<[1], [0], [0], [1], [0, 0, 1, 1], [], []>} : vector<45x14xbf16>, vector<14x32xbf16>, vector<45x32xf32> -> vector<45x32xf32>
    %36 = arith.addf %30, %35 : vector<45x32xf32>
    %c0_20 = arith.constant 0 : index
    %c0_21 = arith.constant 0 : index
    %37 = vector.load %arg3[%c0_20, %c0_21] : memref<1x32xf32, #tpu.memory_space<vmem>>, vector<1x32xf32>
    %38 = vector.broadcast %37 : vector<1x32xf32> to vector<45x32xf32>
    %39 = arith.addf %36, %38 : vector<45x32xf32>
    %cst_22 = arith.constant 0.000000e+00 : f32
    %40 = vector.broadcast %cst_22 : f32 to vector<45x32xf32>
    %41 = arith.maximumf %39, %40 : vector<45x32xf32>
    %c0_23 = arith.constant 0 : index
    %c0_24 = arith.constant 0 : index
    %42 = vector.load %arg4[%c0_23, %c0_24] : memref<32x96xbf16, #tpu.memory_space<vmem>>, vector<32x96xbf16>
    %43 = arith.truncf %41 : vector<45x32xf32> to vector<45x32xbf16>
    %cst_25 = arith.constant dense<0.000000e+00> : vector<45x96xf32>
    %44 = tpu.matmul %43, %42, %cst_25 {dimension_numbers = #tpu.dot_dimension_numbers<[1], [0], [0], [1], [0, 0, 1, 1], [], []>} : vector<45x32xbf16>, vector<32x96xbf16>, vector<45x96xf32> -> vector<45x96xf32>
    %c0_26 = arith.constant 0 : index
    %c0_27 = arith.constant 0 : index
    %45 = vector.load %arg5[%c0_26, %c0_27] : memref<1x96xf32, #tpu.memory_space<vmem>>, vector<1x96xf32>
    %46 = vector.broadcast %45 : vector<1x96xf32> to vector<45x96xf32>
    %47 = arith.addf %44, %46 : vector<45x96xf32>
    %48 = vector.extract_strided_slice %47 {offsets = [0, 0], sizes = [45, 32], strides = [1, 1]} : vector<45x96xf32> to vector<45x32xf32>
    %49 = vector.extract_strided_slice %47 {offsets = [0, 32], sizes = [45, 32], strides = [1, 1]} : vector<45x96xf32> to vector<45x32xf32>
    %50 = vector.extract_strided_slice %47 {offsets = [0, 64], sizes = [45, 32], strides = [1, 1]} : vector<45x96xf32> to vector<45x32xf32>
    %51 = arith.truncf %48 : vector<45x32xf32> to vector<45x32xbf16>
    %52 = arith.truncf %49 : vector<45x32xf32> to vector<45x32xbf16>
    %cst_28 = arith.constant dense<0.000000e+00> : vector<45x45xf32>
    %53 = tpu.matmul %51, %52, %cst_28 {dimension_numbers = #tpu.dot_dimension_numbers<[1], [1], [0], [0], [0, 0, 1, 0], [], []>} : vector<45x32xbf16>, vector<45x32xbf16>, vector<45x45xf32> -> vector<45x45xf32>
    %cst_29 = arith.constant 0.176776692 : f32
    %54 = vector.broadcast %cst_29 : f32 to vector<45x45xf32>
    %55 = arith.mulf %53, %54 : vector<45x45xf32>
    %cst_30 = arith.constant dense<0xFF800000> : vector<45xf32>
    %56 = vector.multi_reduction <maximumf>, %55, %cst_30 [1] : vector<45x45xf32> to vector<45xf32>
    %57 = vector.shape_cast %56 : vector<45xf32> to vector<45x1xf32>
    %58 = vector.broadcast %57 : vector<45x1xf32> to vector<45x45xf32>
    %59 = arith.subf %55, %58 : vector<45x45xf32>
    %60 = math.exp %59 : vector<45x45xf32>
    %cst_31 = arith.constant dense<0.000000e+00> : vector<45xf32>
    %61 = vector.multi_reduction <add>, %60, %cst_31 [1] : vector<45x45xf32> to vector<45xf32>
    %62 = vector.shape_cast %61 : vector<45xf32> to vector<45x1xf32>
    %63 = vector.broadcast %62 : vector<45x1xf32> to vector<45x45xf32>
    %64 = arith.divf %60, %63 : vector<45x45xf32>
    %65 = arith.truncf %64 : vector<45x45xf32> to vector<45x45xbf16>
    %66 = arith.truncf %50 : vector<45x32xf32> to vector<45x32xbf16>
    %cst_32 = arith.constant dense<0.000000e+00> : vector<45x32xf32>
    %67 = tpu.matmul %65, %66, %cst_32 {dimension_numbers = #tpu.dot_dimension_numbers<[1], [0], [0], [1], [0, 0, 1, 1], [], []>} : vector<45x45xbf16>, vector<45x32xbf16>, vector<45x32xf32> -> vector<45x32xf32>
    %c0_33 = arith.constant 0 : index
    %c0_34 = arith.constant 0 : index
    %68 = vector.load %arg6[%c0_33, %c0_34] : memref<32x32xbf16, #tpu.memory_space<vmem>>, vector<32x32xbf16>
    %69 = arith.truncf %67 : vector<45x32xf32> to vector<45x32xbf16>
    %cst_35 = arith.constant dense<0.000000e+00> : vector<45x32xf32>
    %70 = tpu.matmul %69, %68, %cst_35 {dimension_numbers = #tpu.dot_dimension_numbers<[1], [0], [0], [1], [0, 0, 1, 1], [], []>} : vector<45x32xbf16>, vector<32x32xbf16>, vector<45x32xf32> -> vector<45x32xf32>
    %c0_36 = arith.constant 0 : index
    %c0_37 = arith.constant 0 : index
    %71 = vector.load %arg7[%c0_36, %c0_37] : memref<1x32xf32, #tpu.memory_space<vmem>>, vector<1x32xf32>
    %72 = vector.broadcast %71 : vector<1x32xf32> to vector<45x32xf32>
    %73 = arith.addf %70, %72 : vector<45x32xf32>
    %c0_38 = arith.constant 0 : index
    %c0_39 = arith.constant 0 : index
    %74 = vector.load %arg8[%c0_38, %c0_39] : memref<32x32xbf16, #tpu.memory_space<vmem>>, vector<32x32xbf16>
    %75 = arith.truncf %73 : vector<45x32xf32> to vector<45x32xbf16>
    %cst_40 = arith.constant dense<0.000000e+00> : vector<45x32xf32>
    %76 = tpu.matmul %75, %74, %cst_40 {dimension_numbers = #tpu.dot_dimension_numbers<[1], [0], [0], [1], [0, 0, 1, 1], [], []>} : vector<45x32xbf16>, vector<32x32xbf16>, vector<45x32xf32> -> vector<45x32xf32>
    %c0_41 = arith.constant 0 : index
    %c0_42 = arith.constant 0 : index
    %77 = vector.load %arg9[%c0_41, %c0_42] : memref<1x32xf32, #tpu.memory_space<vmem>>, vector<1x32xf32>
    %78 = vector.broadcast %77 : vector<1x32xf32> to vector<45x32xf32>
    %79 = arith.addf %76, %78 : vector<45x32xf32>
    %80 = arith.mulf %79, %79 : vector<45x32xf32>
    %cst_43 = arith.constant dense<0.000000e+00> : vector<45xf32>
    %81 = vector.multi_reduction <add>, %80, %cst_43 [1] : vector<45x32xf32> to vector<45xf32>
    %82 = vector.shape_cast %81 : vector<45xf32> to vector<45x1xf32>
    %83 = math.sqrt %82 : vector<45x1xf32>
    %cst_44 = arith.constant 9.99999996E-13 : f32
    %84 = vector.broadcast %cst_44 : f32 to vector<45x1xf32>
    %85 = arith.maximumf %83, %84 : vector<45x1xf32>
    %86 = vector.broadcast %85 : vector<45x1xf32> to vector<45x32xf32>
    %87 = arith.divf %79, %86 : vector<45x32xf32>
    %c0_45 = arith.constant 0 : index
    %c0_46 = arith.constant 0 : index
    %c0_47 = arith.constant 0 : index
    %88 = vector.load %arg10[%c0_45, %c0_46, %c0_47] : memref<1x45x32xf32, #tpu.memory_space<vmem>>, vector<1x45x32xf32>
    %89 = vector.shape_cast %88 : vector<1x45x32xf32> to vector<45x32xf32>
    %90 = vector.shape_cast %87 : vector<45x32xf32> to vector<1x45x32xf32>
    tpu.vector_store %arg10[%c0_45, %c0_46, %c0_47], %90 {strides = array<i32>} : memref<1x45x32xf32, #tpu.memory_space<vmem>>, vector<1x45x32xf32>,
    %c0_48 = arith.constant 0 : index
    %c0_49 = arith.constant 0 : index
    %c0_50 = arith.constant 0 : index
    %91 = vector.load %arg11[%c0_48, %c0_49, %c0_50] : memref<1x45x45xf32, #tpu.memory_space<vmem>>, vector<1x45x45xf32>
    %92 = vector.shape_cast %91 : vector<1x45x45xf32> to vector<45x45xf32>
    %93 = vector.shape_cast %64 : vector<45x45xf32> to vector<1x45x45xf32>
    tpu.vector_store %arg11[%c0_48, %c0_49, %c0_50], %93 {strides = array<i32>} : memref<1x45x45xf32, #tpu.memory_space<vmem>>, vector<1x45x45xf32>,
    return
  }
  func.func @transform_0(%arg0: i32) -> (i32, i32, i32) {
    %c0_i32 = arith.constant 0 : i32
    %c0_i32_0 = arith.constant 0 : i32
    %c0_i32_1 = arith.constant 0 : i32
    return %arg0, %c0_i32, %c0_i32_0 : i32, i32, i32
  }
  func.func @transform_1(%arg0: i32) -> (i32, i32, i32) {
    %c0_i32 = arith.constant 0 : i32
    %c0_i32_0 = arith.constant 0 : i32
    %c0_i32_1 = arith.constant 0 : i32
    %c0_i32_2 = arith.constant 0 : i32
    return %c0_i32, %c0_i32_0, %c0_i32_1 : i32, i32, i32
  }
  func.func @transform_2(%arg0: i32) -> (i32, i32) {
    %c0_i32 = arith.constant 0 : i32
    %c0_i32_0 = arith.constant 0 : i32
    %c0_i32_1 = arith.constant 0 : i32
    return %c0_i32, %c0_i32_0 : i32, i32
  }
  func.func @transform_3(%arg0: i32) -> (i32, i32) {
    %c0_i32 = arith.constant 0 : i32
    %c0_i32_0 = arith.constant 0 : i32
    %c0_i32_1 = arith.constant 0 : i32
    return %c0_i32, %c0_i32_0 : i32, i32
  }
  func.func @transform_4(%arg0: i32) -> (i32, i32) {
    %c0_i32 = arith.constant 0 : i32
    %c0_i32_0 = arith.constant 0 : i32
    %c0_i32_1 = arith.constant 0 : i32
    return %c0_i32, %c0_i32_0 : i32, i32
  }
  func.func @transform_5(%arg0: i32) -> (i32, i32) {
    %c0_i32 = arith.constant 0 : i32
    %c0_i32_0 = arith.constant 0 : i32
    %c0_i32_1 = arith.constant 0 : i32
    return %c0_i32, %c0_i32_0 : i32, i32
  }
  func.func @transform_6(%arg0: i32) -> (i32, i32) {
    %c0_i32 = arith.constant 0 : i32
    %c0_i32_0 = arith.constant 0 : i32
    %c0_i32_1 = arith.constant 0 : i32
    return %c0_i32, %c0_i32_0 : i32, i32
  }
  func.func @transform_7(%arg0: i32) -> (i32, i32) {
    %c0_i32 = arith.constant 0 : i32
    %c0_i32_0 = arith.constant 0 : i32
    %c0_i32_1 = arith.constant 0 : i32
    return %c0_i32, %c0_i32_0 : i32, i32
  }
  func.func @transform_8(%arg0: i32) -> (i32, i32) {
    %c0_i32 = arith.constant 0 : i32
    %c0_i32_0 = arith.constant 0 : i32
    %c0_i32_1 = arith.constant 0 : i32
    return %c0_i32, %c0_i32_0 : i32, i32
  }
  func.func @transform_9(%arg0: i32) -> (i32, i32, i32) {
    %c0_i32 = arith.constant 0 : i32
    %c0_i32_0 = arith.constant 0 : i32
    %c0_i32_1 = arith.constant 0 : i32
    return %arg0, %c0_i32, %c0_i32_0 : i32, i32, i32
  }
  func.func @transform_10(%arg0: i32) -> (i32, i32, i32) {
    %c0_i32 = arith.constant 0 : i32
    %c0_i32_0 = arith.constant 0 : i32
    %c0_i32_1 = arith.constant 0 : i32
    return %arg0, %c0_i32, %c0_i32_0 : i32, i32, i32
  }
}

module attributes {stable_mosaic.version = 11 : i64} {
  func.func @_fusion_kernel(%arg0: i32, %arg1: memref<1xf32, #tpu.memory_space<smem>>, %arg2: memref<1x45x768xf32, #tpu.memory_space<vmem>>, %arg3: memref<1x45x32xf32, #tpu.memory_space<vmem>>, %arg4: memref<768x32xbf16, #tpu.memory_space<vmem>>, %arg5: memref<1x32xf32, #tpu.memory_space<vmem>>, %arg6: memref<32x96xbf16, #tpu.memory_space<vmem>>, %arg7: memref<1x96xf32, #tpu.memory_space<vmem>>, %arg8: memref<32x32xbf16, #tpu.memory_space<vmem>>, %arg9: memref<1x32xf32, #tpu.memory_space<vmem>>, %arg10: memref<32x32xbf16, #tpu.memory_space<vmem>>, %arg11: memref<1x32xf32, #tpu.memory_space<vmem>>, %arg12: memref<32x1xbf16, #tpu.memory_space<vmem>>, %arg13: memref<1x1xf32, #tpu.memory_space<vmem>>, %arg14: memref<1x1x2xf32, #tpu.memory_space<vmem>>, %arg15: memref<1x1x1xf32, #tpu.memory_space<vmem>>) attributes {dimension_semantics = [#tpu.dimension_semantics<parallel>], iteration_bounds = array<i64: 2>, scalar_prefetch = 0 : i64, scratch_operands = 0 : i64, tpu.core_type = #tpu.core_type<tc>, window_params = [{transform_indices = @transform_0, window_bounds = array<i64: 1>}, {transform_indices = @transform_1, window_bounds = array<i64: 1, 45, 768>}, {transform_indices = @transform_2, window_bounds = array<i64: 1, 45, 32>}, {pipeline_mode = #tpu.pipeline_mode<synchronous>, transform_indices = @transform_3, window_bounds = array<i64: 768, 32>}, {pipeline_mode = #tpu.pipeline_mode<synchronous>, transform_indices = @transform_4, window_bounds = array<i64: 1, 32>}, {pipeline_mode = #tpu.pipeline_mode<synchronous>, transform_indices = @transform_5, window_bounds = array<i64: 32, 96>}, {pipeline_mode = #tpu.pipeline_mode<synchronous>, transform_indices = @transform_6, window_bounds = array<i64: 1, 96>}, {pipeline_mode = #tpu.pipeline_mode<synchronous>, transform_indices = @transform_7, window_bounds = array<i64: 32, 32>}, {pipeline_mode = #tpu.pipeline_mode<synchronous>, transform_indices = @transform_8, window_bounds = array<i64: 1, 32>}, {pipeline_mode = #tpu.pipeline_mode<synchronous>, transform_indices = @transform_9, window_bounds = array<i64: 32, 32>}, {pipeline_mode = #tpu.pipeline_mode<synchronous>, transform_indices = @transform_10, window_bounds = array<i64: 1, 32>}, {pipeline_mode = #tpu.pipeline_mode<synchronous>, transform_indices = @transform_11, window_bounds = array<i64: 32, 1>}, {pipeline_mode = #tpu.pipeline_mode<synchronous>, transform_indices = @transform_12, window_bounds = array<i64: 1, 1>}, {transform_indices = @transform_13, window_bounds = array<i64: 1, 1, 2>}, {transform_indices = @transform_14, window_bounds = array<i64: 1, 1, 1>}]} {
    %c0 = arith.constant 0 : index
    %c0_0 = arith.constant 0 : index
    %c0_1 = arith.constant 0 : index
    %0 = vector.load %arg2[%c0, %c0_0, %c0_1] : memref<1x45x768xf32, #tpu.memory_space<vmem>>, vector<1x45x768xf32>
    %1 = vector.shape_cast %0 : vector<1x45x768xf32> to vector<45x768xf32>
    %c0_2 = arith.constant 0 : index
    %c0_3 = arith.constant 0 : index
    %2 = vector.load %arg4[%c0_2, %c0_3] : memref<768x32xbf16, #tpu.memory_space<vmem>>, vector<768x32xbf16>
    %3 = arith.truncf %1 : vector<45x768xf32> to vector<45x768xbf16>
    %cst = arith.constant dense<0.000000e+00> : vector<45x32xf32>
    %4 = tpu.matmul %3, %2, %cst {dimension_numbers = #tpu.dot_dimension_numbers<[1], [0], [0], [1], [0, 0, 1, 1], [], []>} : vector<45x768xbf16>, vector<768x32xbf16>, vector<45x32xf32> -> vector<45x32xf32>
    %c0_4 = arith.constant 0 : index
    %c0_5 = arith.constant 0 : index
    %5 = vector.load %arg5[%c0_4, %c0_5] : memref<1x32xf32, #tpu.memory_space<vmem>>, vector<1x32xf32>
    %6 = vector.broadcast %5 : vector<1x32xf32> to vector<45x32xf32>
    %7 = arith.addf %4, %6 : vector<45x32xf32>
    %8 = arith.mulf %7, %7 : vector<45x32xf32>
    %cst_6 = arith.constant dense<0.000000e+00> : vector<45xf32>
    %9 = vector.multi_reduction <add>, %8, %cst_6 [1] : vector<45x32xf32> to vector<45xf32>
    %10 = vector.shape_cast %9 : vector<45xf32> to vector<45x1xf32>
    %11 = math.sqrt %10 : vector<45x1xf32>
    %cst_7 = arith.constant 9.99999996E-13 : f32
    %12 = vector.broadcast %cst_7 : f32 to vector<45x1xf32>
    %13 = arith.maximumf %11, %12 : vector<45x1xf32>
    %14 = vector.broadcast %13 : vector<45x1xf32> to vector<45x32xf32>
    %15 = arith.divf %7, %14 : vector<45x32xf32>
    %c0_8 = arith.constant 0 : index
    %c0_9 = arith.constant 0 : index
    %c0_10 = arith.constant 0 : index
    %16 = vector.load %arg3[%c0_8, %c0_9, %c0_10] : memref<1x45x32xf32, #tpu.memory_space<vmem>>, vector<1x45x32xf32>
    %17 = vector.shape_cast %16 : vector<1x45x32xf32> to vector<45x32xf32>
    %c0_11 = arith.constant 0 : index
    %18 = memref.load %arg1[%c0_11] : memref<1xf32, #tpu.memory_space<smem>>
    %cst_12 = arith.constant 1.000000e+00 : f32
    %19 = arith.divf %cst_12, %18 : f32
    %cst_13 = arith.constant dense<0.000000e+00> : vector<45x45xf32>
    %20 = tpu.matmul %15, %17, %cst_13 {dimension_numbers = #tpu.dot_dimension_numbers<[1], [1], [0], [0], [0, 0, 1, 0], [], []>} : vector<45x32xf32>, vector<45x32xf32>, vector<45x45xf32> -> vector<45x45xf32>
    %21 = vector.broadcast %19 : f32 to vector<45x45xf32>
    %22 = arith.mulf %20, %21 : vector<45x45xf32>
    %23 = arith.mulf %15, %17 : vector<45x32xf32>
    %24 = vector.shape_cast %23 : vector<45x32xf32> to vector<1x45x32xf32>
    %cst_14 = arith.constant dense<0.000000e+00> : vector<1xf32>
    %25 = vector.multi_reduction <add>, %24, %cst_14 [1, 2] : vector<1x45x32xf32> to vector<1xf32>
    %26 = vector.shape_cast %25 : vector<1xf32> to vector<1x1x1xf32>
    %27 = vector.extract %26[0, 0, 0] : f32 from vector<1x1x1xf32>
    %28 = arith.mulf %27, %19 : f32
    %cst_15 = arith.constant dense<0xFF800000> : vector<45xf32>
    %29 = vector.multi_reduction <maximumf>, %22, %cst_15 [1] : vector<45x45xf32> to vector<45xf32>
    %30 = vector.shape_cast %29 : vector<45xf32> to vector<45x1xf32>
    %31 = vector.broadcast %30 : vector<45x1xf32> to vector<45x45xf32>
    %32 = arith.subf %22, %31 : vector<45x45xf32>
    %33 = math.exp %32 : vector<45x45xf32>
    %cst_16 = arith.constant dense<0.000000e+00> : vector<45xf32>
    %34 = vector.multi_reduction <add>, %33, %cst_16 [1] : vector<45x45xf32> to vector<45xf32>
    %35 = vector.shape_cast %34 : vector<45xf32> to vector<45x1xf32>
    %36 = math.log %35 : vector<45x1xf32>
    %37 = arith.addf %36, %30 : vector<45x1xf32>
    %cst_17 = arith.constant dense<0xFF800000> : vector<45xf32>
    %38 = vector.multi_reduction <maximumf>, %22, %cst_17 [0] : vector<45x45xf32> to vector<45xf32>
    %39 = vector.shape_cast %38 : vector<45xf32> to vector<1x45xf32>
    %40 = vector.broadcast %39 : vector<1x45xf32> to vector<45x45xf32>
    %41 = arith.subf %22, %40 : vector<45x45xf32>
    %42 = math.exp %41 : vector<45x45xf32>
    %cst_18 = arith.constant dense<0.000000e+00> : vector<45xf32>
    %43 = vector.multi_reduction <add>, %42, %cst_18 [0] : vector<45x45xf32> to vector<45xf32>
    %44 = vector.shape_cast %43 : vector<45xf32> to vector<1x45xf32>
    %45 = math.log %44 : vector<1x45xf32>
    %46 = arith.addf %45, %39 : vector<1x45xf32>
    %47 = vector.shape_cast %37 : vector<45x1xf32> to vector<1x45x1xf32>
    %cst_19 = arith.constant dense<0.000000e+00> : vector<1xf32>
    %48 = vector.multi_reduction <add>, %47, %cst_19 [1, 2] : vector<1x45x1xf32> to vector<1xf32>
    %49 = vector.shape_cast %48 : vector<1xf32> to vector<1x1x1xf32>
    %50 = vector.extract %49[0, 0, 0] : f32 from vector<1x1x1xf32>
    %51 = arith.subf %28, %50 : f32
    %cst_20 = arith.constant 4.500000e+01 : f32
    %52 = arith.divf %51, %cst_20 : f32
    %53 = vector.shape_cast %46 : vector<1x45xf32> to vector<1x1x45xf32>
    %cst_21 = arith.constant dense<0.000000e+00> : vector<1xf32>
    %54 = vector.multi_reduction <add>, %53, %cst_21 [1, 2] : vector<1x1x45xf32> to vector<1xf32>
    %55 = vector.shape_cast %54 : vector<1xf32> to vector<1x1x1xf32>
    %56 = vector.extract %55[0, 0, 0] : f32 from vector<1x1x1xf32>
    %57 = arith.subf %28, %56 : f32
    %cst_22 = arith.constant 4.500000e+01 : f32
    %58 = arith.divf %57, %cst_22 : f32
    %59 = vector.broadcast %52 : f32 to vector<1x1xf32>
    %60 = vector.broadcast %58 : f32 to vector<1x1xf32>
    %61 = tpu.concatenate %59, %60 in 1 : vector<1x1xf32>, vector<1x1xf32> -> vector<1x2xf32>
    %c0_23 = arith.constant 0 : index
    %c0_24 = arith.constant 0 : index
    %c0_25 = arith.constant 0 : index
    %62 = vector.load %arg14[%c0_23, %c0_24, %c0_25] : memref<1x1x2xf32, #tpu.memory_space<vmem>>, vector<1x1x2xf32>
    %63 = vector.shape_cast %62 : vector<1x1x2xf32> to vector<1x2xf32>
    %64 = vector.shape_cast %61 : vector<1x2xf32> to vector<1x1x2xf32>
    tpu.vector_store %arg14[%c0_23, %c0_24, %c0_25], %64 {strides = array<i32>} : memref<1x1x2xf32, #tpu.memory_space<vmem>>, vector<1x1x2xf32>,
    %65 = arith.addf %15, %17 : vector<45x32xf32>
    %c0_26 = arith.constant 0 : index
    %c0_27 = arith.constant 0 : index
    %66 = vector.load %arg6[%c0_26, %c0_27] : memref<32x96xbf16, #tpu.memory_space<vmem>>, vector<32x96xbf16>
    %67 = arith.truncf %65 : vector<45x32xf32> to vector<45x32xbf16>
    %cst_28 = arith.constant dense<0.000000e+00> : vector<45x96xf32>
    %68 = tpu.matmul %67, %66, %cst_28 {dimension_numbers = #tpu.dot_dimension_numbers<[1], [0], [0], [1], [0, 0, 1, 1], [], []>} : vector<45x32xbf16>, vector<32x96xbf16>, vector<45x96xf32> -> vector<45x96xf32>
    %c0_29 = arith.constant 0 : index
    %c0_30 = arith.constant 0 : index
    %69 = vector.load %arg7[%c0_29, %c0_30] : memref<1x96xf32, #tpu.memory_space<vmem>>, vector<1x96xf32>
    %70 = vector.broadcast %69 : vector<1x96xf32> to vector<45x96xf32>
    %71 = arith.addf %68, %70 : vector<45x96xf32>
    %72 = vector.extract_strided_slice %71 {offsets = [0, 0], sizes = [45, 8], strides = [1, 1]} : vector<45x96xf32> to vector<45x8xf32>
    %73 = vector.extract_strided_slice %71 {offsets = [0, 32], sizes = [45, 8], strides = [1, 1]} : vector<45x96xf32> to vector<45x8xf32>
    %74 = vector.extract_strided_slice %71 {offsets = [0, 64], sizes = [45, 8], strides = [1, 1]} : vector<45x96xf32> to vector<45x8xf32>
    %75 = arith.truncf %72 : vector<45x8xf32> to vector<45x8xbf16>
    %76 = arith.truncf %73 : vector<45x8xf32> to vector<45x8xbf16>
    %cst_31 = arith.constant dense<0.000000e+00> : vector<45x45xf32>
    %77 = tpu.matmul %75, %76, %cst_31 {dimension_numbers = #tpu.dot_dimension_numbers<[1], [1], [0], [0], [0, 0, 1, 0], [], []>} : vector<45x8xbf16>, vector<45x8xbf16>, vector<45x45xf32> -> vector<45x45xf32>
    %cst_32 = arith.constant 0.353553385 : f32
    %78 = vector.broadcast %cst_32 : f32 to vector<45x45xf32>
    %79 = arith.mulf %77, %78 : vector<45x45xf32>
    %cst_33 = arith.constant dense<0xFF800000> : vector<45xf32>
    %80 = vector.multi_reduction <maximumf>, %79, %cst_33 [1] : vector<45x45xf32> to vector<45xf32>
    %81 = vector.shape_cast %80 : vector<45xf32> to vector<45x1xf32>
    %82 = vector.broadcast %81 : vector<45x1xf32> to vector<45x45xf32>
    %83 = arith.subf %79, %82 : vector<45x45xf32>
    %84 = math.exp %83 : vector<45x45xf32>
    %cst_34 = arith.constant dense<0.000000e+00> : vector<45xf32>
    %85 = vector.multi_reduction <add>, %84, %cst_34 [1] : vector<45x45xf32> to vector<45xf32>
    %86 = vector.shape_cast %85 : vector<45xf32> to vector<45x1xf32>
    %87 = vector.broadcast %86 : vector<45x1xf32> to vector<45x45xf32>
    %88 = arith.divf %84, %87 : vector<45x45xf32>
    %89 = arith.truncf %88 : vector<45x45xf32> to vector<45x45xbf16>
    %90 = arith.truncf %74 : vector<45x8xf32> to vector<45x8xbf16>
    %cst_35 = arith.constant dense<0.000000e+00> : vector<45x8xf32>
    %91 = tpu.matmul %89, %90, %cst_35 {dimension_numbers = #tpu.dot_dimension_numbers<[1], [0], [0], [1], [0, 0, 1, 1], [], []>} : vector<45x45xbf16>, vector<45x8xbf16>, vector<45x8xf32> -> vector<45x8xf32>
    %92 = vector.extract_strided_slice %71 {offsets = [0, 8], sizes = [45, 8], strides = [1, 1]} : vector<45x96xf32> to vector<45x8xf32>
    %93 = vector.extract_strided_slice %71 {offsets = [0, 40], sizes = [45, 8], strides = [1, 1]} : vector<45x96xf32> to vector<45x8xf32>
    %94 = vector.extract_strided_slice %71 {offsets = [0, 72], sizes = [45, 8], strides = [1, 1]} : vector<45x96xf32> to vector<45x8xf32>
    %95 = arith.truncf %92 : vector<45x8xf32> to vector<45x8xbf16>
    %96 = arith.truncf %93 : vector<45x8xf32> to vector<45x8xbf16>
    %cst_36 = arith.constant dense<0.000000e+00> : vector<45x45xf32>
    %97 = tpu.matmul %95, %96, %cst_36 {dimension_numbers = #tpu.dot_dimension_numbers<[1], [1], [0], [0], [0, 0, 1, 0], [], []>} : vector<45x8xbf16>, vector<45x8xbf16>, vector<45x45xf32> -> vector<45x45xf32>
    %cst_37 = arith.constant 0.353553385 : f32
    %98 = vector.broadcast %cst_37 : f32 to vector<45x45xf32>
    %99 = arith.mulf %97, %98 : vector<45x45xf32>
    %cst_38 = arith.constant dense<0xFF800000> : vector<45xf32>
    %100 = vector.multi_reduction <maximumf>, %99, %cst_38 [1] : vector<45x45xf32> to vector<45xf32>
    %101 = vector.shape_cast %100 : vector<45xf32> to vector<45x1xf32>
    %102 = vector.broadcast %101 : vector<45x1xf32> to vector<45x45xf32>
    %103 = arith.subf %99, %102 : vector<45x45xf32>
    %104 = math.exp %103 : vector<45x45xf32>
    %cst_39 = arith.constant dense<0.000000e+00> : vector<45xf32>
    %105 = vector.multi_reduction <add>, %104, %cst_39 [1] : vector<45x45xf32> to vector<45xf32>
    %106 = vector.shape_cast %105 : vector<45xf32> to vector<45x1xf32>
    %107 = vector.broadcast %106 : vector<45x1xf32> to vector<45x45xf32>
    %108 = arith.divf %104, %107 : vector<45x45xf32>
    %109 = arith.truncf %108 : vector<45x45xf32> to vector<45x45xbf16>
    %110 = arith.truncf %94 : vector<45x8xf32> to vector<45x8xbf16>
    %cst_40 = arith.constant dense<0.000000e+00> : vector<45x8xf32>
    %111 = tpu.matmul %109, %110, %cst_40 {dimension_numbers = #tpu.dot_dimension_numbers<[1], [0], [0], [1], [0, 0, 1, 1], [], []>} : vector<45x45xbf16>, vector<45x8xbf16>, vector<45x8xf32> -> vector<45x8xf32>
    %112 = vector.extract_strided_slice %71 {offsets = [0, 16], sizes = [45, 8], strides = [1, 1]} : vector<45x96xf32> to vector<45x8xf32>
    %113 = vector.extract_strided_slice %71 {offsets = [0, 48], sizes = [45, 8], strides = [1, 1]} : vector<45x96xf32> to vector<45x8xf32>
    %114 = vector.extract_strided_slice %71 {offsets = [0, 80], sizes = [45, 8], strides = [1, 1]} : vector<45x96xf32> to vector<45x8xf32>
    %115 = arith.truncf %112 : vector<45x8xf32> to vector<45x8xbf16>
    %116 = arith.truncf %113 : vector<45x8xf32> to vector<45x8xbf16>
    %cst_41 = arith.constant dense<0.000000e+00> : vector<45x45xf32>
    %117 = tpu.matmul %115, %116, %cst_41 {dimension_numbers = #tpu.dot_dimension_numbers<[1], [1], [0], [0], [0, 0, 1, 0], [], []>} : vector<45x8xbf16>, vector<45x8xbf16>, vector<45x45xf32> -> vector<45x45xf32>
    %cst_42 = arith.constant 0.353553385 : f32
    %118 = vector.broadcast %cst_42 : f32 to vector<45x45xf32>
    %119 = arith.mulf %117, %118 : vector<45x45xf32>
    %cst_43 = arith.constant dense<0xFF800000> : vector<45xf32>
    %120 = vector.multi_reduction <maximumf>, %119, %cst_43 [1] : vector<45x45xf32> to vector<45xf32>
    %121 = vector.shape_cast %120 : vector<45xf32> to vector<45x1xf32>
    %122 = vector.broadcast %121 : vector<45x1xf32> to vector<45x45xf32>
    %123 = arith.subf %119, %122 : vector<45x45xf32>
    %124 = math.exp %123 : vector<45x45xf32>
    %cst_44 = arith.constant dense<0.000000e+00> : vector<45xf32>
    %125 = vector.multi_reduction <add>, %124, %cst_44 [1] : vector<45x45xf32> to vector<45xf32>
    %126 = vector.shape_cast %125 : vector<45xf32> to vector<45x1xf32>
    %127 = vector.broadcast %126 : vector<45x1xf32> to vector<45x45xf32>
    %128 = arith.divf %124, %127 : vector<45x45xf32>
    %129 = arith.truncf %128 : vector<45x45xf32> to vector<45x45xbf16>
    %130 = arith.truncf %114 : vector<45x8xf32> to vector<45x8xbf16>
    %cst_45 = arith.constant dense<0.000000e+00> : vector<45x8xf32>
    %131 = tpu.matmul %129, %130, %cst_45 {dimension_numbers = #tpu.dot_dimension_numbers<[1], [0], [0], [1], [0, 0, 1, 1], [], []>} : vector<45x45xbf16>, vector<45x8xbf16>, vector<45x8xf32> -> vector<45x8xf32>
    %132 = vector.extract_strided_slice %71 {offsets = [0, 24], sizes = [45, 8], strides = [1, 1]} : vector<45x96xf32> to vector<45x8xf32>
    %133 = vector.extract_strided_slice %71 {offsets = [0, 56], sizes = [45, 8], strides = [1, 1]} : vector<45x96xf32> to vector<45x8xf32>
    %134 = vector.extract_strided_slice %71 {offsets = [0, 88], sizes = [45, 8], strides = [1, 1]} : vector<45x96xf32> to vector<45x8xf32>
    %135 = arith.truncf %132 : vector<45x8xf32> to vector<45x8xbf16>
    %136 = arith.truncf %133 : vector<45x8xf32> to vector<45x8xbf16>
    %cst_46 = arith.constant dense<0.000000e+00> : vector<45x45xf32>
    %137 = tpu.matmul %135, %136, %cst_46 {dimension_numbers = #tpu.dot_dimension_numbers<[1], [1], [0], [0], [0, 0, 1, 0], [], []>} : vector<45x8xbf16>, vector<45x8xbf16>, vector<45x45xf32> -> vector<45x45xf32>
    %cst_47 = arith.constant 0.353553385 : f32
    %138 = vector.broadcast %cst_47 : f32 to vector<45x45xf32>
    %139 = arith.mulf %137, %138 : vector<45x45xf32>
    %cst_48 = arith.constant dense<0xFF800000> : vector<45xf32>
    %140 = vector.multi_reduction <maximumf>, %139, %cst_48 [1] : vector<45x45xf32> to vector<45xf32>
    %141 = vector.shape_cast %140 : vector<45xf32> to vector<45x1xf32>
    %142 = vector.broadcast %141 : vector<45x1xf32> to vector<45x45xf32>
    %143 = arith.subf %139, %142 : vector<45x45xf32>
    %144 = math.exp %143 : vector<45x45xf32>
    %cst_49 = arith.constant dense<0.000000e+00> : vector<45xf32>
    %145 = vector.multi_reduction <add>, %144, %cst_49 [1] : vector<45x45xf32> to vector<45xf32>
    %146 = vector.shape_cast %145 : vector<45xf32> to vector<45x1xf32>
    %147 = vector.broadcast %146 : vector<45x1xf32> to vector<45x45xf32>
    %148 = arith.divf %144, %147 : vector<45x45xf32>
    %149 = arith.truncf %148 : vector<45x45xf32> to vector<45x45xbf16>
    %150 = arith.truncf %134 : vector<45x8xf32> to vector<45x8xbf16>
    %cst_50 = arith.constant dense<0.000000e+00> : vector<45x8xf32>
    %151 = tpu.matmul %149, %150, %cst_50 {dimension_numbers = #tpu.dot_dimension_numbers<[1], [0], [0], [1], [0, 0, 1, 1], [], []>} : vector<45x45xbf16>, vector<45x8xbf16>, vector<45x8xf32> -> vector<45x8xf32>
    %152 = tpu.concatenate %91, %111, %131, %151 in 1 : vector<45x8xf32>, vector<45x8xf32>, vector<45x8xf32>, vector<45x8xf32> -> vector<45x32xf32>
    %c0_51 = arith.constant 0 : index
    %c0_52 = arith.constant 0 : index
    %153 = vector.load %arg8[%c0_51, %c0_52] : memref<32x32xbf16, #tpu.memory_space<vmem>>, vector<32x32xbf16>
    %154 = arith.truncf %152 : vector<45x32xf32> to vector<45x32xbf16>
    %cst_53 = arith.constant dense<0.000000e+00> : vector<45x32xf32>
    %155 = tpu.matmul %154, %153, %cst_53 {dimension_numbers = #tpu.dot_dimension_numbers<[1], [0], [0], [1], [0, 0, 1, 1], [], []>} : vector<45x32xbf16>, vector<32x32xbf16>, vector<45x32xf32> -> vector<45x32xf32>
    %c0_54 = arith.constant 0 : index
    %c0_55 = arith.constant 0 : index
    %156 = vector.load %arg9[%c0_54, %c0_55] : memref<1x32xf32, #tpu.memory_space<vmem>>, vector<1x32xf32>
    %157 = vector.broadcast %156 : vector<1x32xf32> to vector<45x32xf32>
    %158 = arith.addf %155, %157 : vector<45x32xf32>
    %cst_56 = arith.constant dense<0.000000e+00> : vector<32xf32>
    %159 = vector.multi_reduction <add>, %158, %cst_56 [0] : vector<45x32xf32> to vector<32xf32>
    %160 = vector.shape_cast %159 : vector<32xf32> to vector<1x32xf32>
    %161 = arith.mulf %160, %160 : vector<1x32xf32>
    %cst_57 = arith.constant dense<0.000000e+00> : vector<1xf32>
    %162 = vector.multi_reduction <add>, %161, %cst_57 [1] : vector<1x32xf32> to vector<1xf32>
    %163 = vector.shape_cast %162 : vector<1xf32> to vector<1x1xf32>
    %164 = math.sqrt %163 : vector<1x1xf32>
    %cst_58 = arith.constant 9.99999996E-13 : f32
    %165 = vector.broadcast %cst_58 : f32 to vector<1x1xf32>
    %166 = arith.maximumf %164, %165 : vector<1x1xf32>
    %167 = vector.broadcast %166 : vector<1x1xf32> to vector<1x32xf32>
    %168 = arith.divf %160, %167 : vector<1x32xf32>
    %c0_59 = arith.constant 0 : index
    %c0_60 = arith.constant 0 : index
    %169 = vector.load %arg10[%c0_59, %c0_60] : memref<32x32xbf16, #tpu.memory_space<vmem>>, vector<32x32xbf16>
    %170 = arith.truncf %168 : vector<1x32xf32> to vector<1x32xbf16>
    %cst_61 = arith.constant dense<0.000000e+00> : vector<1x32xf32>
    %171 = tpu.matmul %170, %169, %cst_61 {dimension_numbers = #tpu.dot_dimension_numbers<[1], [0], [0], [1], [0, 0, 1, 1], [], []>} : vector<1x32xbf16>, vector<32x32xbf16>, vector<1x32xf32> -> vector<1x32xf32>
    %c0_62 = arith.constant 0 : index
    %c0_63 = arith.constant 0 : index
    %172 = vector.load %arg11[%c0_62, %c0_63] : memref<1x32xf32, #tpu.memory_space<vmem>>, vector<1x32xf32>
    %173 = arith.addf %171, %172 : vector<1x32xf32>
    %cst_64 = arith.constant 0.000000e+00 : f32
    %174 = vector.broadcast %cst_64 : f32 to vector<1x32xf32>
    %175 = arith.maximumf %173, %174 : vector<1x32xf32>
    %c0_65 = arith.constant 0 : index
    %c0_66 = arith.constant 0 : index
    %176 = vector.load %arg12[%c0_65, %c0_66] : memref<32x1xbf16, #tpu.memory_space<vmem>>, vector<32x1xbf16>
    %177 = arith.truncf %175 : vector<1x32xf32> to vector<1x32xbf16>
    %cst_67 = arith.constant dense<0.000000e+00> : vector<1x1xf32>
    %178 = tpu.matmul %177, %176, %cst_67 {dimension_numbers = #tpu.dot_dimension_numbers<[1], [0], [0], [1], [0, 0, 1, 1], [], []>} : vector<1x32xbf16>, vector<32x1xbf16>, vector<1x1xf32> -> vector<1x1xf32>
    %c0_68 = arith.constant 0 : index
    %c0_69 = arith.constant 0 : index
    %179 = vector.load %arg13[%c0_68, %c0_69] : memref<1x1xf32, #tpu.memory_space<vmem>>, vector<1x1xf32>
    %180 = arith.addf %178, %179 : vector<1x1xf32>
    %c0_70 = arith.constant 0 : index
    %c0_71 = arith.constant 0 : index
    %c0_72 = arith.constant 0 : index
    %181 = vector.load %arg15[%c0_70, %c0_71, %c0_72] : memref<1x1x1xf32, #tpu.memory_space<vmem>>, vector<1x1x1xf32>
    %182 = vector.shape_cast %181 : vector<1x1x1xf32> to vector<1x1xf32>
    %183 = vector.shape_cast %180 : vector<1x1xf32> to vector<1x1x1xf32>
    tpu.vector_store %arg15[%c0_70, %c0_71, %c0_72], %183 {strides = array<i32>} : memref<1x1x1xf32, #tpu.memory_space<vmem>>, vector<1x1x1xf32>,
    return
  }
  func.func @transform_0(%arg0: i32) -> i32 {
    %c0_i32 = arith.constant 0 : i32
    %c0_i32_0 = arith.constant 0 : i32
    return %c0_i32 : i32
  }
  func.func @transform_1(%arg0: i32) -> (i32, i32, i32) {
    %c0_i32 = arith.constant 0 : i32
    %c0_i32_0 = arith.constant 0 : i32
    %c0_i32_1 = arith.constant 0 : i32
    return %arg0, %c0_i32, %c0_i32_0 : i32, i32, i32
  }
  func.func @transform_2(%arg0: i32) -> (i32, i32, i32) {
    %c0_i32 = arith.constant 0 : i32
    %c0_i32_0 = arith.constant 0 : i32
    %c0_i32_1 = arith.constant 0 : i32
    return %arg0, %c0_i32, %c0_i32_0 : i32, i32, i32
  }
  func.func @transform_3(%arg0: i32) -> (i32, i32) {
    %c0_i32 = arith.constant 0 : i32
    %c0_i32_0 = arith.constant 0 : i32
    %c0_i32_1 = arith.constant 0 : i32
    return %c0_i32, %c0_i32_0 : i32, i32
  }
  func.func @transform_4(%arg0: i32) -> (i32, i32) {
    %c0_i32 = arith.constant 0 : i32
    %c0_i32_0 = arith.constant 0 : i32
    %c0_i32_1 = arith.constant 0 : i32
    return %c0_i32, %c0_i32_0 : i32, i32
  }
  func.func @transform_5(%arg0: i32) -> (i32, i32) {
    %c0_i32 = arith.constant 0 : i32
    %c0_i32_0 = arith.constant 0 : i32
    %c0_i32_1 = arith.constant 0 : i32
    return %c0_i32, %c0_i32_0 : i32, i32
  }
  func.func @transform_6(%arg0: i32) -> (i32, i32) {
    %c0_i32 = arith.constant 0 : i32
    %c0_i32_0 = arith.constant 0 : i32
    %c0_i32_1 = arith.constant 0 : i32
    return %c0_i32, %c0_i32_0 : i32, i32
  }
  func.func @transform_7(%arg0: i32) -> (i32, i32) {
    %c0_i32 = arith.constant 0 : i32
    %c0_i32_0 = arith.constant 0 : i32
    %c0_i32_1 = arith.constant 0 : i32
    return %c0_i32, %c0_i32_0 : i32, i32
  }
  func.func @transform_8(%arg0: i32) -> (i32, i32) {
    %c0_i32 = arith.constant 0 : i32
    %c0_i32_0 = arith.constant 0 : i32
    %c0_i32_1 = arith.constant 0 : i32
    return %c0_i32, %c0_i32_0 : i32, i32
  }
  func.func @transform_9(%arg0: i32) -> (i32, i32) {
    %c0_i32 = arith.constant 0 : i32
    %c0_i32_0 = arith.constant 0 : i32
    %c0_i32_1 = arith.constant 0 : i32
    return %c0_i32, %c0_i32_0 : i32, i32
  }
  func.func @transform_10(%arg0: i32) -> (i32, i32) {
    %c0_i32 = arith.constant 0 : i32
    %c0_i32_0 = arith.constant 0 : i32
    %c0_i32_1 = arith.constant 0 : i32
    return %c0_i32, %c0_i32_0 : i32, i32
  }
  func.func @transform_11(%arg0: i32) -> (i32, i32) {
    %c0_i32 = arith.constant 0 : i32
    %c0_i32_0 = arith.constant 0 : i32
    %c0_i32_1 = arith.constant 0 : i32
    return %c0_i32, %c0_i32_0 : i32, i32
  }
  func.func @transform_12(%arg0: i32) -> (i32, i32) {
    %c0_i32 = arith.constant 0 : i32
    %c0_i32_0 = arith.constant 0 : i32
    %c0_i32_1 = arith.constant 0 : i32
    return %c0_i32, %c0_i32_0 : i32, i32
  }
  func.func @transform_13(%arg0: i32) -> (i32, i32, i32) {
    %c0_i32 = arith.constant 0 : i32
    %c0_i32_0 = arith.constant 0 : i32
    %c0_i32_1 = arith.constant 0 : i32
    return %arg0, %c0_i32, %c0_i32_0 : i32, i32, i32
  }
  func.func @transform_14(%arg0: i32) -> (i32, i32, i32) {
    %c0_i32 = arith.constant 0 : i32
    %c0_i32_0 = arith.constant 0 : i32
    %c0_i32_1 = arith.constant 0 : i32
    return %arg0, %c0_i32, %c0_i32_0 : i32, i32, i32
  }
}

</mosaic_0001>

<bundles_post_ra>
// kernel: mix_bend_forward.2
= control target key start
LH: loop header
LB: loop body
LE: loop exit
PB: predicated region body
PF: predicated region fallthrough
CT: control target
= control target key end

     0   :  { %s2102_s13 = smov 0   ;;  %s2479_s0 = inlined_call_operand.vmem [shape: f32[2,50,14], index: 0, kind: input, shape index: {}]   ;;  %s2480_s1 = inlined_call_operand.vmem [shape: bf16[6,14,32], index: 1, kind: input, shape index: {}]   ;;  %s2481_s2 = inlined_call_operand.vmem [shape: f32[1,32], index: 2, kind: input, shape index: {}]   ;;  %s2482_s3 = inlined_call_operand.vmem [shape: bf16[32,96], index: 3, kind: input, shape index: {}]   ;;  %s2483_s4 = inlined_call_operand.vmem [shape: f32[1,96], index: 4, kind: input, shape index: {}]   ;;  %s2484_s5 = inlined_call_operand.vmem [shape: bf16[32,32], index: 5, kind: input, shape index: {}]   ;;  %s2485_s6 = inlined_call_operand.vmem [shape: f32[1,32], index: 6, kind: input, shape index: {}]   ;;  %s2486_s7 = inlined_call_operand.vmem [shape: bf16[32,32], index: 7, kind: input, shape index: {}]   ;;  %s2487_s8 = inlined_call_operand.vmem [shape: f32[1,32], index: 8, kind: input, shape index: {}]   ;;  %s2488_s9 = inlined_call_operand.vmem [shape: f32[2,45,32], index: 9, kind: output, shape index: {0}]   ;;  %s2489_s10 = inlined_call_operand.vmem [shape: f32[2,45,45], index: 10, kind: output, shape index: {1}]  }
   0x1 LB: > { %s1669_s14 = sadd.s32 4294967295, %s2040_s13   ;;  %p1673_p0 = scmp.ge.s32.totalorder %s2040_s13, 1  ;;  %s2040_s13 = sphi %s2102_s13, %s21_s13  }
   0x2   : > { %p315_p1 = scmp.lt.s32.totalorder %s2040_s13, 3 }
   0x4   : > { %p316_p2 = pnand %p1673_p0, %p315_p1 }
   0x5   : > { %vm428_vm0 = vcmask (!%p316_p2), 1046528   ;;  %v2042_v0 = vmov (!%p316_p2), 0.0   ;;  %v1974_v1 = vld [vmem:[%s2480_s1 + $0x8] sm:$0x7f] (!%p316_p2)   ;;  %p358_p3 = scmp.lt.s32.totalorder (!%p316_p2), %s1669_s14, 1  ;;  %vm2043_vm1 = vmmov (!%p316_p2), 0  }
   0x6   : > { %319 = sbr.rel (%p316_p2) target bundleno = 2099 (0x833), region = 56  ;;  %1957 = vmatprep.subr.bf16.mxu1 (!%p316_p2), %v2042_v0  ;;  %1789 = vmatprep.subr.bf16.mxu0 (!%p316_p2), %v2042_v0  ;;  %v430_v2 = vsel (!%p316_p2), %vm428_vm0, %v1974_v1, 0  ;;  %v1975_v14 = vld [vmem:[%s2480_s1] sm:$0x7f] (!%p316_p2)   ;;  %vm389_vm2 = vsmask.f32 (!%p316_p2), 7424 }
   0x7   : > { %1795 = vmatprep.mubr.msk.bf16.mxu1 (!%p316_p2), %vm2043_vm1, %v2042_v0  ;;  %1791 = vmatprep.mubr.msk.bf16.mxu0 (!%p316_p2), %vm2043_vm1, %v2042_v0  ;;  %v1976_v21 = vld [vmem:[%s2480_s1 + $0x10] sm:$0x7f] (!%p316_p2)   ;;  %vm418_vm3 = vcmask (!%p316_p2), 113664   ;;  %v501_v23 = vsel (!%p316_p2), %vm428_vm0, %v1975_v14, 0  ;;  %v1978_v36 = vld [vmem:[%s2480_s1 + $0x20] sm:$0x7f] (!%p316_p2)  }
   0x8   : > { %1958 = vmatpush3.bf16.msra.mxu1 (!%p316_p2), %v430_v2  ;;  %1790 = vmatpush3.bf16.msra.mxu0 (!%p316_p2), %v430_v2  ;;  %v587_v28 = vsel (!%p316_p2), %vm428_vm0, %v1976_v21, 0  ;;  %vm843_vm4 = vsmask.f32 (!%p316_p2), 5376  ;;  %v775_v41 = vsel (!%p316_p2), %vm428_vm0, %v1978_v36, 0  ;;  %v1977_v42 = vld [vmem:[%s2480_s1 + $0x18] sm:$0x7f] (!%p316_p2)  }
   0x9   : > { %1803 = vmatprep.subr.bf16.mxu1 (!%p316_p2), %v2042_v0  ;;  %1817 = vmatprep.subr.bf16.mxu0 (!%p316_p2), %v2042_v0  ;;  %v682_v44 = vsel (!%p316_p2), %vm428_vm0, %v1977_v42, 0  ;;  %vm752_vm5 = vcmask (!%p316_p2), 1045504   ;;  %vm655_vm6 = vsmask.f32 (!%p316_p2), 6400  ;;  %v1979_v55 = vld [vmem:[%s2480_s1 + $0x28] sm:$0x7f] (!%p316_p2)  }
   0xa   : > { %v879_v61 = vsel (!%p316_p2), %vm428_vm0, %v1979_v55, 0  ;;  %vm989_vm7 = vcmask (!%p316_p2), 261120   ;;  %s2044_s21 = smov (!%p316_p2), 96   ;;  %vm1149_vm8 = vcmask (!%p316_p2), 367616   ;;  %vm1165_vm9 = vcmask (!%p316_p2), 364544   ;;  %s2045_s22 = smov (!%p316_p2), 64  }
   0xb   : > { %vm1505_vm10 = vcmask (!%p316_p2), 258048  }
   0xd   : > { %s2491_s14 = smov (!%p358_p3, %s1669_s14), 1 }
   0xe   : > { %s1959_s17 = smul.u32 56, %s2491_s14 }
   0xf   : > { %s1960_s27 = smul.u32 48, %s2491_s14 }
  0x10   : > { %s2128_s20 = scalar_lea.vmem %s2479_s0, %s1959_s17 }
  0x11   : > { %v376_v3 = vld [vmem:[%s2128_s20 + $0x10] sm:$0xff]  ;;  %v377_v4 = vld [vmem:[%s2128_s20 + $0x18] sm:$0xff]  ;;  %v378_v5 = vld [vmem:[%s2128_s20 + $0x20] sm:$0xff]  ;;  %s2366_s30 = scalar_lea.vmem %s2489_s10, %s1960_s27  ;;  %s2456_s23 = scalar_lea.vmem %s2488_s9, %s1960_s27 }
  0x12   : > { %v379_v6 = vld [vmem:[%s2128_s20 + $0x28] sm:$0xff]  ;;  %v2134_v7 = vpack.c.bf16 %v377_v4, %v376_v3  ;;  %v374_v8 = vld [vmem:[%s2128_s20] sm:$0xff]  ;;  %v380_v57 = vld [vmem:[%s2128_s20 + $0x30] sm:$0x3] }
  0x13   : > { %v375_v9 = vld [vmem:[%s2128_s20 + $0x8] sm:$0xff]  ;;  %v2138_v10 = vpack.c.bf16 %v379_v6, %v378_v5  ;;  %v750_v63 = vpack.c.bf16 %v380_v57, %v380_v57 }
  0x14   : > { %v2140_v11 = vpack.c.bf16 %v375_v9, %v374_v8  ;;  %v2143_v12 = vshll.u32 %v2134_v7, 16  ;;  %v2146_v13 = vshrl.u32 %v2134_v7, 16  ;;  %v568_v32 = vrot.slane %v2134_v7, 1 }
  0x15   : > { %v2152_v15 = vshll.u32 %v2138_v10, 16  ;;  %v2171_v26 = vshrl.u32 %v2138_v10, 16  ;;  %v570_v43 = vrot.slane %v2138_v10, 1  ;;  %v754_v47 = vrot.slane %v2134_v7, 2 }
  0x16   : > { %v2155_v16 = vshrl.u32 %v2140_v11, 16  ;;  %v2158_v17 = vshll.u32 %v2140_v11, 16  ;;  %v400_v18 = vrot.slane %v2143_v12, 1  ;;  %v847_v29 = vrot.slane %v2146_v13, 2 }
  0x17   : > { %v408_v19 = vrot.slane %v2152_v15, 1  ;;  %v848_v30 = vrot.slane %v2143_v12, 3  ;;  %v567_v31 = vrot.slane %v2140_v11, 1  ;;  %v851_v33 = vrot.slane %v2171_v26, 2 }
  0x18   : > { %v395_v20 = vrot.slane %v2158_v17, 1  ;;  %v404_v22 = vor.u32 %v2146_v13, %v400_v18  ;;  %v852_v34 = vrot.slane %v2152_v15, 3  ;;  %v571_v45 = vsel %vm428_vm0, %v568_v32, %v570_v43 }
  0x19   : > { %v412_v35 = vor.u32 %v2171_v26, %v408_v19  ;;  %v2191_v37 = vor.u32 %v848_v30, %v847_v29  ;;  %v569_v39 = vsel %vm428_vm0, %v567_v31, %v568_v32  ;;  %v753_v46 = vrot.slane %v2140_v11, 2 }
  0x1a   : > { %v396_v24 = vor.u32 %v395_v20, %v2155_v16  ;;  %v409_v25 = vsel %vm389_vm2, %v404_v22, %v408_v19  ;;  %v2193_v38 = vor.u32 %v852_v34, %v851_v33  ;;  %v656_v48 = vrot.slane %v2155_v16, 1 }
  0x1b   : > { %1796 = vmatmul.mubr.msk.bf16.vlgmr.msra.gmra.mrb[0].mxu1 %vm418_vm3, %v409_v25  ;;  %v657_v49 = vrot.slane %v2158_v17, 2  ;;  %v659_v50 = vrot.slane %v2146_v13, 1  ;;  %v660_v51 = vrot.slane %v2143_v12, 2  ;;  %v755_v52 = vsel %vm752_vm5, %v753_v46, %v754_v47 }
  0x1c   : > { %v401_v27 = vsel %vm389_vm2, %v396_v24, %v400_v18  ;;  %1804 = vmatpush3.bf16.msra.mxu1 %v501_v23  ;;  %1799 = vmatprep.mubr.msk.bf16.mxu1 %vm2043_vm1, %v2042_v0  ;;  %v2199_v40 = vsel %vm843_vm4, %v2191_v37, %v2193_v38  ;;  %v756_v56 = vrot.slane %v2138_v10, 2  ;;  %v663_v59 = vrot.slane %v2171_v26, 1 }
  0x1d   : > { %1792 = vmatmul.mubr.msk.bf16.vlgmr.msra.gmra.mrb[0].mxu0 %vm418_vm3, %v401_v27  ;;  %1831 = vmatprep.subr.bf16.mxu1 %v2042_v0  ;;  %v658_v53 = vor.u32 %v657_v49, %v656_v48  ;;  %v661_v54 = vor.u32 %v660_v51, %v659_v50  ;;  %v664_v60 = vrot.slane %v2152_v15, 2  ;;  %v758_v2 = vrot.slane %v750_v63, 2  ;;  %v1980_v15 = vld [vmem:[%s2482_s3] sm:$0xff]  }
  0x1e   : > { %1818 = vmatpush3.bf16.msra.mxu0 %v587_v28  ;;  %1819 = vmatprep.mubr.msk.bf16.mxu0 %vm2043_vm1, %v2042_v0  ;;  %v757_v62 = vsel %vm752_vm5, %v754_v47, %v756_v56  ;;  %v844_v5 = vrot.slane %v2155_v16, 2  ;;  %v845_v6 = vrot.slane %v2158_v17, 3  ;;  %v856_v9 = vshrl.u32 %v750_v63, 16  ;;  %v1981_v16 = vld [vmem:[%s2482_s3 + $0x8] sm:$0xff]  }
  0x1f   : > { %1845 = vmatprep.subr.bf16.mxu0 %v2042_v0  ;;  %v662_v58 = vsel %vm655_vm6, %v658_v53, %v661_v54  ;;  %v665_v1 = vor.u32 %v664_v60, %v663_v59  ;;  %v759_v4 = vsel %vm752_vm5, %v756_v56, %v758_v2 }
  0x21   : > { %v666_v3 = vsel %vm655_vm6, %v661_v54, %v665_v1 }
  0x23   : > { %1800 = vmatmul.mubr.msk.bf16.gmra.mrb[4].mxu1 %vm418_vm3, %v412_v35 }
  0x24   : > { %1805 = vmatprep.mubr.msk.bf16.mxu1 %vm2043_vm1, %v2042_v0 }
  0x25   : > { %1820 = vmatmul.mubr.msk.bf16.vlgmr.msra.gmra.mrb[4].mxu0 %vm418_vm3, %v569_v39 }
  0x26   : > { %1823 = vmatprep.mubr.msk.bf16.mxu0 %vm2043_vm1, %v2042_v0  ;;  %1846 = vmatpush3.bf16.msra.mxu0 %v775_v41 }
  0x27   : > { %1873 = vmatprep.subr.bf16.mxu0 %v2042_v0 }
  0x2b   : > { %1806 = vmatmul.mubr.msk.bf16.vlgmr.msra.gmra.mrb[8].mxu1 %vm418_vm3, %v2140_v11  ;;  %v858_v11 = vrot.slane %v856_v9, 2 }
  0x2c   : > { %1832 = vmatpush3.bf16.msra.mxu1 %v682_v44  ;;  %1809 = vmatprep.mubr.msk.bf16.mxu1 %vm2043_vm1, %v2042_v0 }
  0x2d   : > { %1824 = vmatmul.mubr.msk.bf16.gmra.mrb[8].mxu0 %vm418_vm3, %v571_v45  ;;  %1859 = vmatprep.subr.bf16.mxu1 %v2042_v0 }
  0x2e   : > { %1827 = vmatprep.mubr.msk.bf16.mxu0 %vm2043_vm1, %v2042_v0 }
  0x33   : > { %1810 = vmatmul.mubr.msk.bf16.gmra.mrb[12].mxu1 %vm418_vm3, %v2134_v7  ;;  %v846_v7 = vor.u32 %v845_v6, %v844_v5 }
  0x34   : > { %1813 = vmatprep.mubr.msk.bf16.mxu1 %vm2043_vm1, %v2042_v0 }
  0x35   : > { %1828 = vmatmul.mubr.msk.bf16.gmra.mrb[12].mxu0 %vm418_vm3, %v570_v43  ;;  %v850_v8 = vsel %vm843_vm4, %v846_v7, %v2191_v37 }
  0x36   : > { %1847 = vmatprep.mubr.msk.bf16.mxu0 %vm2043_vm1, %v2042_v0 }
  0x3b   : > { %1814 = vmatmul.mubr.msk.bf16.gmra.mrb[16].mxu1 %vm418_vm3, %v2138_v10  ;;  %v859_v10 = vshll.u32 %v750_v63, 16 }
  0x3c   : > { %1833 = vmatprep.mubr.msk.bf16.mxu1 %vm2043_vm1, %v2042_v0 }
  0x3d   : > { %1848 = vmatmul.mubr.msk.bf16.vlgmr.msra.gmra.mrb[16].mxu0 %vm418_vm3, %v755_v52  ;;  %v861_v12 = vrot.slane %v859_v10, 3 }
  0x3e   : > { %1851 = vmatprep.mubr.msk.bf16.mxu0 %vm2043_vm1, %v2042_v0  ;;  %1874 = vmatpush3.bf16.msra.mxu0 %v1980_v15 }
  0x3f   : > { %v862_v13 = vor.u32 %v861_v12, %v858_v11  ;;  %1875 = vmatprep.subr.bf16.mxu0 %v2042_v0 }
  0x41   : > { %v863_v14 = vsel %vm843_vm4, %v2193_v38, %v862_v13 }
  0x42   : > { %1876 = vmatpush3.bf16.msra.mxu0 %v1981_v16 }
  0x43   : > { %1834 = vmatmul.mubr.msk.bf16.vlgmr.msra.gmra.mrb[20].mxu1 %vm418_vm3, %v662_v58  ;;  %1907 = vmatprep.subr.bf16.mxu0 %v2042_v0 }
  0x44   : > { %1860 = vmatpush3.bf16.msra.mxu1 %v879_v61  ;;  %1837 = vmatprep.mubr.msk.bf16.mxu1 %vm2043_vm1, %v2042_v0 }
  0x45   : > { %1852 = vmatmul.mubr.msk.bf16.gmra.mrb[20].mxu0 %vm418_vm3, %v757_v62  ;;  %1889 = vmatprep.subr.bf16.mxu1 %v2042_v0 }
  0x46   : > { %1855 = vmatprep.mubr.msk.bf16.mxu0 %vm2043_vm1, %v2042_v0 }
  0x4b   : > { %1838 = vmatmul.mubr.msk.bf16.gmra.mrb[24].mxu1 %vm418_vm3, %v666_v3 }
  0x4c   : > { %1841 = vmatprep.mubr.msk.bf16.mxu1 %vm2043_vm1, %v2042_v0 }
  0x4d   : > { %1856 = vmatmul.mubr.msk.bf16.gmra.mrb[24].mxu0 %vm418_vm3, %v759_v4 }
  0x4e   : > { %1877 = vmatprep.mubr.msk.bf16.mxu0 %vm2043_vm1, %v2042_v0 }
  0x53   : > { %1842 = vmatmul.mubr.msk.bf16.gmra.mrb[28].mxu1 %vm418_vm3, %v665_v1 }
  0x54   : > { %1861 = vmatprep.mubr.msk.bf16.mxu1 %vm2043_vm1, %v2042_v0 }
  0x5b   : > { %1862 = vmatmul.mubr.msk.bf16.vlgmr.msra.gmra.mrb[32].mxu1 %vm418_vm3, %v850_v8 }
  0x5c   : > { %1865 = vmatprep.mubr.msk.bf16.mxu1 %vm2043_vm1, %v2042_v0 }
  0x63   : > { %1866 = vmatmul.mubr.msk.bf16.gmra.mrb[36].mxu1 %vm418_vm3, %v2199_v40 }
  0x64   : > { %1869 = vmatprep.mubr.msk.bf16.mxu1 %vm2043_vm1, %v2042_v0 }
  0x6b   : > { %1870 = vmatmul.mubr.msk.bf16.gmra.mrb[40].mxu1 %vm418_vm3, %v863_v14 }
  0x6c   : > { %1895 = vmatprep.mubr.msk.bf16.mxu1 %vm2043_vm1, %v2042_v0 }
  0xee   : > { %v474_v17 = vpop.f32.mrb[0].mxu1 }
  0xef   : > { %v1797_v18 = vpop.f32.mrb[1].mxu1 }
  0xf0   : > { %v477_v19 = vpop.f32.mrb[2].mxu1  ;;  %v466_v20 = vpop.f32.mrb[0].mxu0 }
  0xf1   : > { %v1798_v21 = vpop.f32.mrb[3].mxu1  ;;  %v1793_v22 = vpop.f32.mrb[1].mxu0 }
  0xf2   : > { %v469_v23 = vpop.f32.mrb[2].mxu0 }
  0xf3   : > { %v1794_v24 = vpop.f32.mrb[3].mxu0 }
  0xf6   : > { %v482_v25 = vpop.f32.mrb[4].mxu1 }
  0xf7   : > { %v1801_v26 = vpop.f32.mrb[5].mxu1 }
  0xf8   : > { %v485_v27 = vpop.f32.mrb[6].mxu1  ;;  %v623_v28 = vpop.f32.mrb[4].mxu0 }
  0xf9   : > { %v1802_v29 = vpop.f32.mrb[7].mxu1  ;;  %v1821_v30 = vpop.f32.mrb[5].mxu0 }
  0xfa   : > { %v626_v31 = vpop.f32.mrb[6].mxu0 }
  0xfb   : > { %v1822_v32 = vpop.f32.mrb[7].mxu0 }
  0xfe   : > { %v537_v33 = vpop.f32.mrb[8].mxu1 }
  0xff   : > { %v538_v34 = vadd.f32 %v537_v33, %v466_v20  ;;  %v1807_v35 = vpop.f32.mrb[9].mxu1 }
 0x100   : > { %v540_v36 = vpop.f32.mrb[10].mxu1  ;;  %v631_v37 = vpop.f32.mrb[8].mxu0 }
 0x101   : > { %v541_v38 = vadd.f32 %v540_v36, %v469_v23  ;;  %v646_v39 = vadd.f32 %v623_v28, %v538_v34  ;;  %v1808_v40 = vpop.f32.mrb[11].mxu1  ;;  %v1825_v41 = vpop.f32.mrb[9].mxu0 }
 0x102   : > { %v634_v42 = vpop.f32.mrb[10].mxu0 }
 0x103   : > { %v647_v43 = vadd.f32 %v626_v31, %v541_v38  ;;  %v1826_v44 = vpop.f32.mrb[11].mxu0 }
 0x106   : > { %v545_v45 = vpop.f32.mrb[12].mxu1 }
 0x107   : > { %v546_v46 = vadd.f32 %v545_v45, %v474_v17  ;;  %v1811_v47 = vpop.f32.mrb[13].mxu1 }
 0x108   : > { %v548_v48 = vpop.f32.mrb[14].mxu1  ;;  %v639_v49 = vpop.f32.mrb[12].mxu0 }
 0x109   : > { %v549_v50 = vadd.f32 %v548_v48, %v477_v19  ;;  %v648_v51 = vadd.f32 %v631_v37, %v546_v46  ;;  %v1812_v52 = vpop.f32.mrb[15].mxu1  ;;  %v1829_v53 = vpop.f32.mrb[13].mxu0 }
 0x10a   : > { %v642_v54 = vpop.f32.mrb[14].mxu0 }
 0x10b   : > { %v649_v55 = vadd.f32 %v634_v42, %v549_v50  ;;  %v1830_v56 = vpop.f32.mrb[15].mxu0 }
 0x10e   : > { %v553_v57 = vpop.f32.mrb[16].mxu1 }
 0x10f   : > { %v554_v58 = vadd.f32 %v553_v57, %v482_v25  ;;  %v1815_v59 = vpop.f32.mrb[17].mxu1 }
 0x110   : > { %v556_v60 = vpop.f32.mrb[18].mxu1  ;;  %v811_v61 = vpop.f32.mrb[16].mxu0 }
 0x111   : > { %v557_v62 = vadd.f32 %v556_v60, %v485_v27  ;;  %v650_v63 = vadd.f32 %v639_v49, %v554_v58  ;;  %v1816_v1 = vpop.f32.mrb[19].mxu1  ;;  %v1849_v2 = vpop.f32.mrb[17].mxu0 }
 0x112   : > { %v814_v3 = vpop.f32.mrb[18].mxu0 }
 0x113   : > { %v651_v4 = vadd.f32 %v642_v54, %v557_v62  ;;  %v1850_v5 = vpop.f32.mrb[19].mxu0 }
 0x116   : > { %v718_v6 = vpop.f32.mrb[20].mxu1 }
 0x117   : > { %v741_v7 = vadd.f32 %v718_v6, %v646_v39  ;;  %v1835_v8 = vpop.f32.mrb[21].mxu1  ;;  %v1711_v39 = vld [vmem:[%s2481_s2] ss:$0 sm:$0xff] }
 0x118   : > { %v721_v9 = vpop.f32.mrb[22].mxu1  ;;  %v819_v10 = vpop.f32.mrb[20].mxu0 }
 0x119   : > { %v742_v11 = vadd.f32 %v721_v9, %v647_v43  ;;  %v834_v12 = vadd.f32 %v811_v61, %v741_v7  ;;  %v1836_v13 = vpop.f32.mrb[23].mxu1  ;;  %v1853_v14 = vpop.f32.mrb[21].mxu0  ;;  %v1712_v9 = vld [vmem:[%s2483_s4] ss:$0 sm:$0xff] }
 0x11a   : > { %v822_v15 = vpop.f32.mrb[22].mxu0 }
 0x11b   : > { %v835_v16 = vadd.f32 %v814_v3, %v742_v11  ;;  %v1854_v17 = vpop.f32.mrb[23].mxu0 }
 0x11e   : > { %v726_v18 = vpop.f32.mrb[24].mxu1 }
 0x11f   : > { %v743_v19 = vadd.f32 %v726_v18, %v648_v51  ;;  %v1839_v20 = vpop.f32.mrb[25].mxu1 }
 0x120   : > { %v729_v21 = vpop.f32.mrb[26].mxu1  ;;  %v827_v22 = vpop.f32.mrb[24].mxu0 }
 0x121   : > { %v744_v23 = vadd.f32 %v729_v21, %v649_v55  ;;  %v836_v24 = vadd.f32 %v819_v10, %v743_v19  ;;  %v1840_v25 = vpop.f32.mrb[27].mxu1  ;;  %v1857_v26 = vpop.f32.mrb[25].mxu0 }
 0x122   : > { %v830_v27 = vpop.f32.mrb[26].mxu0 }
 0x123   : > { %v837_v28 = vadd.f32 %v822_v15, %v744_v23  ;;  %v1858_v29 = vpop.f32.mrb[27].mxu0 }
 0x126   : > { %v734_v30 = vpop.f32.mrb[28].mxu1 }
 0x127   : > { %v745_v31 = vadd.f32 %v734_v30, %v650_v63  ;;  %v1843_v32 = vpop.f32.mrb[29].mxu1 }
 0x128   : > { %v737_v33 = vpop.f32.mrb[30].mxu1 }
 0x129   : > { %v746_v34 = vadd.f32 %v737_v33, %v651_v4  ;;  %v838_v35 = vadd.f32 %v827_v22, %v745_v31  ;;  %v1844_v36 = vpop.f32.mrb[31].mxu1 }
 0x12b   : > { %v839_v37 = vadd.f32 %v830_v27, %v746_v34 }
 0x12e   : > { %v915_v38 = vpop.f32.mrb[32].mxu1 }
 0x12f   : > { %v938_v40 = vadd.f32 %v915_v38, %v834_v12  ;;  %v1863_v41 = vpop.f32.mrb[33].mxu1 }
 0x130   : > { %v918_v42 = vpop.f32.mrb[34].mxu1 }
 0x131   : > { %v951_v43 = vadd.f32 %v1711_v39, %v938_v40  ;;  %v939_v44 = vadd.f32 %v918_v42, %v835_v16  ;;  %v1864_v45 = vpop.f32.mrb[35].mxu1 }
 0x133   : > { %v952_v46 = vadd.f32 %v1711_v39, %v939_v44  ;;  %v957_v47 = vmax.f32 %v951_v43, 0.0 }
 0x135   : > { %v958_v48 = vmax.f32 %v952_v46, 0.0 }
 0x136   : > { %v923_v49 = vpop.f32.mrb[36].mxu1 }
 0x137   : > { %v967_v50 = vpack.c.bf16 %v958_v48, %v957_v47  ;;  %v940_v51 = vadd.f32 %v923_v49, %v836_v24  ;;  %v1867_v52 = vpop.f32.mrb[37].mxu1 }
 0x138   : > { %v926_v53 = vpop.f32.mrb[38].mxu1 }
 0x139   : > { %v953_v54 = vadd.f32 %v1711_v39, %v940_v51  ;;  %v941_v55 = vadd.f32 %v926_v53, %v837_v28  ;;  %v1868_v56 = vpop.f32.mrb[39].mxu1  ;;  %1878 = vmatmul.mubr.msk.bf16.vlgmr.msra.gmra.mrb[28].mxu0 %vm989_vm7, %v967_v50 }
 0x13a   : > { %1881 = vmatprep.mubr.msk.bf16.mxu0 %vm2043_vm1, %v2042_v0 }
 0x13b   : > { %v954_v57 = vadd.f32 %v1711_v39, %v941_v55  ;;  %v959_v58 = vmax.f32 %v953_v54, 0.0 }
 0x13d   : > { %v960_v59 = vmax.f32 %v954_v57, 0.0 }
 0x13e   : > { %v931_v60 = vpop.f32.mrb[40].mxu1 }
 0x13f   : > { %v968_v61 = vpack.c.bf16 %v960_v59, %v959_v58  ;;  %v942_v62 = vadd.f32 %v931_v60, %v838_v35  ;;  %v1871_v63 = vpop.f32.mrb[41].mxu1 }
 0x140   : > { %v934_v1 = vpop.f32.mrb[42].mxu1 }
 0x141   : > { %v955_v2 = vadd.f32 %v1711_v39, %v942_v62  ;;  %v943_v3 = vadd.f32 %v934_v1, %v839_v37  ;;  %v1872_v4 = vpop.f32.mrb[43].mxu1  ;;  %1882 = vmatmul.mubr.msk.bf16.gmra.mrb[32].mxu0 %vm989_vm7, %v968_v61 }
 0x142   : > { %1885 = vmatprep.mubr.msk.bf16.mxu0 %vm2043_vm1, %v2042_v0 }
 0x143   : > { %v956_v5 = vadd.f32 %v1711_v39, %v943_v3  ;;  %v961_v6 = vmax.f32 %v955_v2, 0.0 }
 0x145   : > { %v962_v7 = vmax.f32 %v956_v5, 0.0 }
 0x147   : > { %v969_v8 = vpack.c.bf16 %v962_v7, %v961_v6 }
 0x149   : > { %1886 = vmatmul.mubr.msk.bf16.gmra.mrb[36].mxu0 %vm989_vm7, %v969_v8 }
 0x14a   : > { %1913 = vmatprep.mubr.msk.bf16.mxu0 %vm2043_vm1, %v2042_v0 }
 0x20c   : > { %v1033_v10 = vpop.f32.mrb[28].mxu0 }
 0x20d   : > { %v1879_v11 = vpop.f32.mrb[29].mxu0  ;;  %v1034_v13 = vadd.f32 %v1712_v9, %v1033_v10 }
 0x20e   : > { %v1036_v12 = vpop.f32.mrb[30].mxu0 }
 0x20f   : > { %v1037_v14 = vadd.f32 %v1712_v9, %v1036_v12  ;;  %v1880_v15 = vpop.f32.mrb[31].mxu0 }
 0x211   : > { %v2311_v16 = vpack.c.bf16 %v1037_v14, %v1034_v13 }
 0x213   : > { %1062 = vrot.lane.b32.xlu0 %v2311_v16, %s2044_s21 }
 0x214   : > { %v1041_v17 = vpop.f32.mrb[32].mxu0 }
 0x215   : > { %v1883_v18 = vpop.f32.mrb[33].mxu0  ;;  %v1042_v20 = vadd.f32 %v1712_v9, %v1041_v17 }
 0x216   : > { %v1044_v19 = vpop.f32.mrb[34].mxu0 }
 0x217   : > { %v1045_v21 = vadd.f32 %v1712_v9, %v1044_v19  ;;  %v1884_v22 = vpop.f32.mrb[35].mxu0 }
 0x219   : > { %v2314_v23 = vpack.c.bf16 %v1045_v21, %v1042_v20 }
 0x21b   : > { %1064 = vrot.lane.b32.xlu0 %v2314_v23, %s2044_s21 }
 0x21c   : > { %v1049_v24 = vpop.f32.mrb[36].mxu0 }
 0x21d   : > { %v1887_v25 = vpop.f32.mrb[37].mxu0  ;;  %v1050_v27 = vadd.f32 %v1712_v9, %v1049_v24 }
 0x21e   : > { %v1052_v26 = vpop.f32.mrb[38].mxu0 }
 0x21f   : > { %v1053_v28 = vadd.f32 %v1712_v9, %v1052_v26  ;;  %v1888_v29 = vpop.f32.mrb[39].mxu0 }
 0x221   : > { %v2317_v30 = vpack.c.bf16 %v1053_v28, %v1050_v27 }
 0x223   : > { %1066 = vrot.lane.b32.xlu1 %v2317_v30, %s2044_s21 }
 0x285   : > { %v1063_v31 = vpop.permute.xlu0 %1062 }
 0x286   : > { %v1078_v32 = vsel %vm989_vm7, %v1063_v31, 0  ;;  %v1982_v31 = vld [vmem:[%s2484_s5] sm:$0xff]  }
 0x287   : > { %1890 = vmatpush3.bf16.xpose.msra.mxu1 %v1078_v32 }
 0x288   : > { %1891 = vmatprep.subr.bf16.mxu1 %v2042_v0 }
 0x28d   : > { %v1065_v33 = vpop.permute.xlu0 %1064 }
 0x28e   : > { %v1081_v34 = vsel %vm989_vm7, %v1065_v33, 0 }
 0x28f   : > { %1892 = vmatpush3.bf16.xpose.msra.mxu1 %v1081_v34 }
 0x290   : > { %1893 = vmatprep.subr.bf16.mxu1 %v2042_v0 }
 0x295   : > { %v1067_v35 = vpop.permute.xlu1 %1066 }
 0x296   : > { %v1084_v36 = vsel %vm989_vm7, %v1067_v35, 0 }
 0x297   : > { %1894 = vmatpush3.bf16.xpose.msra.mxu1 %v1084_v36 }
 0x298   : > { %1925 = vmatprep.subr.bf16.mxu1 %v2042_v0 }
 0x29e   : > { %1896 = vmatmul.mubr.msk.bf16.vlgmr.msra.gmra.mrb[44].mxu1 %vm989_vm7, %v2311_v16 }
 0x29f   : > { %1899 = vmatprep.mubr.msk.bf16.mxu1 %vm2043_vm1, %v2042_v0  ;;  %1926 = vmatpush3.bf16.msra.mxu1 %v1982_v31 }
 0x2a0   : > { %1927 = vmatprep.subr.bf16.mxu1 %v2042_v0 }
 0x2a6   : > { %1900 = vmatmul.mubr.msk.bf16.gmra.mrb[48].mxu1 %vm989_vm7, %v2314_v23 }
 0x2a7   : > { %1903 = vmatprep.mubr.msk.bf16.mxu1 %vm2043_vm1, %v2042_v0 }
 0x2ae   : > { %1904 = vmatmul.mubr.msk.bf16.gmra.mrb[52].mxu1 %vm989_vm7, %v2317_v30 }
 0x2af   : > { %1929 = vmatprep.mubr.msk.bf16.mxu1 %vm2043_vm1, %v2042_v0 }
 0x371   : > { %v1120_v37 = vpop.f32.mrb[44].mxu1 }
 0x372   : > { %v1143_v38 = vmul.f32 0.17677669, %v1120_v37  ;;  %v1897_v39 = vpop.f32.mrb[45].mxu1 }
 0x373   : > { %v1123_v40 = vpop.f32.mrb[46].mxu1 }
 0x374   : > { %v1144_v41 = vmul.f32 0.17677669, %v1123_v40  ;;  %v1898_v42 = vpop.f32.mrb[47].mxu1  ;;  %v1150_v43 = vsel %vm1149_vm8, %v1143_v38, -inf }
 0x375   : > { %1151 = vmax.xlane.f32.xlu1 %v1150_v43 }
 0x376   : > { %v1153_v44 = vsel %vm1149_vm8, %v1144_v41, -inf }
 0x377   : > { %1154 = vmax.xlane.f32.xlu0 %v1153_v44 }
 0x379   : > { %v1128_v45 = vpop.f32.mrb[48].mxu1 }
 0x37a   : > { %v1145_v46 = vmul.f32 0.17677669, %v1128_v45  ;;  %v1901_v47 = vpop.f32.mrb[49].mxu1 }
 0x37b   : > { %v1131_v48 = vpop.f32.mrb[50].mxu1  ;;  %v2046_v47 = vmov 65535  }
 0x37c   : > { %v1146_v49 = vmul.f32 0.17677669, %v1131_v48  ;;  %v1902_v50 = vpop.f32.mrb[51].mxu1  ;;  %v1156_v51 = vsel %vm1149_vm8, %v1145_v46, -inf  ;;  %v1238_v48 = vsel %vm752_vm5, 4294967295, %v2046_v47 }
 0x37d   : > { %1157 = vmax.xlane.f32.xlu0 %v1156_v51  ;;  %v1239_v50 = vsel %vm428_vm0, %v1238_v48, 0 }
 0x37e   : > { %v1159_v52 = vsel %vm1149_vm8, %v1146_v49, -inf }
 0x37f   : > { %1160 = vmax.xlane.f32.xlu1 %v1159_v52 }
 0x381   : > { %v1136_v53 = vpop.f32.mrb[52].mxu1 }
 0x382   : > { %v1147_v54 = vmul.f32 0.17677669, %v1136_v53  ;;  %v1905_v55 = vpop.f32.mrb[53].mxu1 }
 0x383   : > { %v1139_v56 = vpop.f32.mrb[54].mxu1 }
 0x384   : > { %v1148_v57 = vmul.f32 0.17677669, %v1139_v56  ;;  %v1906_v58 = vpop.f32.mrb[55].mxu1  ;;  %v1162_v59 = vsel %vm1149_vm8, %v1147_v54, -inf }
 0x385   : > { %1163 = vmax.xlane.f32.xlu0 %v1162_v59  ;;  %v1984_v58 = vld [vmem:[%s2486_s7] sm:$0xff]  }
 0x386   : > { %v1166_v60 = vsel %vm1165_vm9, %v1148_v57, -inf }
 0x387   : > { %1167 = vmax.xlane.f32.xlu1 %v1166_v60 }
 0x402   : > { %v1152_v61 = vpop.xlane.xlu1 %1151 }
 0x403   : > { %v1169_v62 = vsub.f32 %v1143_v38, %v1152_v61 }
 0x404   : > { %v1155_v63 = vpop.xlane.xlu0 %1154 }
 0x405   : > { %v1175_v1 = vmul.f32 1.442695, %v1169_v62  ;;  %v1170_v2 = vsub.f32 %v1144_v41, %v1155_v63 }
 0x407   : > { %1986 = vpow2.f32 %v1175_v1  ;;  %v1177_v3 = vmul.f32 1.442695, %v1170_v2 }
 0x409   : > { %1988 = vpow2.f32 %v1177_v3 }
 0x40a   : > { %v1158_v4 = vpop.xlane.xlu0 %1157 }
 0x40b   : > { %v1171_v5 = vsub.f32 %v1145_v46, %v1158_v4 }
 0x40c   : > { %v1161_v6 = vpop.xlane.xlu1 %1160 }
 0x40d   : > { %v1179_v7 = vmul.f32 1.442695, %v1171_v5  ;;  %v1172_v8 = vsub.f32 %v1146_v49, %v1161_v6 }
 0x40f   : > { %1990 = vpow2.f32 %v1179_v7  ;;  %v1181_v9 = vmul.f32 1.442695, %v1172_v8 }
 0x411   : > { %v1987_v10 = vpop.eup %1986  ;;  %1992 = vpow2.f32 %v1181_v9 }
 0x412   : > { %v1164_v11 = vpop.xlane.xlu0 %1163  ;;  %v1187_v12 = vsel %vm1149_vm8, %v1987_v10, 0.0 }
 0x413   : > { %v1989_v13 = vpop.eup %1988  ;;  %v1173_v14 = vsub.f32 %v1147_v54, %v1164_v11  ;;  %1188 = vadd.xlane.f32.xlu0 %v1187_v12  ;;  %v1985_v11 = vld [vmem:[%s2486_s7 + $0x8] sm:$0xff]   ;;  %v1724_v12 = vld [vmem:[%s2485_s6] ss:$0 sm:$0xff] }
 0x414   : > { %v1190_v15 = vsel %vm1149_vm8, %v1989_v13, 0.0  ;;  %v1168_v25 = vpop.xlane.xlu1 %1167 }
 0x415   : > { %v1183_v17 = vmul.f32 1.442695, %v1173_v14  ;;  %1191 = vadd.xlane.f32.xlu1 %v1190_v15  ;;  %v1174_v26 = vsub.f32 %v1148_v57, %v1168_v25 }
 0x417   : > { %1994 = vpow2.f32 %v1183_v17  ;;  %v1185_v27 = vmul.f32 1.442695, %v1174_v26 }
 0x419   : > { %v1991_v18 = vpop.eup %1990  ;;  %1996 = vpow2.f32 %v1185_v27 }
 0x41a   : > { %v1193_v19 = vsel %vm1149_vm8, %v1991_v18, 0.0 }
 0x41b   : > { %v1993_v20 = vpop.eup %1992  ;;  %1194 = vadd.xlane.f32.xlu0 %v1193_v19 }
 0x41c   : > { %v1196_v21 = vsel %vm1149_vm8, %v1993_v20, 0.0 }
 0x41d   : > { %1197 = vadd.xlane.f32.xlu1 %v1196_v21 }
 0x421   : > { %v1995_v22 = vpop.eup %1994 }
 0x422   : > { %v1199_v24 = vsel %vm1149_vm8, %v1995_v22, 0.0 }
 0x423   : > { %1200 = vadd.xlane.f32.xlu0 %v1199_v24  ;;  %v1997_v28 = vpop.eup %1996 }
 0x424   : > { %v1202_v29 = vsel %vm1165_vm9, %v1997_v28, 0.0 }
 0x42e   : > { %1222 = vrot.lane.b32.xlu1 %v2314_v23, %s2045_s22 }
 0x439   : > { %1220 = vrot.lane.b32.xlu0 %v2311_v16, %s2045_s22  ;;  %v1983_v16 = vld [vmem:[%s2484_s5 + $0x8] sm:$0xff]  }
 0x43a   : > { %1928 = vmatpush3.bf16.msra.mxu1 %v1983_v16 }
 0x452   : > { %1203 = vadd.xlane.f32.xlu1 %v1202_v29 }
 0x463   : > { %1224 = vrot.lane.b32.xlu1 %v2317_v30, %s2045_s22 }
 0x4a0   : > { %v1189_v23 = vpop.xlane.xlu0 %1188 }
 0x4a1   : > { %1998 = vrcp.f32 %v1189_v23 }
 0x4a2   : > { %v1192_v32 = vpop.xlane.xlu1 %1191 }
 0x4a3   : > { %2000 = vrcp.f32 %v1192_v32 }
 0x4a8   : > { %v1195_v33 = vpop.xlane.xlu0 %1194 }
 0x4a9   : > { %2002 = vrcp.f32 %v1195_v33 }
 0x4aa   : > { %v1198_v30 = vpop.xlane.xlu1 %1197 }
 0x4ab   : > { %v1999_v34 = vpop.eup %1998  ;;  %2004 = vrcp.f32 %v1198_v30 }
 0x4ac   : > { %v1206_v35 = vmul.f32 %v1999_v34, %v1987_v10  ;;  %v1730_v34 = vld [vmem:[%s2487_s8] ss:$0 sm:$0xff] }
 0x4ad   : > { %v2001_v36 = vpop.eup %2000 }
 0x4ae   : > { %1575 = vst.msk [vmem:[%s2366_s30] sm:$0xff] %vm1149_vm8, %v1206_v35  ;;  %v1208_v37 = vmul.f32 %v2001_v36, %v1989_v13  ;;  %v1223_v44 = vpop.permute.xlu1 %1222 }
 0x4b0   : > { %1576 = vst.msk [vmem:[%s2366_s30 + $0x8] sm:$0xff] %vm1149_vm8, %v1208_v37  ;;  %v1201_v38 = vpop.xlane.xlu0 %1200  ;;  %v1217_v53 = vpack.c.bf16 %v1208_v37, %v1206_v35 }
 0x4b1   : > { %2006 = vrcp.f32 %v1201_v38 }
 0x4b3   : > { %v2003_v39 = vpop.eup %2002 }
 0x4b4   : > { %v1221_v40 = vpop.permute.xlu0 %1220  ;;  %v1210_v41 = vmul.f32 %v2003_v39, %v1991_v18 }
 0x4b5   : > { %v2005_v42 = vpop.eup %2004  ;;  %1908 = vmatpush3.bf16.msra.mxu0 %v1221_v40 }
 0x4b6   : > { %1909 = vmatprep.subr.bf16.mxu0 %v2042_v0  ;;  %v1212_v43 = vmul.f32 %v2005_v42, %v1993_v20  ;;  %1577 = vst.msk [vmem:[%s2366_s30 + $0x10] sm:$0xff] %vm1149_vm8, %v1210_v41 }
 0x4b8   : > { %1578 = vst.msk [vmem:[%s2366_s30 + $0x18] sm:$0xff] %vm1149_vm8, %v1212_v43  ;;  %v1218_v56 = vpack.c.bf16 %v1212_v43, %v1210_v41 }
 0x4b9   : > { %1910 = vmatpush3.bf16.msra.mxu0 %v1223_v44 }
 0x4ba   : > { %1911 = vmatprep.subr.bf16.mxu0 %v2042_v0 }
 0x4bb   : > { %v2007_v45 = vpop.eup %2006 }
 0x4bc   : > { %v1214_v46 = vmul.f32 %v2007_v45, %v1995_v22 }
 0x4be   : > { %1579 = vst.msk [vmem:[%s2366_s30 + $0x20] sm:$0xff] %vm1149_vm8, %v1214_v46 }
 0x4df   : > { %v1204_v49 = vpop.xlane.xlu1 %1203 }
 0x4e0   : > { %2008 = vrcp.f32 %v1204_v49 }
 0x4e3   : > { %v1225_v51 = vpop.permute.xlu1 %1224 }
 0x4e4   : > { %v1241_v52 = vand.u32 %v1239_v50, %v1225_v51 }
 0x4e6   : > { %1912 = vmatpush3.bf16.msra.mxu0 %v1241_v52 }
 0x4e7   : > { %1941 = vmatprep.subr.bf16.mxu0 %v2042_v0 }
 0x4e9   : > { %1914 = vmatmul.mubr.msk.bf16.vlgmr.msra.gmra.mrb[40].mxu0 %vm1149_vm8, %v1217_v53 }
 0x4ea   : > { %v2009_v54 = vpop.eup %2008  ;;  %1917 = vmatprep.mubr.msk.bf16.mxu0 %vm2043_vm1, %v2042_v0  ;;  %1942 = vmatpush3.bf16.msra.mxu0 %v1984_v58 }
 0x4eb   : > { %v1216_v55 = vmul.f32 %v2009_v54, %v1997_v28  ;;  %1943 = vmatprep.subr.bf16.mxu0 %v2042_v0 }
 0x4ed   : > { %1580 = vst.msk [vmem:[%s2366_s30 + $0x28] sm:$0x1f] %vm1165_vm9, %v1216_v55  ;;  %v1219_v57 = vpack.c.bf16 %v1216_v55, %v1214_v46 }
 0x4ee   : > { %1944 = vmatpush3.bf16.msra.mxu0 %v1985_v11 }
 0x4f1   : > { %1918 = vmatmul.mubr.msk.bf16.gmra.mrb[44].mxu0 %vm1149_vm8, %v1218_v56 }
 0x4f2   : > { %1921 = vmatprep.mubr.msk.bf16.mxu0 %vm2043_vm1, %v2042_v0 }
 0x4f9   : > { %1922 = vmatmul.mubr.msk.bf16.gmra.mrb[48].mxu0 %vm1149_vm8, %v1219_v57 }
 0x4fa   : > { %1945 = vmatprep.mubr.msk.bf16.mxu0 %vm2043_vm1, %v2042_v0 }
 0x5bc   : > { %v1277_v59 = vpop.f32.mrb[40].mxu0 }
 0x5bd   : > { %v1915_v60 = vpop.f32.mrb[41].mxu0 }
 0x5be   : > { %v1280_v61 = vpop.f32.mrb[42].mxu0 }
 0x5bf   : > { %v1304_v62 = vpack.c.bf16 %v1280_v61, %v1277_v59  ;;  %v1916_v63 = vpop.f32.mrb[43].mxu0 }
 0x5c1   : > { %1930 = vmatmul.mubr.msk.bf16.vlgmr.msra.gmra.mrb[56].mxu1 %vm989_vm7, %v1304_v62 }
 0x5c2   : > { %1933 = vmatprep.mubr.msk.bf16.mxu1 %vm2043_vm1, %v2042_v0 }
 0x5c4   : > { %v1285_v1 = vpop.f32.mrb[44].mxu0 }
 0x5c5   : > { %v1919_v2 = vpop.f32.mrb[45].mxu0 }
 0x5c6   : > { %v1288_v3 = vpop.f32.mrb[46].mxu0 }
 0x5c7   : > { %v1305_v4 = vpack.c.bf16 %v1288_v3, %v1285_v1  ;;  %v1920_v5 = vpop.f32.mrb[47].mxu0 }
 0x5c9   : > { %1934 = vmatmul.mubr.msk.bf16.gmra.mrb[60].mxu1 %vm989_vm7, %v1305_v4 }
 0x5ca   : > { %1937 = vmatprep.mubr.msk.bf16.mxu1 %vm2043_vm1, %v2042_v0 }
 0x5cc   : > { %v1293_v6 = vpop.f32.mrb[48].mxu0 }
 0x5cd   : > { %v1923_v7 = vpop.f32.mrb[49].mxu0 }
 0x5ce   : > { %v1296_v8 = vpop.f32.mrb[50].mxu0 }
 0x5cf   : > { %v1306_v9 = vpack.c.bf16 %v1296_v8, %v1293_v6  ;;  %v1924_v10 = vpop.f32.mrb[51].mxu0 }
 0x5d1   : > { %1938 = vmatmul.mubr.msk.bf16.gmra.mrb[64].mxu1 %vm989_vm7, %v1306_v9 }
 0x694   : > { %v1369_v13 = vpop.f32.mrb[56].mxu1 }
 0x695   : > { %v1931_v14 = vpop.f32.mrb[57].mxu1  ;;  %v1370_v17 = vadd.f32 %v1724_v12, %v1369_v13 }
 0x696   : > { %v1372_v15 = vpop.f32.mrb[58].mxu1 }
 0x697   : > { %v1373_v18 = vadd.f32 %v1724_v12, %v1372_v15  ;;  %v1932_v19 = vpop.f32.mrb[59].mxu1 }
 0x699   : > { %v1396_v20 = vpack.c.bf16 %v1373_v18, %v1370_v17 }
 0x69b   : > { %1946 = vmatmul.mubr.msk.bf16.vlgmr.msra.gmra.mrb[52].mxu0 %vm989_vm7, %v1396_v20 }
 0x69c   : > { %v1377_v21 = vpop.f32.mrb[60].mxu1  ;;  %1949 = vmatprep.mubr.msk.bf16.mxu0 %vm2043_vm1, %v2042_v0 }
 0x69d   : > { %v1935_v22 = vpop.f32.mrb[61].mxu1  ;;  %v1378_v25 = vadd.f32 %v1724_v12, %v1377_v21 }
 0x69e   : > { %v1380_v24 = vpop.f32.mrb[62].mxu1 }
 0x69f   : > { %v1381_v26 = vadd.f32 %v1724_v12, %v1380_v24  ;;  %v1936_v27 = vpop.f32.mrb[63].mxu1 }
 0x6a1   : > { %v1397_v28 = vpack.c.bf16 %v1381_v26, %v1378_v25 }
 0x6a3   : > { %1950 = vmatmul.mubr.msk.bf16.gmra.mrb[56].mxu0 %vm989_vm7, %v1397_v28 }
 0x6a4   : > { %v1385_v29 = vpop.f32.mrb[64].mxu1  ;;  %1953 = vmatprep.mubr.msk.bf16.mxu0 %vm2043_vm1, %v2042_v0 }
 0x6a5   : > { %v1939_v31 = vpop.f32.mrb[65].mxu1  ;;  %v1386_v23 = vadd.f32 %v1724_v12, %v1385_v29 }
 0x6a6   : > { %v1388_v16 = vpop.f32.mrb[66].mxu1 }
 0x6a7   : > { %v1389_v32 = vadd.f32 %v1724_v12, %v1388_v16  ;;  %v1940_v33 = vpop.f32.mrb[67].mxu1 }
 0x6a9   : > { %v1398_v30 = vpack.c.bf16 %v1389_v32, %v1386_v23 }
 0x6ab   : > { %1954 = vmatmul.mubr.msk.bf16.gmra.mrb[60].mxu0 %vm989_vm7, %v1398_v30 }
 0x76e   : > { %v1461_v35 = vpop.f32.mrb[52].mxu0 }
 0x76f   : > { %v2421_v36 = vadd.f32 %v1730_v34, %v1461_v35  ;;  %v1947_v37 = vpop.f32.mrb[53].mxu0 }
 0x770   : > { %v1464_v38 = vpop.f32.mrb[54].mxu0 }
 0x771   : > { %v2423_v39 = vadd.f32 %v1730_v34, %v1464_v38  ;;  %v1948_v0 = vpop.f32.mrb[55].mxu0  ;;  %v1484_v40 = vmul.f32 %v2421_v36, %v2421_v36 }
 0x773   : > { %v1490_v41 = vsel %vm989_vm7, %v1484_v40, 0.0  ;;  %v1485_v42 = vmul.f32 %v2423_v39, %v2423_v39 }
 0x774   : > { %1491 = vadd.xlane.f32.xlu0 %v1490_v41 }
 0x775   : > { %v1493_v43 = vsel %vm989_vm7, %v1485_v42, 0.0 }
 0x776   : > { %1494 = vadd.xlane.f32.xlu1 %v1493_v43  ;;  %v1469_v44 = vpop.f32.mrb[56].mxu0 }
 0x777   : > { %v2431_v45 = vadd.f32 %v1730_v34, %v1469_v44  ;;  %v1951_v46 = vpop.f32.mrb[57].mxu0 }
 0x778   : > { %v1472_v47 = vpop.f32.mrb[58].mxu0 }
 0x779   : > { %v2433_v48 = vadd.f32 %v1730_v34, %v1472_v47  ;;  %v1952_v49 = vpop.f32.mrb[59].mxu0  ;;  %v1486_v50 = vmul.f32 %v2431_v45, %v2431_v45 }
 0x77b   : > { %v1496_v51 = vsel %vm989_vm7, %v1486_v50, 0.0  ;;  %v1487_v52 = vmul.f32 %v2433_v48, %v2433_v48 }
 0x77c   : > { %1497 = vadd.xlane.f32.xlu0 %v1496_v51 }
 0x77d   : > { %v1499_v56 = vsel %vm989_vm7, %v1487_v52, 0.0 }
 0x77e   : > { %v1477_v53 = vpop.f32.mrb[60].mxu0 }
 0x77f   : > { %v2440_v54 = vadd.f32 %v1730_v34, %v1477_v53  ;;  %v1955_v55 = vpop.f32.mrb[61].mxu0 }
 0x780   : > { %1500 = vadd.xlane.f32.xlu0 %v1499_v56  ;;  %v1480_v57 = vpop.f32.mrb[62].mxu0 }
 0x781   : > { %v2443_v58 = vadd.f32 %v1730_v34, %v1480_v57  ;;  %v1956_v59 = vpop.f32.mrb[63].mxu0  ;;  %v1488_v60 = vmul.f32 %v2440_v54, %v2440_v54 }
 0x783   : > { %v1502_v61 = vsel %vm989_vm7, %v1488_v60, 0.0  ;;  %v1489_v62 = vmul.f32 %v2443_v58, %v2443_v58 }
 0x784   : > { %1503 = vadd.xlane.f32.xlu1 %v1502_v61 }
 0x785   : > { %v1506_v63 = vsel %vm1505_vm10, %v1489_v62, 0.0 }
 0x786   : > { %1507 = vadd.xlane.f32.xlu0 %v1506_v63 }
 0x801   : > { %v1492_v1 = vpop.xlane.xlu0 %1491 }
 0x802   : > { %2010 = vrsqrt.f32 %v1492_v1  ;;  %vm1511_vm11 = vcmp.eq.f32.partialorder %v1492_v1, inf  ;;  %v1514_v8 = vand.u32 2147483648, %v1492_v1  ;;  %vm1513_vm12 = vcmp.eq.f32.partialorder %v1492_v1, 0.0 }
 0x803   : > { %v1495_v2 = vpop.xlane.xlu1 %1494 }
 0x804   : > { %2012 = vrsqrt.f32 %v1495_v2  ;;  %vm1518_vm13 = vcmp.eq.f32.partialorder %v1495_v2, inf  ;;  %v1521_v12 = vand.u32 2147483648, %v1495_v2  ;;  %vm1520_vm14 = vcmp.eq.f32.partialorder %v1495_v2, 0.0 }
 0x809   : > { %v1498_v3 = vpop.xlane.xlu0 %1497 }
 0x80a   : > { %2014 = vrsqrt.f32 %v1498_v3  ;;  %vm1525_vm15 = vcmp.eq.f32.partialorder %v1498_v3, inf  ;;  %v1528_v22 = vand.u32 2147483648, %v1498_v3  ;;  %vm1527_vm0 = vcmp.eq.f32.partialorder %v1498_v3, 0.0 }
 0x80c   : > { %v2011_v4 = vpop.eup %2010 }
 0x80d   : > { %v1510_v5 = vmul.f32 %v2011_v4, %v1492_v1  ;;  %v1501_v6 = vpop.xlane.xlu0 %1500 }
 0x80e   : > { %v2013_v7 = vpop.eup %2012  ;;  %2016 = vrsqrt.f32 %v1501_v6  ;;  %vm1532_vm1 = vcmp.eq.f32.partialorder %v1501_v6, inf  ;;  %v1535_v29 = vand.u32 2147483648, %v1501_v6  ;;  %vm1534_vm2 = vcmp.eq.f32.partialorder %v1501_v6, 0.0 }
 0x80f   : > { %v1512_v9 = vsel %vm1511_vm11, %v1492_v1, %v1510_v5  ;;  %v1517_v10 = vmul.f32 %v2013_v7, %v1495_v2 }
 0x810   : > { %v1515_v11 = vsel %vm1513_vm12, %v1514_v8, %v1512_v9 }
 0x811   : > { %v1551_v13 = vmax.f32 %v1515_v11, 1e-12  ;;  %v1519_v14 = vsel %vm1518_vm13, %v1495_v2, %v1517_v10  ;;  %v1504_v15 = vpop.xlane.xlu1 %1503 }
 0x812   : > { %v1522_v17 = vsel %vm1520_vm14, %v1521_v12, %v1519_v14  ;;  %2018 = vrsqrt.f32 %v1504_v15  ;;  %vm1539_vm3 = vcmp.eq.f32.partialorder %v1504_v15, inf  ;;  %v1542_v37 = vand.u32 2147483648, %v1504_v15 }
 0x813   : > { %2020 = vrcp.f32 %v1551_v13  ;;  %v1552_v18 = vmax.f32 %v1522_v17, 1e-12  ;;  %v1508_v19 = vpop.xlane.xlu0 %1507  ;;  %vm1541_vm4 = vcmp.eq.f32.partialorder %v1504_v15, 0.0 }
 0x814   : > { %v2015_v20 = vpop.eup %2014  ;;  %2022 = vrsqrt.f32 %v1508_v19  ;;  %vm1546_vm5 = vcmp.eq.f32.partialorder %v1508_v19, inf  ;;  %v1549_v43 = vand.u32 2147483648, %v1508_v19  ;;  %vm1548_vm6 = vcmp.eq.f32.partialorder %v1508_v19, 0.0 }
 0x815   : > { %2024 = vrcp.f32 %v1552_v18  ;;  %v1524_v21 = vmul.f32 %v2015_v20, %v1498_v3 }
 0x817   : > { %v1526_v24 = vsel %vm1525_vm15, %v1498_v3, %v1524_v21 }
 0x818   : > { %v2017_v25 = vpop.eup %2016  ;;  %v1529_v26 = vsel %vm1527_vm0, %v1528_v22, %v1526_v24 }
 0x819   : > { %v1553_v27 = vmax.f32 %v1529_v26, 1e-12  ;;  %v1531_v28 = vmul.f32 %v2017_v25, %v1501_v6 }
 0x81b   : > { %2026 = vrcp.f32 %v1553_v27  ;;  %v1533_v31 = vsel %vm1532_vm1, %v1501_v6, %v1531_v28 }
 0x81c   : > { %v2019_v16 = vpop.eup %2018  ;;  %v1536_v23 = vsel %vm1534_vm2, %v1535_v29, %v1533_v31 }
 0x81d   : > { %v2021_v32 = vpop.eup %2020  ;;  %v1554_v33 = vmax.f32 %v1536_v23, 1e-12  ;;  %v1538_v30 = vmul.f32 %v2019_v16, %v1504_v15 }
 0x81e   : > { %v2023_v34 = vpop.eup %2022  ;;  %v1558_v35 = vmul.f32 %v2021_v32, %v2421_v36 }
 0x81f   : > { %v2025_v38 = vpop.eup %2024  ;;  %2028 = vrcp.f32 %v1554_v33  ;;  %v1540_v0 = vsel %vm1539_vm3, %v1504_v15, %v1538_v30  ;;  %v1545_v40 = vmul.f32 %v2023_v34, %v1508_v19 }
 0x820   : > { %1569 = vst.msk [vmem:[%s2456_s23] sm:$0xff] %vm989_vm7, %v1558_v35  ;;  %v1560_v41 = vmul.f32 %v2025_v38, %v2423_v39  ;;  %v1543_v42 = vsel %vm1541_vm4, %v1542_v37, %v1540_v0 }
 0x821   : > { %v1555_v44 = vmax.f32 %v1543_v42, 1e-12  ;;  %v1547_v46 = vsel %vm1546_vm5, %v1508_v19, %v1545_v40 }
 0x822   : > { %1570 = vst.msk [vmem:[%s2456_s23 + $0x8] sm:$0xff] %vm989_vm7, %v1560_v41  ;;  %v1550_v36 = vsel %vm1548_vm6, %v1549_v43, %v1547_v46 }
 0x823   : > { %2030 = vrcp.f32 %v1555_v44  ;;  %v1556_v47 = vmax.f32 %v1550_v36, 1e-12 }
 0x825   : > { %v2027_v49 = vpop.eup %2026  ;;  %2032 = vrcp.f32 %v1556_v47 }
 0x826   : > { %v1562_v50 = vmul.f32 %v2027_v49, %v2431_v45 }
 0x828   : > { %1571 = vst.msk [vmem:[%s2456_s23 + $0x10] sm:$0xff] %vm989_vm7, %v1562_v50 }
 0x829   : > { %v2029_v39 = vpop.eup %2028 }
 0x82a   : > { %v1564_v51 = vmul.f32 %v2029_v39, %v2433_v48 }
 0x82c   : > { %1572 = vst.msk [vmem:[%s2456_s23 + $0x18] sm:$0xff] %vm989_vm7, %v1564_v51 }
 0x82d   : > { %v2031_v52 = vpop.eup %2030 }
 0x82e   : > { %v1566_v53 = vmul.f32 %v2031_v52, %v2440_v54 }
 0x82f   : > { %v2033_v55 = vpop.eup %2032 }
 0x830   : > { %1573 = vst.msk [vmem:[%s2456_s23 + $0x20] sm:$0xff] %vm989_vm7, %v1566_v53  ;;  %v1568_v56 = vmul.f32 %v2033_v55, %v2443_v58 }
 0x832   : > { %1574 = vst.msk [vmem:[%s2456_s23 + $0x28] sm:$0x1f] %vm1505_vm10, %v1568_v56 }
 0x833 PF: > { %s21_s13 = sadd.s32 1, %s2040_s13  }
 0x834   : > { %p18_p4 = scmp.ge.s32.totalorder %s21_s13, 4  }
 0x836   :  { %20 = sbr.rel (!%p18_p4) target bundleno = 1 (0x1), region = 103 }

// kernel: mix_bend_forward.3
= control target key start
LH: loop header
LB: loop body
LE: loop exit
PB: predicated region body
PF: predicated region fallthrough
CT: control target
= control target key end

     0   :  { %s3953_s17 = smov 0   ;;  %s4897_s0 = inlined_call_operand.<no memory space> [shape: f32[1], index: 0, kind: input, shape index: {}]   ;;  %s4898_s1 = inlined_call_operand.vmem [shape: f32[2,45,768], index: 1, kind: input, shape index: {}]   ;;  %s4899_s2 = inlined_call_operand.vmem [shape: f32[2,45,32], index: 2, kind: input, shape index: {}]   ;;  %s4900_s3 = inlined_call_operand.vmem [shape: bf16[768,32], index: 3, kind: input, shape index: {}]   ;;  %s4901_s4 = inlined_call_operand.vmem [shape: f32[1,32], index: 4, kind: input, shape index: {}]   ;;  %s4902_s5 = inlined_call_operand.vmem [shape: bf16[32,96], index: 5, kind: input, shape index: {}]   ;;  %s4903_s6 = inlined_call_operand.vmem [shape: f32[1,96], index: 6, kind: input, shape index: {}]   ;;  %s4904_s7 = inlined_call_operand.vmem [shape: bf16[32,32], index: 7, kind: input, shape index: {}]   ;;  %s4905_s8 = inlined_call_operand.vmem [shape: f32[1,32], index: 8, kind: input, shape index: {}]   ;;  %s4906_s9 = inlined_call_operand.vmem [shape: bf16[32,32], index: 9, kind: input, shape index: {}]   ;;  %s4907_s10 = inlined_call_operand.vmem [shape: f32[1,32], index: 10, kind: input, shape index: {}]   ;;  %s4908_s11 = inlined_call_operand.vmem [shape: bf16[32,1], index: 11, kind: input, shape index: {}]   ;;  %s4909_s12 = inlined_call_operand.<no memory space> [shape: f32[1,1], index: 12, kind: input, shape index: {}]   ;;  %s4910_s13 = inlined_call_operand.vmem [shape: f32[2,1,2], index: 13, kind: output, shape index: {0}]   ;;  %s4911_s14 = inlined_call_operand.vmem [shape: f32[2,1,1], index: 14, kind: output, shape index: {1}]  }
   0x1   :  { %20 = sst [smem:[#allocation2]] %s4897_s0  ;;  %v21_v0 = vstv %s4909_s12 }
   0x2   :  { %22 = vst [vmem:[#allocation3] sm:$0x1] %v21_v0 }
   0x3 LB: > { %s3026_s18 = sadd.s32 4294967295, %s3853_s17   ;;  %p3030_p0 = scmp.ge.s32.totalorder %s3853_s17, 1  ;;  %s3853_s17 = sphi %s3953_s17, %s28_s17  }
   0x4   : > { %p428_p1 = scmp.lt.s32.totalorder %s3853_s17, 3 }
   0x6   : > { %p429_p2 = pnand %p3030_p0, %p428_p1 }
   0x7   : > { %v3627_v1 = vld [vmem:[%s4900_s3 + $0x40] sm:$0xff] (!%p429_p2)   ;;  %v3631_v5 = vld [vmem:[%s4900_s3 + $0x48] sm:$0xff] (!%p429_p2)   ;;  %v3635_v9 = vld [vmem:[%s4900_s3 + $0x50] sm:$0xff] (!%p429_p2)   ;;  %p480_p3 = scmp.lt.s32.totalorder (!%p429_p2), %s3026_s18, 1  ;;  %vm1119_vm0 = vcmask (!%p429_p2), 261120   ;;  %vm1135_vm1 = vcmask (!%p429_p2), 258048  }
   0x8   : > { %432 = sbr.rel (%p429_p2) target bundleno = 2706 (0xa92), region = 72  ;;  %v3628_v2 = vld [vmem:[%s4900_s3] sm:$0xff] (!%p429_p2)   ;;  %3138 = vmatprep.subr.bf16.mxu0 (!%p429_p2), %v3627_v1  ;;  %v3632_v6 = vld [vmem:[%s4900_s3 + $0x8] sm:$0xff] (!%p429_p2)   ;;  %v3636_v10 = vld [vmem:[%s4900_s3 + $0x10] sm:$0xff] (!%p429_p2)   ;;  %vm3856_vm3 = vmmov (!%p429_p2), 0   ;;  %s1205_s28 = sld [smem:[#allocation2]] (!%p429_p2) }
   0x9   : > { %v3629_v3 = vld [vmem:[%s4900_s3 + $0xc0] sm:$0xff] (!%p429_p2)   ;;  %3139 = vmatpush3.bf16.msra.mxu0 (!%p429_p2), %v3628_v2  ;;  %v3633_v7 = vld [vmem:[%s4900_s3 + $0xc8] sm:$0xff] (!%p429_p2)   ;;  %v3637_v11 = vld [vmem:[%s4900_s3 + $0xd0] sm:$0xff] (!%p429_p2)   ;;  %s3857_s21 = smov (!%p429_p2), 96   ;;  %s3858_s22 = smov (!%p429_p2), 88  }
   0xa   : > { %v3630_v4 = vld [vmem:[%s4900_s3 + $0x80] sm:$0xff] (!%p429_p2)   ;;  %3172 = vmatprep.subr.bf16.mxu1 (!%p429_p2), %v3629_v3  ;;  %3140 = vmatprep.subr.bf16.mxu0 (!%p429_p2), %v3631_v5  ;;  %v3634_v8 = vld [vmem:[%s4900_s3 + $0x88] sm:$0xff] (!%p429_p2)   ;;  %v3638_v12 = vld [vmem:[%s4900_s3 + $0x90] sm:$0xff] (!%p429_p2)   ;;  %s3859_s23 = smov (!%p429_p2), 120   ;;  %s3860_s24 = smov (!%p429_p2), 112  }
   0xb   : > { %3173 = vmatpush3.bf16.msra.mxu1 (!%p429_p2), %v3630_v4  ;;  %v3639_v13 = vld [vmem:[%s4900_s3 + $0x58] sm:$0xff] (!%p429_p2)   ;;  %v3643_v17 = vld [vmem:[%s4900_s3 + $0x60] sm:$0xff] (!%p429_p2)   ;;  %v3647_v21 = vld [vmem:[%s4900_s3 + $0x68] sm:$0xff] (!%p429_p2)   ;;  %s3862_s25 = smov (!%p429_p2), 104   ;;  %s3863_s26 = smov (!%p429_p2), 72  }
   0xc   : > { %3174 = vmatprep.subr.bf16.mxu1 (!%p429_p2), %v3633_v7  ;;  %v3640_v14 = vld [vmem:[%s4900_s3 + $0x18] sm:$0xff] (!%p429_p2)   ;;  %v3644_v18 = vld [vmem:[%s4900_s3 + $0x20] sm:$0xff] (!%p429_p2)   ;;  %v3648_v22 = vld [vmem:[%s4900_s3 + $0x28] sm:$0xff] (!%p429_p2)   ;;  %s3866_s29 = smov (!%p429_p2), 48   ;;  %s3868_s15 = smov (!%p429_p2), 40  }
   0xd   : > { %3141 = vmatpush3.bf16.msra.mxu0 (!%p429_p2), %v3632_v6  ;;  %v3641_v15 = vld [vmem:[%s4900_s3 + $0xd8] sm:$0xff] (!%p429_p2)   ;;  %v3645_v19 = vld [vmem:[%s4900_s3 + $0xe0] sm:$0xff] (!%p429_p2)   ;;  %v3649_v23 = vld [vmem:[%s4900_s3 + $0xe8] sm:$0xff] (!%p429_p2)   ;;  %s3869_s16 = smov (!%p429_p2), 8  }
   0xe   : > { %3142 = vmatprep.subr.bf16.mxu0 (!%p429_p2), %v3635_v9  ;;  %v3642_v16 = vld [vmem:[%s4900_s3 + $0x98] sm:$0xff] (!%p429_p2)   ;;  %v3646_v20 = vld [vmem:[%s4900_s3 + $0xa0] sm:$0xff] (!%p429_p2)   ;;  %v3650_v24 = vld [vmem:[%s4900_s3 + $0xa8] sm:$0xff] (!%p429_p2)  }
   0xf   : > { %3175 = vmatpush3.bf16.msra.mxu1 %v3634_v8  ;;  %s4913_s18 = smov (!%p480_p3, %s3026_s18), 1  ;;  %v3651_v25 = vld [vmem:[%s4900_s3 + $0x70] sm:$0xff]   ;;  %v3655_v29 = vld [vmem:[%s4900_s3 + $0x78] sm:$0xff]   ;;  %v3659_v39 = vld [vmem:[%s4900_s3 + $0x140] sm:$0xff]  }
  0x10   : > { %3176 = vmatprep.subr.bf16.mxu1 %v3637_v11  ;;  %s3547_s12 = smul.u32 288, %s4913_s18  ;;  %v3652_v26 = vld [vmem:[%s4900_s3 + $0x30] sm:$0xff]   ;;  %v3656_v30 = vld [vmem:[%s4900_s3 + $0x38] sm:$0xff]   ;;  %v3660_v43 = vld [vmem:[%s4900_s3 + $0x100] sm:$0xff]  }
  0x11   : > { %3143 = vmatpush3.bf16.msra.mxu0 %v3636_v10  ;;  %v3653_v27 = vld [vmem:[%s4900_s3 + $0xf0] sm:$0xff]   ;;  %v3657_v31 = vld [vmem:[%s4900_s3 + $0xf8] sm:$0xff]   ;;  %v3661_v47 = vld [vmem:[%s4900_s3 + $0x148] sm:$0xff]  }
  0x12   : > { %3144 = vmatprep.subr.bf16.mxu0 %v3639_v13  ;;  %v3654_v28 = vld [vmem:[%s4900_s3 + $0xb0] sm:$0xff]   ;;  %s4058_s30 = scalar_lea.vmem %s4898_s1, %s3547_s12  ;;  %v3658_v35 = vld [vmem:[%s4900_s3 + $0xb8] sm:$0xff]   ;;  %v3662_v48 = vld [vmem:[%s4900_s3 + $0x108] sm:$0xff]  }
  0x13   : > { %3177 = vmatpush3.bf16.msra.mxu1 %v3638_v12  ;;  %v498_v32 = vld [vmem:[%s4058_s30 + $0x8] sm:$0xff]  ;;  %v504_v33 = vld [vmem:[%s4058_s30 + $0x38] sm:$0xff]  ;;  %v497_v36 = vld [vmem:[%s4058_s30] sm:$0xff] }
  0x14   : > { %3178 = vmatprep.subr.bf16.mxu1 %v3641_v15  ;;  %v630_v34 = vpack.c.bf16 %v504_v33, %v498_v32  ;;  %v503_v37 = vld [vmem:[%s4058_s30 + $0x30] sm:$0xff]  ;;  %v500_v40 = vld [vmem:[%s4058_s30 + $0x18] sm:$0xff]  ;;  %v506_v41 = vld [vmem:[%s4058_s30 + $0x48] sm:$0xff] }
  0x15   : > { %3145 = vmatpush3.bf16.msra.mxu0 %v3640_v14  ;;  %v629_v38 = vpack.c.bf16 %v503_v37, %v497_v36  ;;  %v632_v42 = vpack.c.bf16 %v506_v41, %v500_v40  ;;  %v499_v44 = vld [vmem:[%s4058_s30 + $0x10] sm:$0xff]  ;;  %v505_v45 = vld [vmem:[%s4058_s30 + $0x40] sm:$0xff]  ;;  %v510_v51 = vld [vmem:[%s4058_s30 + $0x68] sm:$0xff] }
  0x16   : > { %3146 = vmatprep.subr.bf16.mxu0 %v3643_v17  ;;  %974 = vmatprep.mubr.bf16.mxu0 %v630_v34  ;;  %v631_v46 = vpack.c.bf16 %v505_v45, %v499_v44  ;;  %v3663_v49 = vld [vmem:[%s4900_s3 + $0x150] sm:$0xff]   ;;  %v516_v52 = vld [vmem:[%s4058_s30 + $0x98] sm:$0xff]  ;;  %v509_v55 = vld [vmem:[%s4058_s30 + $0x60] sm:$0xff] }
  0x17   : > { %3179 = vmatpush3.bf16.msra.mxu1 %v3642_v16  ;;  %1031 = vmatprep.mubr.bf16.mxu1 %v632_v42  ;;  %v3664_v50 = vld [vmem:[%s4900_s3 + $0x110] sm:$0xff]   ;;  %v636_v53 = vpack.c.bf16 %v516_v52, %v510_v51  ;;  %v3665_v54 = vld [vmem:[%s4900_s3 + $0x158] sm:$0xff]   ;;  %v518_v60 = vld [vmem:[%s4058_s30 + $0xa8] sm:$0xff] }
  0x18   : > { %3180 = vmatprep.subr.bf16.mxu1 %v3645_v19  ;;  %v515_v56 = vld [vmem:[%s4058_s30 + $0x90] sm:$0xff]  ;;  %v3666_v58 = vld [vmem:[%s4900_s3 + $0x118] sm:$0xff]   ;;  %v517_v63 = vld [vmem:[%s4058_s30 + $0xa0] sm:$0xff] }
  0x19   : > { %3147 = vmatpush3.bf16.msra.mxu0 %v3644_v18  ;;  %v635_v57 = vpack.c.bf16 %v515_v56, %v509_v55  ;;  %v512_v59 = vld [vmem:[%s4058_s30 + $0x78] sm:$0xff]  ;;  %v511_v61 = vld [vmem:[%s4058_s30 + $0x70] sm:$0xff]  ;;  %v3667_v1 = vld [vmem:[%s4900_s3 + $0x160] sm:$0xff]  }
  0x1a   : > { %3148 = vmatprep.subr.bf16.mxu0 %v3647_v21  ;;  %v638_v62 = vpack.c.bf16 %v518_v60, %v512_v59  ;;  %v637_v0 = vpack.c.bf16 %v517_v63, %v511_v61  ;;  %v522_v2 = vld [vmem:[%s4058_s30 + $0xc8] sm:$0xff]  ;;  %v528_v3 = vld [vmem:[%s4058_s30 + $0xf8] sm:$0x1f]  ;;  %v3668_v4 = vld [vmem:[%s4900_s3 + $0x120] sm:$0xff]  }
  0x1b   : > { %3181 = vmatpush3.bf16.msra.mxu1 %v3646_v20  ;;  %v642_v5 = vpack.c.bf16 %v528_v3, %v522_v2  ;;  %v521_v6 = vld [vmem:[%s4058_s30 + $0xc0] sm:$0xff]  ;;  %v527_v7 = vld [vmem:[%s4058_s30 + $0xf0] sm:$0x1f]  ;;  %v3669_v8 = vld [vmem:[%s4900_s3 + $0x168] sm:$0xff]  }
  0x1c   : > { %3182 = vmatprep.subr.bf16.mxu1 %v3649_v23  ;;  %v641_v9 = vpack.c.bf16 %v527_v7, %v521_v6  ;;  %v524_v10 = vld [vmem:[%s4058_s30 + $0xd8] sm:$0xff]  ;;  %v530_v11 = vld [vmem:[%s4058_s30 + $0x108] sm:$0x1f]  ;;  %v523_v12 = vld [vmem:[%s4058_s30 + $0xd0] sm:$0xff] }
  0x1d   : > { %3149 = vmatpush3.bf16.msra.mxu0 %v3648_v22  ;;  %v529_v13 = vld [vmem:[%s4058_s30 + $0x100] sm:$0x1f]  ;;  %v644_v14 = vpack.c.bf16 %v530_v11, %v524_v10  ;;  %v3670_v16 = vld [vmem:[%s4900_s3 + $0x128] sm:$0xff]   ;;  %v3671_v17 = vld [vmem:[%s4900_s3 + $0x170] sm:$0xff]  }
  0x1e   : > { %3150 = vmatprep.subr.bf16.mxu0 %v3651_v25  ;;  %v643_v15 = vpack.c.bf16 %v529_v13, %v523_v12  ;;  %v502_v18 = vld [vmem:[%s4058_s30 + $0x28] sm:$0xff]  ;;  %v508_v19 = vld [vmem:[%s4058_s30 + $0x58] sm:$0xff]  ;;  %v3672_v20 = vld [vmem:[%s4900_s3 + $0x130] sm:$0xff]  }
  0x1f   : > { %3183 = vmatpush3.bf16.msra.mxu1 %v3650_v24  ;;  %v634_v21 = vpack.c.bf16 %v508_v19, %v502_v18  ;;  %v3673_v22 = vld [vmem:[%s4900_s3 + $0x178] sm:$0xff]   ;;  %v501_v24 = vld [vmem:[%s4058_s30 + $0x20] sm:$0xff]  ;;  %v507_v25 = vld [vmem:[%s4058_s30 + $0x50] sm:$0xff] }
  0x20   : > { %3184 = vmatprep.subr.bf16.mxu1 %v3653_v27  ;;  %v3674_v23 = vld [vmem:[%s4900_s3 + $0x138] sm:$0xff]   ;;  %v526_v32 = vld [vmem:[%s4058_s30 + $0xe8] sm:$0xff]  ;;  %v525_v36 = vld [vmem:[%s4058_s30 + $0xe0] sm:$0xff] }
  0x21   : > { %3151 = vmatpush3.bf16.msra.mxu0 %v3652_v26  ;;  %v514_v26 = vld [vmem:[%s4058_s30 + $0x88] sm:$0xff]  ;;  %v520_v27 = vld [vmem:[%s4058_s30 + $0xb8] sm:$0xff]  ;;  %v531_v37 = vld [vmem:[%s4058_s30 + $0x110] sm:$0x1f] }
  0x22   : > { %3152 = vmatprep.subr.bf16.mxu0 %v3655_v29  ;;  %v640_v29 = vpack.c.bf16 %v520_v27, %v514_v26  ;;  %v532_v33 = vld [vmem:[%s4058_s30 + $0x118] sm:$0x1f]  ;;  %v3033_v40 = vld [vmem:[%s4901_s4] ss:$0 sm:$0xff]  ;;  %vm3530_vm2 = vmpackc.low %vm1119_vm0, %vm1119_vm0 }
  0x23   : > { %3185 = vmatpush3.bf16.msra.mxu1 %v3654_v28  ;;  %v633_v28 = vpack.c.bf16 %v507_v25, %v501_v24 }
  0x24   : > { %3186 = vmatprep.subr.bf16.mxu1 %v3657_v31  ;;  %v519_v31 = vld [vmem:[%s4058_s30 + $0xb0] sm:$0xff] }
  0x25   : > { %3153 = vmatpush3.bf16.msra.mxu0 %v3656_v30  ;;  %v513_v30 = vld [vmem:[%s4058_s30 + $0x80] sm:$0xff]  ;;  %s3548_s30 = smul.u32 48, %s4913_s18 }
  0x26   : > { %3206 = vmatprep.subr.bf16.mxu0 %v3659_v39  ;;  %v639_v34 = vpack.c.bf16 %v519_v31, %v513_v30 }
  0x27   : > { %3187 = vmatpush3.bf16.msra.mxu1 %v3658_v35  ;;  %v646_v35 = vpack.c.bf16 %v532_v33, %v526_v32  ;;  %s489_s27 = scalar_lea.vmem %s4899_s2, %s3548_s30  ;;  %s3861_s30 = smov 80  }
  0x28   : > { %975 = vmatmul.mubr.bf16.vlgmr.msra.gmra.mrb[0].mxu0 %v629_v38  ;;  %v645_v38 = vpack.c.bf16 %v531_v37, %v525_v36 }
  0x29   : > { %3207 = vmatpush3.bf16.msra.mxu0 %v3660_v43  ;;  %982 = vmatprep.mubr.bf16.mxu0 %v636_v53 }
  0x2a   : > { %1032 = vmatmul.mubr.bf16.vlgmr.msra.gmra.mrb[0].mxu1 %v631_v46  ;;  %3208 = vmatprep.subr.bf16.mxu0 %v3661_v47 }
  0x2b   : > { %1039 = vmatprep.mubr.bf16.mxu1 %v638_v62 }
  0x2d   : > { %3209 = vmatpush3.bf16.msra.mxu0 %v3662_v48 }
  0x2e   : > { %3210 = vmatprep.subr.bf16.mxu0 %v3663_v49 }
  0x30   : > { %983 = vmatmul.mubr.bf16.gmra.mrb[4].mxu0 %v635_v57 }
  0x31   : > { %3211 = vmatpush3.bf16.msra.mxu0 %v3664_v50  ;;  %990 = vmatprep.mubr.bf16.mxu0 %v642_v5 }
  0x32   : > { %3212 = vmatprep.subr.bf16.mxu0 %v3665_v54  ;;  %1040 = vmatmul.mubr.bf16.gmra.mrb[4].mxu1 %v637_v0 }
  0x33   : > { %1047 = vmatprep.mubr.bf16.mxu1 %v644_v14 }
  0x35   : > { %3213 = vmatpush3.bf16.msra.mxu0 %v3666_v58 }
  0x36   : > { %3214 = vmatprep.subr.bf16.mxu0 %v3667_v1 }
  0x38   : > { %991 = vmatmul.mubr.bf16.gmra.mrb[8].mxu0 %v641_v9 }
  0x39   : > { %3215 = vmatpush3.bf16.msra.mxu0 %v3668_v4  ;;  %1088 = vmatprep.mubr.bf16.mxu0 %v634_v21 }
  0x3a   : > { %3216 = vmatprep.subr.bf16.mxu0 %v3669_v8  ;;  %1048 = vmatmul.mubr.bf16.gmra.mrb[8].mxu1 %v643_v15 }
  0x3d   : > { %3217 = vmatpush3.bf16.msra.mxu0 %v3670_v16 }
  0x3e   : > { %3218 = vmatprep.subr.bf16.mxu0 %v3671_v17 }
  0x41   : > { %3219 = vmatpush3.bf16.msra.mxu0 %v3672_v20 }
  0x42   : > { %3220 = vmatprep.subr.bf16.mxu0 %v3673_v22 }
  0x45   : > { %3221 = vmatpush3.bf16.msra.mxu0 %v3674_v23 }
  0x48   : > { %1089 = vmatmul.mubr.bf16.vlgmr.msra.gmra.mrb[12].mxu0 %v633_v28 }
  0x49   : > { %1096 = vmatprep.mubr.bf16.mxu0 %v640_v29 }
  0x50   : > { %1097 = vmatmul.mubr.bf16.gmra.mrb[16].mxu0 %v639_v34 }
  0x51   : > { %1104 = vmatprep.mubr.bf16.mxu0 %v646_v35 }
  0x58   : > { %1105 = vmatmul.mubr.bf16.gmra.mrb[20].mxu0 %v645_v38 }
  0xfb   : > { %v3154_v39 = vpop.f32.mrb[0].mxu0 }
  0xfc   : > { %v3155_v41 = vpop.f32.mrb[1].mxu0 }
  0xfd   : > { %v3156_v42 = vadd.f32 %v3155_v41, %v3154_v39  ;;  %v3157_v43 = vpop.f32.mrb[2].mxu0  ;;  %v3188_v44 = vpop.f32.mrb[0].mxu1 }
  0xfe   : > { %v3158_v45 = vpop.f32.mrb[3].mxu0  ;;  %v3189_v48 = vpop.f32.mrb[1].mxu1 }
  0xff   : > { %v977_v46 = vadd.f32 %v3156_v42, %v3033_v40  ;;  %v3159_v47 = vadd.f32 %v3158_v45, %v3157_v43  ;;  %v3190_v49 = vadd.f32 %v3189_v48, %v3188_v44  ;;  %v3191_v50 = vpop.f32.mrb[2].mxu1 }
 0x100   : > { %v3192_v52 = vpop.f32.mrb[3].mxu1 }
 0x101   : > { %v980_v51 = vadd.f32 %v3159_v47, %v3033_v40  ;;  %v1034_v53 = vadd.f32 %v3190_v49, %v977_v46  ;;  %v3193_v54 = vadd.f32 %v3192_v52, %v3191_v50 }
 0x103   : > { %v1037_v55 = vadd.f32 %v3193_v54, %v980_v51  ;;  %v3160_v56 = vpop.f32.mrb[4].mxu0 }
 0x104   : > { %v3161_v57 = vpop.f32.mrb[5].mxu0 }
 0x105   : > { %v3162_v58 = vadd.f32 %v3161_v57, %v3160_v56  ;;  %v3163_v59 = vpop.f32.mrb[6].mxu0  ;;  %v3194_v60 = vpop.f32.mrb[4].mxu1 }
 0x106   : > { %v3164_v61 = vpop.f32.mrb[7].mxu0  ;;  %v3195_v62 = vpop.f32.mrb[5].mxu1 }
 0x107   : > { %v985_v63 = vadd.f32 %v3162_v58, %v3033_v40  ;;  %v3165_v0 = vadd.f32 %v3164_v61, %v3163_v59  ;;  %v3196_v1 = vadd.f32 %v3195_v62, %v3194_v60  ;;  %v3197_v2 = vpop.f32.mrb[6].mxu1  ;;  %v4190_v60 = vld [vmem:[%s489_s27] sm:$0xff]  ;;  %v4192_v61 = vld [vmem:[%s489_s27 + $0x8] sm:$0xff] }
 0x108   : > { %v3198_v3 = vpop.f32.mrb[7].mxu1  ;;  %v3529_v62 = vpack.c.bf16 %v4192_v61, %v4190_v60 }
 0x109   : > { %v988_v4 = vadd.f32 %v3165_v0, %v3033_v40  ;;  %v1042_v5 = vadd.f32 %v3196_v1, %v985_v63  ;;  %v3199_v6 = vadd.f32 %v3198_v3, %v3197_v2  ;;  %v4198_v63 = vld [vmem:[%s489_s27 + $0x10] sm:$0xff]  ;;  %v4200_v0 = vld [vmem:[%s489_s27 + $0x18] sm:$0xff]  ;;  %v4204_v2 = vld [vmem:[%s489_s27 + $0x20] sm:$0xff] }
 0x10a   : > { %3531 = vmatprep.subr.msk.bf16.mxu1 %vm3530_vm2, %v3529_v62  ;;  %v3535_v1 = vpack.c.bf16 %v4200_v0, %v4198_v63  ;;  %v4206_v3 = vld [vmem:[%s489_s27 + $0x28] sm:$0x1f]  ;;  %s3864_s27 = smov 64  }
 0x10b   : > { %v1045_v7 = vadd.f32 %v3199_v6, %v988_v4  ;;  %v3166_v8 = vpop.f32.mrb[8].mxu0  ;;  %3534 = vmatpush3.bf16.xpose.msk.msra.mxu1 %vm3530_vm2, %v3529_v62  ;;  %v3541_v4 = vpack.c.bf16 %v4206_v3, %v4204_v2  ;;  %v1206_v6 = vstv %s1205_s28  ;;  %s3865_s28 = smov 56  }
 0x10c   : > { %v3167_v9 = vpop.f32.mrb[9].mxu0  ;;  %3537 = vmatprep.subr.msk.bf16.mxu1 %vm3530_vm2, %v3535_v1  ;;  %3683 = vrcp.f32 %v1206_v6  ;;  %v3676_v6 = vld [vmem:[%s4902_s5 + $0x8] sm:$0xff]  }
 0x10d   : > { %v3168_v10 = vadd.f32 %v3167_v9, %v3166_v8  ;;  %v3169_v11 = vpop.f32.mrb[10].mxu0  ;;  %v3200_v12 = vpop.f32.mrb[8].mxu1 }
 0x10e   : > { %v3170_v13 = vpop.f32.mrb[11].mxu0  ;;  %v3201_v14 = vpop.f32.mrb[9].mxu1 }
 0x10f   : > { %v993_v15 = vadd.f32 %v3168_v10, %v3033_v40  ;;  %v3171_v16 = vadd.f32 %v3170_v13, %v3169_v11  ;;  %v3202_v17 = vadd.f32 %v3201_v14, %v3200_v12  ;;  %v3203_v18 = vpop.f32.mrb[10].mxu1 }
 0x110   : > { %v3204_v19 = vpop.f32.mrb[11].mxu1 }
 0x111   : > { %v996_v20 = vadd.f32 %v3171_v16, %v3033_v40  ;;  %v1050_v21 = vadd.f32 %v3202_v17, %v993_v15  ;;  %v3205_v22 = vadd.f32 %v3204_v19, %v3203_v18 }
 0x113   : > { %v1053_v23 = vadd.f32 %v3205_v22, %v996_v20  ;;  %3540 = vmatpush3.bf16.xpose.msk.msra.mxu1 %vm3530_vm2, %v3535_v1 }
 0x114   : > { %3543 = vmatprep.subr.msk.bf16.mxu1 %vm3530_vm2, %v3541_v4 }
 0x11b   : > { %v3222_v24 = vpop.f32.mrb[12].mxu0  ;;  %3546 = vmatpush3.bf16.xpose.msk.msra.mxu1 %vm3530_vm2, %v3541_v4  ;;  %vm1653_vm2 = vcmask 64512  }
 0x11c   : > { %v3223_v25 = vpop.f32.mrb[13].mxu0 }
 0x11d   : > { %v3224_v26 = vadd.f32 %v3223_v25, %v3222_v24  ;;  %v3225_v27 = vpop.f32.mrb[14].mxu0 }
 0x11e   : > { %v3226_v28 = vpop.f32.mrb[15].mxu0 }
 0x11f   : > { %v4156_v29 = vadd.f32 %v3224_v26, %v1034_v53  ;;  %v3227_v30 = vadd.f32 %v3226_v28, %v3225_v27 }
 0x121   : > { %v4158_v31 = vadd.f32 %v3227_v30, %v1037_v55  ;;  %v1113_v32 = vmul.f32 %v4156_v29, %v4156_v29 }
 0x123   : > { %v3228_v33 = vpop.f32.mrb[16].mxu0  ;;  %v1120_v34 = vsel %vm1119_vm0, %v1113_v32, 0.0  ;;  %v1114_v35 = vmul.f32 %v4158_v31, %v4158_v31 }
 0x124   : > { %v3229_v36 = vpop.f32.mrb[17].mxu0  ;;  %1121 = vadd.xlane.f32.xlu0 %v1120_v34 }
 0x125   : > { %v3230_v37 = vadd.f32 %v3229_v36, %v3228_v33  ;;  %v3231_v38 = vpop.f32.mrb[18].mxu0  ;;  %v1123_v42 = vsel %vm1119_vm0, %v1114_v35, 0.0 }
 0x126   : > { %v3232_v39 = vpop.f32.mrb[19].mxu0 }
 0x127   : > { %v4165_v40 = vadd.f32 %v3230_v37, %v1042_v5  ;;  %v3233_v41 = vadd.f32 %v3232_v39, %v3231_v38  ;;  %v3855_v5 = vmov 0.0  }
 0x128   : > { %1124 = vadd.xlane.f32.xlu0 %v1123_v42  ;;  %3337 = vmatprep.subr.bf16.mxu1 %v3855_v5 }
 0x129   : > { %v4168_v43 = vadd.f32 %v3233_v41, %v1045_v7  ;;  %v1115_v44 = vmul.f32 %v4165_v40, %v4165_v40  ;;  %3353 = vmatprep.subr.bf16.mxu0 %v3855_v5  ;;  %3359 = vmatprep.mubr.msk.bf16.mxu0 %vm3856_vm3, %v3855_v5  ;;  %v3684_v7 = vpop.eup %3683 }
 0x12a   : > { %3549 = vpush %v3684_v7 }
 0x12b   : > { %v3234_v45 = vpop.f32.mrb[20].mxu0  ;;  %v1126_v46 = vsel %vm1119_vm0, %v1115_v44, 0.0  ;;  %v1116_v47 = vmul.f32 %v4168_v43, %v4168_v43 }
 0x12c   : > { %v3235_v48 = vpop.f32.mrb[21].mxu0  ;;  %1127 = vadd.xlane.f32.xlu1 %v1126_v46 }
 0x12d   : > { %v3236_v49 = vadd.f32 %v3235_v48, %v3234_v45  ;;  %v3237_v50 = vpop.f32.mrb[22].mxu0  ;;  %v1129_v54 = vsel %vm1119_vm0, %v1116_v47, 0.0 }
 0x12e   : > { %v3238_v51 = vpop.f32.mrb[23].mxu0 }
 0x12f   : > { %v4175_v52 = vadd.f32 %v3236_v49, %v1050_v21  ;;  %v3239_v53 = vadd.f32 %v3238_v51, %v3237_v50 }
 0x130   : > { %1130 = vadd.xlane.f32.xlu1 %v1129_v54 }
 0x131   : > { %v4178_v55 = vadd.f32 %v3239_v53, %v1053_v23  ;;  %v1117_v56 = vmul.f32 %v4175_v52, %v4175_v52 }
 0x133   : > { %v1132_v57 = vsel %vm1119_vm0, %v1117_v56, 0.0  ;;  %v1118_v58 = vmul.f32 %v4178_v55, %v4178_v55 }
 0x134   : > { %1133 = vadd.xlane.f32.xlu0 %v1132_v57  ;;  %v3675_v57 = vld [vmem:[%s4902_s5] sm:$0xff]  }
 0x135   : > { %v1136_v59 = vsel %vm1135_vm1, %v1118_v58, 0.0 }
 0x136   : > { %1137 = vadd.xlane.f32.xlu1 %v1136_v59 }
 0x15b   : > { %s4265_s19 = spop %3549 }
 0x1b1   : > { %v1122_v8 = vpop.xlane.xlu0 %1121 }
 0x1b2   : > { %3685 = vrsqrt.f32 %v1122_v8  ;;  %vm1141_vm4 = vcmp.eq.f32.partialorder %v1122_v8, inf  ;;  %v1144_v14 = vand.u32 2147483648, %v1122_v8  ;;  %vm1143_vm5 = vcmp.eq.f32.partialorder %v1122_v8, 0.0 }
 0x1b5   : > { %v1125_v9 = vpop.xlane.xlu0 %1124 }
 0x1b6   : > { %3687 = vrsqrt.f32 %v1125_v9  ;;  %vm1148_vm6 = vcmp.eq.f32.partialorder %v1125_v9, inf  ;;  %v1151_v21 = vand.u32 2147483648, %v1125_v9  ;;  %vm1150_vm7 = vcmp.eq.f32.partialorder %v1125_v9, 0.0 }
 0x1b9   : > { %v1128_v10 = vpop.xlane.xlu1 %1127 }
 0x1ba   : > { %3689 = vrsqrt.f32 %v1128_v10  ;;  %vm1155_vm8 = vcmp.eq.f32.partialorder %v1128_v10, inf  ;;  %v1158_v28 = vand.u32 2147483648, %v1128_v10  ;;  %vm1157_vm9 = vcmp.eq.f32.partialorder %v1128_v10, 0.0 }
 0x1bc   : > { %v3686_v11 = vpop.eup %3685 }
 0x1bd   : > { %v1140_v12 = vmul.f32 %v3686_v11, %v1122_v8  ;;  %v1131_v13 = vpop.xlane.xlu1 %1130 }
 0x1be   : > { %3691 = vrsqrt.f32 %v1131_v13  ;;  %vm1162_vm10 = vcmp.eq.f32.partialorder %v1131_v13, inf  ;;  %v1165_v36 = vand.u32 2147483648, %v1131_v13  ;;  %vm1164_vm11 = vcmp.eq.f32.partialorder %v1131_v13, 0.0 }
 0x1bf   : > { %v1142_v15 = vsel %vm1141_vm4, %v1122_v8, %v1140_v12  ;;  %vm1821_vm4 = vcmask 1045504  }
 0x1c0   : > { %v3688_v16 = vpop.eup %3687  ;;  %v1145_v17 = vsel %vm1143_vm5, %v1144_v14, %v1142_v15  ;;  %vm1822_vm5 = vcmask 1046528  }
 0x1c1   : > { %v1181_v18 = vmax.f32 %v1145_v17, 1e-12  ;;  %v1147_v19 = vmul.f32 %v3688_v16, %v1125_v9  ;;  %v1134_v20 = vpop.xlane.xlu0 %1133 }
 0x1c2   : > { %3693 = vrsqrt.f32 %v1134_v20  ;;  %vm1169_vm12 = vcmp.eq.f32.partialorder %v1134_v20, inf  ;;  %v1172_v46 = vand.u32 2147483648, %v1134_v20  ;;  %vm1171_vm13 = vcmp.eq.f32.partialorder %v1134_v20, 0.0 }
 0x1c3   : > { %v1149_v22 = vsel %vm1148_vm6, %v1125_v9, %v1147_v19  ;;  %v1138_v23 = vpop.xlane.xlu1 %1137  ;;  %3695 = vrcp.f32 %v1181_v18  ;;  %vm1374_vm6 = vcmask 367616  }
 0x1c4   : > { %v3690_v24 = vpop.eup %3689  ;;  %v1152_v25 = vsel %vm1150_vm7, %v1151_v21, %v1149_v22  ;;  %3697 = vrsqrt.f32 %v1138_v23  ;;  %vm1176_vm14 = vcmp.eq.f32.partialorder %v1138_v23, inf  ;;  %v1179_v51 = vand.u32 2147483648, %v1138_v23 }
 0x1c5   : > { %v1182_v26 = vmax.f32 %v1152_v25, 1e-12  ;;  %v1154_v27 = vmul.f32 %v3690_v24, %v1128_v10  ;;  %vm1178_vm15 = vcmp.eq.f32.partialorder %v1138_v23, 0.0  ;;  %vm1390_vm7 = vcmask 364544  }
 0x1c7   : > { %3699 = vrcp.f32 %v1182_v26  ;;  %v1156_v30 = vsel %vm1155_vm8, %v1128_v10, %v1154_v27  ;;  %vm2680_vm8 = vcmask 130048  }
 0x1c8   : > { %v3692_v32 = vpop.eup %3691  ;;  %v1159_v33 = vsel %vm1157_vm9, %v1158_v28, %v1156_v30  ;;  %vm2687_vm9 = vcmask 195584  }
 0x1c9   : > { %v1183_v34 = vmax.f32 %v1159_v33, 1e-12  ;;  %v1161_v35 = vmul.f32 %v3692_v32, %v1131_v13 }
 0x1cb   : > { %v1163_v37 = vsel %vm1162_vm10, %v1131_v13, %v1161_v35  ;;  %3701 = vrcp.f32 %v1183_v34 }
 0x1cc   : > { %v3694_v38 = vpop.eup %3693  ;;  %v1166_v39 = vsel %vm1164_vm11, %v1165_v36, %v1163_v37  ;;  %vm1523_vm11 = vcmask 360448  }
 0x1cd   : > { %v3696_v41 = vpop.eup %3695  ;;  %v1184_v42 = vmax.f32 %v1166_v39, 1e-12  ;;  %v1168_v44 = vmul.f32 %v3694_v38, %v1134_v20 }
 0x1ce   : > { %v3698_v45 = vpop.eup %3697  ;;  %v1188_v47 = vmul.f32 %v3696_v41, %v4156_v29  ;;  %v3094_v41 = vld [vmem:[%s4903_s6] ss:$0 sm:$0xff] }
 0x1cf   : > { %v1170_v48 = vsel %vm1169_vm12, %v1134_v20, %v1168_v44  ;;  %v1175_v49 = vmul.f32 %v3698_v45, %v1138_v23  ;;  %3703 = vrcp.f32 %v1184_v42  ;;  %vm1507_vm12 = vcmask 4096  }
 0x1d0   : > { %v1173_v50 = vsel %vm1171_vm13, %v1172_v46, %v1170_v48  ;;  %3328 = vmatprep.mubr.msk.f32.mxu1 %vm1119_vm0, %v1188_v47  ;;  %v1347_v59 = vmul.f32 %v4190_v60, %v1188_v47  ;;  %v1543_v22 = vadd.f32 %v4190_v60, %v1188_v47  ;;  %vm2940_vm13 = vcmask 0  }
 0x1d1   : > { %v3700_v53 = vpop.eup %3699  ;;  %v1185_v54 = vmax.f32 %v1173_v50, 1e-12  ;;  %v1177_v56 = vsel %vm1176_vm14, %v1138_v23, %v1175_v49 }
 0x1d2   : > { %v1190_v58 = vmul.f32 %v3700_v53, %v4158_v31  ;;  %v1180_v29 = vsel %vm1178_vm15, %v1179_v51, %v1177_v56  ;;  %v1353_v31 = vsel %vm1119_vm0, %v1347_v59, 0.0 }
 0x1d3   : > { %v1186_v62 = vmax.f32 %v1180_v29, 1e-12  ;;  %3705 = vrcp.f32 %v1185_v54 }
 0x1d4   : > { %v1348_v1 = vmul.f32 %v4192_v61, %v1190_v58  ;;  %3329 = vmatmul.mubr.msk.f32.vlgmr.msra.gmra.mrb[12].mxu1 %vm1119_vm0, %v1190_v58  ;;  %v1544_v20 = vadd.f32 %v4192_v61, %v1190_v58 }
 0x1d5   : > { %v3702_v4 = vpop.eup %3701  ;;  %3338 = vmatpush3.bf16.msra.mxu1 %v3675_v57  ;;  %3707 = vrcp.f32 %v1186_v62 }
 0x1d6   : > { %v1192_v7 = vmul.f32 %v3702_v4, %v4165_v40  ;;  %3339 = vmatprep.subr.bf16.mxu1 %v3855_v5  ;;  %v1354_v8 = vsel %vm1119_vm0, %v1348_v1, 0.0  ;;  %v1553_v25 = vpack.c.bf16 %v1544_v20, %v1543_v22 }
 0x1d7   : > { %v1355_v9 = vadd.f32 %v1354_v8, %v1353_v31 }
 0x1d8   : > { %3331 = vmatprep.mubr.msk.f32.mxu1 %vm1119_vm0, %v1192_v7  ;;  %v1349_v10 = vmul.f32 %v4198_v63, %v1192_v7  ;;  %v1545_v60 = vadd.f32 %v4198_v63, %v1192_v7  ;;  %v4268_v63 = vstv %s4265_s19 }
 0x1d9   : > { %v3704_v11 = vpop.eup %3703  ;;  %3340 = vmatpush3.bf16.msra.mxu1 %v3676_v6 }
 0x1da   : > { %v1194_v12 = vmul.f32 %v3704_v11, %v4168_v43  ;;  %3371 = vmatprep.subr.bf16.mxu1 %v3855_v5  ;;  %v1356_v13 = vsel %vm1119_vm0, %v1349_v10, 0.0 }
 0x1db   : > { %v1357_v40 = vadd.f32 %v1356_v13, %v1355_v9 }
 0x1dc   : > { %3332 = vmatmul.mubr.msk.f32.gmra.mrb[14].mxu1 %vm1119_vm0, %v1194_v12  ;;  %v1350_v14 = vmul.f32 %v4200_v0, %v1194_v12 }
 0x1dd   : > { %v3706_v15 = vpop.eup %3705 }
 0x1de   : > { %v1196_v16 = vmul.f32 %v3706_v15, %v4175_v52  ;;  %v1358_v17 = vsel %vm1119_vm0, %v1350_v14, 0.0 }
 0x1df   : > { %v3708_v18 = vpop.eup %3707  ;;  %v1359_v19 = vadd.f32 %v1358_v17, %v1357_v40 }
 0x1e0   : > { %3334 = vmatprep.mubr.msk.f32.mxu1 %vm1119_vm0, %v1196_v16  ;;  %v1198_v43 = vmul.f32 %v3708_v18, %v4178_v55  ;;  %v1351_v21 = vmul.f32 %v4204_v2, %v1196_v16  ;;  %v1546_v55 = vadd.f32 %v4200_v0, %v1194_v12  ;;  %v1547_v30 = vadd.f32 %v4204_v2, %v1196_v16 }
 0x1e2   : > { %3335 = vmatmul.mubr.msk.f32.gmra.mrb[16].mxu1 %vm1119_vm0, %v1198_v43  ;;  %v1352_v23 = vmul.f32 %v4206_v3, %v1198_v43  ;;  %v1360_v52 = vsel %vm1119_vm0, %v1351_v21, 0.0  ;;  %v1554_v27 = vpack.c.bf16 %v1546_v55, %v1545_v60  ;;  %v1548_v28 = vadd.f32 %v4206_v3, %v1198_v43 }
 0x1e3   : > { %3341 = vmatprep.mubr.msk.bf16.mxu1 %vm3856_vm3, %v3855_v5  ;;  %v1361_v24 = vadd.f32 %v1360_v52, %v1359_v19 }
 0x1e4   : > { %v1362_v61 = vsel %vm1135_vm1, %v1352_v23, 0.0  ;;  %v1555_v32 = vpack.c.bf16 %v1548_v28, %v1547_v30 }
 0x1e5   : > { %v4250_v26 = vadd.f32 %v1362_v61, %v1361_v24 }
 0x1e6   : > { %3342 = vmatmul.mubr.msk.bf16.vlgmr.msra.gmra.mrb[20].mxu1 %vm1119_vm0, %v1553_v25 }
 0x1e7   : > { %3345 = vmatprep.mubr.msk.bf16.mxu1 %vm3856_vm3, %v3855_v5 }
 0x1ee   : > { %3346 = vmatmul.mubr.msk.bf16.gmra.mrb[24].mxu1 %vm1119_vm0, %v1554_v27 }
 0x1ef   : > { %3349 = vmatprep.mubr.msk.bf16.mxu1 %vm3856_vm3, %v3855_v5 }
 0x1f6   : > { %3350 = vmatmul.mubr.msk.bf16.gmra.mrb[28].mxu1 %vm1119_vm0, %v1555_v32 }
 0x1f7   : > { %3377 = vmatprep.mubr.msk.bf16.mxu1 %vm3856_vm3, %v3855_v5 }
 0x2a7   : > { %v3330_v0 = vpop.f32.mrb[12].mxu1 }
 0x2a8   : > { %v4271_v33 = vmul.f32 %v3330_v0, %v4268_v63  ;;  %v4273_v34 = vpop.f32.mrb[13].mxu1 }
 0x2af   : > { %v3333_v3 = vpop.f32.mrb[14].mxu1 }
 0x2b0   : > { %v4276_v2 = vmul.f32 %v3333_v3, %v4268_v63  ;;  %v1321_v35 = vpop.f32.mrb[15].mxu1 }
 0x2b1   : > { %v4279_v36 = vmul.f32 %v4268_v63, %v1321_v35 }
 0x2b5   : > { %v3336_v37 = vpop.f32.mrb[16].mxu1 }
 0x2b6   : > { %v4282_v38 = vmul.f32 %v3336_v37, %v4268_v63  ;;  %v4284_v39 = vpop.f32.mrb[17].mxu1  ;;  %v3867_v37 = vmov 65535  }
 0x2b9   : > { %v1618_v42 = vpop.f32.mrb[20].mxu1 }
 0x2ba   : > { %v3343_v44 = vpop.f32.mrb[21].mxu1  ;;  %v1619_v46 = vadd.f32 %v3094_v41, %v1618_v42 }
 0x2bb   : > { %v1621_v45 = vpop.f32.mrb[22].mxu1 }
 0x2bc   : > { %v1622_v47 = vadd.f32 %v3094_v41, %v1621_v45  ;;  %v3344_v48 = vpop.f32.mrb[23].mxu1 }
 0x2be   : > { %v4289_v49 = vpack.c.bf16 %v1622_v47, %v1619_v46 }
 0x2c0   : > { %1647 = vrot.lane.b32.xlu0 %v4289_v49, %s3857_s21 }
 0x2c1   : > { %v1626_v50 = vpop.f32.mrb[24].mxu1 }
 0x2c2   : > { %v3347_v51 = vpop.f32.mrb[25].mxu1  ;;  %v1627_v54 = vadd.f32 %v3094_v41, %v1626_v50 }
 0x2c3   : > { %v1629_v53 = vpop.f32.mrb[26].mxu1 }
 0x2c4   : > { %v1630_v56 = vadd.f32 %v3094_v41, %v1629_v53  ;;  %v3348_v57 = vpop.f32.mrb[27].mxu1 }
 0x2c6   : > { %v4292_v58 = vpack.c.bf16 %v1630_v56, %v1627_v54 }
 0x2c8   : > { %1893 = vrot.lane.b32.xlu0 %v4292_v58, %s3858_s22  ;;  %1649 = vrot.lane.b32.xlu1 %v4292_v58, %s3857_s21 }
 0x2c9   : > { %v1634_v29 = vpop.f32.mrb[28].mxu1 }
 0x2ca   : > { %v3351_v59 = vpop.f32.mrb[29].mxu1  ;;  %v1635_v1 = vadd.f32 %v3094_v41, %v1634_v29 }
 0x2cb   : > { %v1637_v62 = vpop.f32.mrb[30].mxu1 }
 0x2cc   : > { %v1638_v4 = vadd.f32 %v3094_v41, %v1637_v62  ;;  %1885 = vrot.lane.b32.xlu0 %v4289_v49, %s3859_s23  ;;  %v3352_v6 = vpop.f32.mrb[31].mxu1  ;;  %v1823_v41 = vsel %vm1821_vm4, 4294967295, %v3867_v37 }
 0x2cd   : > { %v4366_v45 = vsel %vm1822_vm5, %v1823_v41, 0 }
 0x2ce   : > { %v4297_v7 = vpack.c.bf16 %v1638_v4, %v1635_v1 }
 0x2d0   : > { %1887 = vrot.lane.b32.xlu0 %v4292_v58, %s3859_s23  ;;  %1651 = vrot.lane.b32.xlu1 %v4297_v7, %s3857_s21 }
 0x2d4   : > { %1889 = vrot.lane.b32.xlu0 %v4297_v7, %s3859_s23  ;;  %1891 = vrot.lane.b32.xlu1 %v4289_v49, %s3858_s22  ;;  %s3871_s23 = smov 24  }
 0x2d8   : > { %2124 = vrot.lane.b32.xlu0 %v4289_v49, %s3860_s24  ;;  %1895 = vrot.lane.b32.xlu1 %v4297_v7, %s3858_s22  ;;  %s3870_s22 = smov 16  }
 0x2dc   : > { %2126 = vrot.lane.b32.xlu0 %v4292_v58, %s3860_s24  ;;  %2130 = vrot.lane.b32.xlu1 %v4289_v49, %s3861_s30 }
 0x2e0   : > { %2128 = vrot.lane.b32.xlu0 %v4297_v7, %s3860_s24  ;;  %2132 = vrot.lane.b32.xlu1 %v4292_v58, %s3861_s30 }
 0x2e4   : > { %2363 = vrot.lane.b32.xlu0 %v4289_v49, %s3862_s25  ;;  %2134 = vrot.lane.b32.xlu1 %v4297_v7, %s3861_s30 }
 0x2e8   : > { %2367 = vrot.lane.b32.xlu0 %v4297_v7, %s3862_s25  ;;  %2369 = vrot.lane.b32.xlu1 %v4289_v49, %s3863_s26 }
 0x2ec   : > { %1806 = vrot.lane.b32.xlu0 %v4292_v58, %s3864_s27  ;;  %2371 = vrot.lane.b32.xlu1 %v4292_v58, %s3863_s26 }
 0x2f0   : > { %2047 = vrot.lane.b32.xlu0 %v4289_v49, %s3865_s28  ;;  %2373 = vrot.lane.b32.xlu1 %v4297_v7, %s3863_s26 }
 0x2f4   : > { %2365 = vrot.lane.b32.xlu1 %v4292_v58, %s3862_s25 }
 0x2f8   : > { %1804 = vrot.lane.b32.xlu1 %v4289_v49, %s3864_s27 }
 0x2fc   : > { %2049 = vrot.lane.b32.xlu1 %v4292_v58, %s3865_s28 }
 0x300   : > { %2286 = vrot.lane.b32.xlu1 %v4289_v49, %s3866_s29 }
 0x304   : > { %1808 = vrot.lane.b32.xlu1 %v4297_v7, %s3864_s27 }
 0x308   : > { %2051 = vrot.lane.b32.xlu1 %v4297_v7, %s3865_s28 }
 0x332   : > { %v1648_v31 = vpop.permute.xlu0 %1647 }
 0x333   : > { %v1664_v8 = vsel %vm1653_vm2, %v1648_v31, 0 }
 0x334   : > { %3354 = vmatpush3.bf16.xpose.msra.mxu0 %v1664_v8 }
 0x335   : > { %3355 = vmatprep.subr.bf16.mxu0 %v3855_v5 }
 0x33a   : > { %v1894_v9 = vpop.permute.xlu0 %1893  ;;  %v1650_v10 = vpop.permute.xlu1 %1649 }
 0x33b   : > { %v1667_v11 = vsel %vm1653_vm2, %v1650_v10, 0  ;;  %v1910_v21 = vsel %vm1653_vm2, %v1894_v9, 0 }
 0x33c   : > { %3356 = vmatpush3.bf16.xpose.msra.mxu0 %v1667_v11 }
 0x33d   : > { %3357 = vmatprep.subr.bf16.mxu0 %v3855_v5 }
 0x33e   : > { %v1886_v12 = vpop.permute.xlu0 %1885 }
 0x342   : > { %v1652_v13 = vpop.permute.xlu1 %1651  ;;  %v1888_v14 = vpop.permute.xlu0 %1887 }
 0x343   : > { %v1670_v40 = vsel %vm1653_vm2, %v1652_v13, 0 }
 0x344   : > { %3358 = vmatpush3.bf16.xpose.msra.mxu0 %v1670_v40 }
 0x345   : > { %3389 = vmatprep.subr.bf16.mxu0 %v3855_v5 }
 0x346   : > { %v1892_v15 = vpop.permute.xlu1 %1891  ;;  %v1890_v16 = vpop.permute.xlu0 %1889 }
 0x347   : > { %v1907_v18 = vsel %vm1653_vm2, %v1892_v15, 0 }
 0x34a   : > { %v1896_v17 = vpop.permute.xlu1 %1895  ;;  %v2125_v20 = vpop.permute.xlu0 %2124 }
 0x34b   : > { %3360 = vmatmul.mubr.msk.bf16.vlgmr.msra.gmra.mrb[24].mxu0 %vm1653_vm2, %v4289_v49  ;;  %v1913_v24 = vsel %vm1653_vm2, %v1896_v17, 0 }
 0x34c   : > { %3390 = vmatpush3.bf16.xpose.msra.mxu0 %v1907_v18  ;;  %3363 = vmatprep.mubr.msk.bf16.mxu0 %vm3856_vm3, %v3855_v5 }
 0x34d   : > { %3391 = vmatprep.subr.bf16.mxu0 %v3855_v5 }
 0x34e   : > { %v2131_v19 = vpop.permute.xlu1 %2130  ;;  %v2127_v22 = vpop.permute.xlu0 %2126 }
 0x34f   : > { %v2146_v27 = vsel %vm1653_vm2, %v2131_v19, 0 }
 0x352   : > { %v2133_v43 = vpop.permute.xlu1 %2132  ;;  %v2129_v25 = vpop.permute.xlu0 %2128 }
 0x353   : > { %3364 = vmatmul.mubr.msk.bf16.gmra.mrb[28].mxu0 %vm1653_vm2, %v4292_v58  ;;  %v2149_v0 = vsel %vm1653_vm2, %v2133_v43, 0 }
 0x354   : > { %3392 = vmatpush3.bf16.xpose.msra.mxu0 %v1910_v21  ;;  %3367 = vmatprep.mubr.msk.bf16.mxu0 %vm3856_vm3, %v3855_v5 }
 0x355   : > { %3393 = vmatprep.subr.bf16.mxu0 %v3855_v5 }
 0x356   : > { %v2135_v23 = vpop.permute.xlu1 %2134  ;;  %v2364_v55 = vpop.permute.xlu0 %2363 }
 0x357   : > { %v2152_v44 = vsel %vm1653_vm2, %v2135_v23, 0 }
 0x35a   : > { %v2370_v52 = vpop.permute.xlu1 %2369  ;;  %v2368_v30 = vpop.permute.xlu0 %2367 }
 0x35b   : > { %3368 = vmatmul.mubr.msk.bf16.gmra.mrb[32].mxu0 %vm1653_vm2, %v4297_v7  ;;  %v2385_v48 = vsel %vm1653_vm2, %v2370_v52, 0 }
 0x35c   : > { %3394 = vmatpush3.bf16.xpose.msra.mxu0 %v1913_v24  ;;  %3395 = vmatprep.mubr.msk.bf16.mxu0 %vm3856_vm3, %v3855_v5 }
 0x35d   : > { %3425 = vmatprep.subr.bf16.mxu0 %v3855_v5 }
 0x35e   : > { %v2372_v61 = vpop.permute.xlu1 %2371  ;;  %v1807_v3 = vpop.permute.xlu0 %1806 }
 0x35f   : > { %v2388_v50 = vsel %vm1653_vm2, %v2372_v61, 0 }
 0x362   : > { %v2374_v60 = vpop.permute.xlu1 %2373 }
 0x363   : > { %3396 = vmatmul.mubr.msk.bf16.vlgmr.msra.gmra.mrb[36].mxu0 %vm1653_vm2, %v1886_v12  ;;  %v2391_v51 = vsel %vm1653_vm2, %v2374_v60, 0 }
 0x364   : > { %3426 = vmatpush3.bf16.xpose.msra.mxu0 %v2146_v27  ;;  %3399 = vmatprep.mubr.msk.bf16.mxu0 %vm3856_vm3, %v3855_v5 }
 0x365   : > { %3427 = vmatprep.subr.bf16.mxu0 %v3855_v5 }
 0x366   : > { %v2366_v28 = vpop.permute.xlu1 %2365 }
 0x36a   : > { %v1805_v32 = vpop.permute.xlu1 %1804 }
 0x36b   : > { %3372 = vmatpush3.bf16.msra.mxu1 %v1805_v32  ;;  %3400 = vmatmul.mubr.msk.bf16.gmra.mrb[40].mxu0 %vm1653_vm2, %v1888_v14 }
 0x36c   : > { %3428 = vmatpush3.bf16.xpose.msra.mxu0 %v2149_v0  ;;  %3373 = vmatprep.subr.bf16.mxu1 %v3855_v5 }
 0x36d   : > { %3403 = vmatprep.mubr.msk.bf16.mxu0 %vm3856_vm3, %v3855_v5  ;;  %3429 = vmatprep.subr.bf16.mxu0 %v3855_v5 }
 0x36e   : > { %v4359_v35 = vpop.permute.xlu1 %2049 }
 0x36f   : > { %3374 = vmatpush3.bf16.msra.mxu1 %v1807_v3 }
 0x370   : > { %3375 = vmatprep.subr.bf16.mxu1 %v3855_v5 }
 0x372   : > { %v4362_v42 = vpop.permute.xlu1 %2286 }
 0x373   : > { %3404 = vmatmul.mubr.msk.bf16.gmra.mrb[44].mxu0 %vm1653_vm2, %v1890_v16 }
 0x374   : > { %3430 = vmatpush3.bf16.xpose.msra.mxu0 %v2152_v44  ;;  %3431 = vmatprep.mubr.msk.bf16.mxu0 %vm3856_vm3, %v3855_v5 }
 0x375   : > { %3461 = vmatprep.subr.bf16.mxu0 %v3855_v5 }
 0x376   : > { %v1809_v46 = vpop.permute.xlu1 %1808 }
 0x377   : > { %v1826_v47 = vand.u32 %v4366_v45, %v1809_v46 }
 0x379   : > { %3376 = vmatpush3.bf16.msra.mxu1 %v1826_v47 }
 0x37a   : > { %3407 = vmatprep.subr.bf16.mxu1 %v3855_v5 }
 0x37b   : > { %3432 = vmatmul.mubr.msk.bf16.vlgmr.msra.gmra.mrb[48].mxu0 %vm1653_vm2, %v2125_v20 }
 0x37c   : > { %3462 = vmatpush3.bf16.xpose.msra.mxu0 %v2385_v48  ;;  %3435 = vmatprep.mubr.msk.bf16.mxu0 %vm3856_vm3, %v3855_v5 }
 0x37d   : > { %3463 = vmatprep.subr.bf16.mxu0 %v3855_v5 }
 0x383   : > { %3436 = vmatmul.mubr.msk.bf16.gmra.mrb[52].mxu0 %vm1653_vm2, %v2127_v22 }
 0x384   : > { %3464 = vmatpush3.bf16.xpose.msra.mxu0 %v2388_v50  ;;  %3439 = vmatprep.mubr.msk.bf16.mxu0 %vm3856_vm3, %v3855_v5 }
 0x385   : > { %3465 = vmatprep.subr.bf16.mxu0 %v3855_v5 }
 0x38b   : > { %3440 = vmatmul.mubr.msk.bf16.gmra.mrb[56].mxu0 %vm1653_vm2, %v2129_v25 }
 0x38c   : > { %3466 = vmatpush3.bf16.xpose.msra.mxu0 %v2391_v51  ;;  %3467 = vmatprep.mubr.msk.bf16.mxu0 %vm3856_vm3, %v3855_v5 }
 0x38d   : > { %3497 = vmatprep.subr.bf16.mxu0 %v3855_v5 }
 0x393   : > { %3468 = vmatmul.mubr.msk.bf16.vlgmr.msra.gmra.mrb[60].mxu0 %vm1653_vm2, %v2364_v55 }
 0x394   : > { %3471 = vmatprep.mubr.msk.bf16.mxu0 %vm3856_vm3, %v3855_v5 }
 0x39b   : > { %3472 = vmatmul.mubr.msk.bf16.gmra.mrb[64].mxu0 %vm1653_vm2, %v2366_v28 }
 0x39c   : > { %3475 = vmatprep.mubr.msk.bf16.mxu0 %vm3856_vm3, %v3855_v5 }
 0x3a3   : > { %3476 = vmatmul.mubr.msk.bf16.gmra.mrb[68].mxu0 %vm1653_vm2, %v2368_v30 }
 0x3a4   : > { %3501 = vmatprep.mubr.msk.bf16.mxu0 %vm3856_vm3, %v3855_v5 }
 0x41e   : > { %v1706_v53 = vpop.f32.mrb[24].mxu0 }
 0x41f   : > { %v4397_v54 = vmul.f32 0.35355338, %v1706_v53  ;;  %v3361_v56 = vpop.f32.mrb[25].mxu0 }
 0x420   : > { %v1709_v57 = vpop.f32.mrb[26].mxu0 }
 0x421   : > { %v4399_v29 = vmul.f32 0.35355338, %v1709_v57  ;;  %v3362_v59 = vpop.f32.mrb[27].mxu0  ;;  %v1735_v62 = vsel %vm1374_vm6, %v4397_v54, -inf }
 0x422   : > { %1736 = vmax.xlane.f32.xlu1 %v1735_v62 }
 0x423   : > { %v1738_v1 = vsel %vm1374_vm6, %v4399_v29, -inf }
 0x424   : > { %1739 = vmax.xlane.f32.xlu0 %v1738_v1 }
 0x426   : > { %v1714_v4 = vpop.f32.mrb[28].mxu0 }
 0x427   : > { %v4405_v6 = vmul.f32 0.35355338, %v1714_v4  ;;  %v3365_v31 = vpop.f32.mrb[29].mxu0 }
 0x428   : > { %v1717_v8 = vpop.f32.mrb[30].mxu0 }
 0x429   : > { %v4407_v9 = vmul.f32 0.35355338, %v1717_v8  ;;  %v3366_v10 = vpop.f32.mrb[31].mxu0  ;;  %v1741_v11 = vsel %vm1374_vm6, %v4405_v6, -inf }
 0x42a   : > { %1742 = vmax.xlane.f32.xlu0 %v1741_v11 }
 0x42b   : > { %v1744_v12 = vsel %vm1374_vm6, %v4407_v9, -inf }
 0x42e   : > { %1745 = vmax.xlane.f32.xlu0 %v1744_v12  ;;  %v1722_v13 = vpop.f32.mrb[32].mxu0 }
 0x42f   : > { %v4413_v40 = vmul.f32 0.35355338, %v1722_v13  ;;  %v3369_v14 = vpop.f32.mrb[33].mxu0 }
 0x430   : > { %v1725_v15 = vpop.f32.mrb[34].mxu0 }
 0x431   : > { %v4415_v16 = vmul.f32 0.35355338, %v1725_v15  ;;  %v3370_v17 = vpop.f32.mrb[35].mxu0  ;;  %v1747_v18 = vsel %vm1374_vm6, %v4413_v40, -inf }
 0x432   : > { %1748 = vmax.xlane.f32.xlu1 %v1747_v18 }
 0x433   : > { %v1750_v19 = vsel %vm1390_vm7, %v4415_v16, -inf }
 0x434   : > { %1751 = vmax.xlane.f32.xlu0 %v1750_v19 }
 0x436   : > { %v1949_v20 = vpop.f32.mrb[36].mxu0 }
 0x437   : > { %v4421_v43 = vmul.f32 0.35355338, %v1949_v20  ;;  %v3397_v21 = vpop.f32.mrb[37].mxu0 }
 0x438   : > { %v1952_v22 = vpop.f32.mrb[38].mxu0 }
 0x439   : > { %v4423_v23 = vmul.f32 0.35355338, %v1952_v22  ;;  %v3398_v52 = vpop.f32.mrb[39].mxu0  ;;  %v1978_v24 = vsel %vm1374_vm6, %v4421_v43, -inf }
 0x43a   : > { %1979 = vmax.xlane.f32.xlu1 %v1978_v24 }
 0x43b   : > { %v1981_v25 = vsel %vm1374_vm6, %v4423_v23, -inf }
 0x43c   : > { %1982 = vmax.xlane.f32.xlu0 %v1981_v25 }
 0x43e   : > { %v1957_v61 = vpop.f32.mrb[40].mxu0 }
 0x43f   : > { %v4429_v55 = vmul.f32 0.35355338, %v1957_v61  ;;  %v3401_v60 = vpop.f32.mrb[41].mxu0 }
 0x440   : > { %v1960_v27 = vpop.f32.mrb[42].mxu0 }
 0x441   : > { %v4431_v28 = vmul.f32 0.35355338, %v1960_v27  ;;  %v3402_v30 = vpop.f32.mrb[43].mxu0  ;;  %v1984_v32 = vsel %vm1374_vm6, %v4429_v55, -inf }
 0x442   : > { %1985 = vmax.xlane.f32.xlu1 %v1984_v32 }
 0x443   : > { %v1987_v0 = vsel %vm1374_vm6, %v4431_v28, -inf }
 0x444   : > { %1988 = vmax.xlane.f32.xlu0 %v1987_v0 }
 0x446   : > { %v1965_v3 = vpop.f32.mrb[44].mxu0 }
 0x447   : > { %v4437_v37 = vmul.f32 0.35355338, %v1965_v3  ;;  %v3405_v41 = vpop.f32.mrb[45].mxu0 }
 0x448   : > { %v1968_v44 = vpop.f32.mrb[46].mxu0 }
 0x449   : > { %v4439_v46 = vmul.f32 0.35355338, %v1968_v44  ;;  %v3406_v47 = vpop.f32.mrb[47].mxu0  ;;  %v1990_v48 = vsel %vm1374_vm6, %v4437_v37, -inf }
 0x44a   : > { %1991 = vmax.xlane.f32.xlu1 %v1990_v48 }
 0x44b   : > { %v1993_v50 = vsel %vm1390_vm7, %v4439_v46, -inf }
 0x44c   : > { %1994 = vmax.xlane.f32.xlu0 %v1993_v50 }
 0x44e   : > { %v2188_v51 = vpop.f32.mrb[48].mxu0 }
 0x44f   : > { %v4445_v53 = vmul.f32 0.35355338, %v2188_v51  ;;  %v3433_v56 = vpop.f32.mrb[49].mxu0 }
 0x450   : > { %v2191_v57 = vpop.f32.mrb[50].mxu0 }
 0x451   : > { %v4447_v59 = vmul.f32 0.35355338, %v2191_v57  ;;  %v3434_v62 = vpop.f32.mrb[51].mxu0  ;;  %v2217_v1 = vsel %vm1374_vm6, %v4445_v53, -inf }
 0x452   : > { %2218 = vmax.xlane.f32.xlu1 %v2217_v1 }
 0x453   : > { %v2220_v4 = vsel %vm1374_vm6, %v4447_v59, -inf }
 0x454   : > { %2221 = vmax.xlane.f32.xlu0 %v2220_v4 }
 0x456   : > { %v2196_v31 = vpop.f32.mrb[52].mxu0 }
 0x457   : > { %v4453_v8 = vmul.f32 0.35355338, %v2196_v31  ;;  %v3437_v10 = vpop.f32.mrb[53].mxu0 }
 0x458   : > { %v2199_v11 = vpop.f32.mrb[54].mxu0 }
 0x459   : > { %v4455_v12 = vmul.f32 0.35355338, %v2199_v11  ;;  %v3438_v13 = vpop.f32.mrb[55].mxu0  ;;  %v2223_v14 = vsel %vm1374_vm6, %v4453_v8, -inf }
 0x45a   : > { %2224 = vmax.xlane.f32.xlu1 %v2223_v14 }
 0x45b   : > { %v2226_v15 = vsel %vm1374_vm6, %v4455_v12, -inf }
 0x45c   : > { %2227 = vmax.xlane.f32.xlu0 %v2226_v15  ;;  %v4493_v15 = vpop.permute.xlu1 %2051 }
 0x45e   : > { %v2204_v17 = vpop.f32.mrb[56].mxu0 }
 0x45f   : > { %v4461_v18 = vmul.f32 0.35355338, %v2204_v17  ;;  %v3441_v19 = vpop.f32.mrb[57].mxu0  ;;  %v4495_v17 = vpop.permute.xlu0 %2047 }
 0x460   : > { %v2207_v20 = vpop.f32.mrb[58].mxu0 }
 0x461   : > { %v4463_v21 = vmul.f32 0.35355338, %v2207_v20  ;;  %v3442_v22 = vpop.f32.mrb[59].mxu0  ;;  %v2229_v52 = vsel %vm1374_vm6, %v4461_v18, -inf }
 0x462   : > { %2230 = vmax.xlane.f32.xlu1 %v2229_v52 }
 0x463   : > { %v2232_v24 = vsel %vm1390_vm7, %v4463_v21, -inf }
 0x464   : > { %2233 = vmax.xlane.f32.xlu0 %v2232_v24 }
 0x466   : > { %v2427_v25 = vpop.f32.mrb[60].mxu0 }
 0x467   : > { %v4469_v61 = vmul.f32 0.35355338, %v2427_v25  ;;  %v3469_v60 = vpop.f32.mrb[61].mxu0 }
 0x468   : > { %v2430_v27 = vpop.f32.mrb[62].mxu0 }
 0x469   : > { %v4471_v30 = vmul.f32 0.35355338, %v2430_v27  ;;  %v3470_v32 = vpop.f32.mrb[63].mxu0  ;;  %v2456_v0 = vsel %vm1374_vm6, %v4469_v61, -inf }
 0x46a   : > { %2457 = vmax.xlane.f32.xlu1 %v2456_v0 }
 0x46b   : > { %v2459_v3 = vsel %vm1374_vm6, %v4471_v30, -inf }
 0x46c   : > { %2460 = vmax.xlane.f32.xlu0 %v2459_v3 }
 0x46e   : > { %v2435_v41 = vpop.f32.mrb[64].mxu0 }
 0x46f   : > { %v4477_v44 = vmul.f32 0.35355338, %v2435_v41  ;;  %v3473_v47 = vpop.f32.mrb[65].mxu0 }
 0x470   : > { %v2438_v48 = vpop.f32.mrb[66].mxu0 }
 0x471   : > { %v4479_v50 = vmul.f32 0.35355338, %v2438_v48  ;;  %v3474_v51 = vpop.f32.mrb[67].mxu0  ;;  %v2462_v56 = vsel %vm1374_vm6, %v4477_v44, -inf }
 0x472   : > { %2463 = vmax.xlane.f32.xlu1 %v2462_v56 }
 0x473   : > { %v2465_v57 = vsel %vm1374_vm6, %v4479_v50, -inf }
 0x474   : > { %2466 = vmax.xlane.f32.xlu0 %v2465_v57 }
 0x476   : > { %v2443_v62 = vpop.f32.mrb[68].mxu0 }
 0x477   : > { %v4485_v1 = vmul.f32 0.35355338, %v2443_v62  ;;  %v3477_v4 = vpop.f32.mrb[69].mxu0 }
 0x478   : > { %v2446_v31 = vpop.f32.mrb[70].mxu0 }
 0x479   : > { %v4487_v10 = vmul.f32 0.35355338, %v2446_v31  ;;  %v3478_v11 = vpop.f32.mrb[71].mxu0  ;;  %v2468_v13 = vsel %vm1374_vm6, %v4485_v1, -inf }
 0x47a   : > { %2469 = vmax.xlane.f32.xlu1 %v2468_v13 }
 0x47b   : > { %v2471_v14 = vsel %vm1390_vm7, %v4487_v10, -inf }
 0x47c   : > { %2472 = vmax.xlane.f32.xlu0 %v2471_v14 }
 0x4af   : > { %v1737_v19 = vpop.xlane.xlu1 %1736 }
 0x4b0   : > { %v1753_v20 = vsub.f32 %v4397_v54, %v1737_v19 }
 0x4b1   : > { %v1740_v22 = vpop.xlane.xlu0 %1739 }
 0x4b2   : > { %v1759_v52 = vmul.f32 1.442695, %v1753_v20  ;;  %v1754_v24 = vsub.f32 %v4399_v29, %v1740_v22 }
 0x4b4   : > { %3709 = vpow2.f32 %v1759_v52  ;;  %v1761_v25 = vmul.f32 1.442695, %v1754_v24 }
 0x4b6   : > { %3711 = vpow2.f32 %v1761_v25 }
 0x4b7   : > { %v1743_v60 = vpop.xlane.xlu0 %1742 }
 0x4b8   : > { %v1755_v27 = vsub.f32 %v4405_v6, %v1743_v60 }
 0x4ba   : > { %v1763_v32 = vmul.f32 1.442695, %v1755_v27 }
 0x4bb   : > { %v1746_v0 = vpop.xlane.xlu0 %1745 }
 0x4bc   : > { %3713 = vpow2.f32 %v1763_v32  ;;  %v1756_v3 = vsub.f32 %v4407_v9, %v1746_v0 }
 0x4be   : > { %v4501_v41 = vpop.eup %3709  ;;  %v1765_v47 = vmul.f32 1.442695, %v1756_v3 }
 0x4bf   : > { %v1749_v48 = vpop.xlane.xlu1 %1748  ;;  %v1771_v54 = vsel %vm1374_vm6, %v4501_v41, 0.0 }
 0x4c0   : > { %v4505_v51 = vpop.eup %3711  ;;  %3715 = vpow2.f32 %v1765_v47  ;;  %v1757_v29 = vsub.f32 %v4413_v40, %v1749_v48  ;;  %1772 = vadd.xlane.f32.xlu1 %v1771_v54 }
 0x4c1   : > { %v1752_v56 = vpop.xlane.xlu0 %1751  ;;  %v1774_v6 = vsel %vm1374_vm6, %v4505_v51, 0.0 }
 0x4c2   : > { %v1767_v57 = vmul.f32 1.442695, %v1757_v29  ;;  %v1758_v9 = vsub.f32 %v4415_v16, %v1752_v56  ;;  %1775 = vadd.xlane.f32.xlu0 %v1774_v6 }
 0x4c4   : > { %3717 = vpow2.f32 %v1767_v57  ;;  %v1769_v62 = vmul.f32 1.442695, %v1758_v9 }
 0x4c6   : > { %v4511_v4 = vpop.eup %3713  ;;  %3719 = vpow2.f32 %v1769_v62 }
 0x4c7   : > { %v1777_v31 = vsel %vm1374_vm6, %v4511_v4, 0.0  ;;  %v1980_v20 = vpop.xlane.xlu1 %1979 }
 0x4c8   : > { %1778 = vadd.xlane.f32.xlu1 %v1777_v31  ;;  %v1996_v25 = vsub.f32 %v4421_v43, %v1980_v20 }
 0x4c9   : > { %v1983_v22 = vpop.xlane.xlu0 %1982 }
 0x4ca   : > { %v4515_v11 = vpop.eup %3715  ;;  %v1997_v32 = vsub.f32 %v4423_v23, %v1983_v22  ;;  %v2002_v0 = vmul.f32 1.442695, %v1996_v25 }
 0x4cb   : > { %v1780_v40 = vsel %vm1374_vm6, %v4515_v11, 0.0 }
 0x4cc   : > { %1781 = vadd.xlane.f32.xlu0 %v1780_v40  ;;  %v2004_v54 = vmul.f32 1.442695, %v1997_v32  ;;  %3721 = vpow2.f32 %v2002_v0 }
 0x4ce   : > { %v4519_v13 = vpop.eup %3717  ;;  %3723 = vpow2.f32 %v2004_v54 }
 0x4cf   : > { %v1783_v16 = vsel %vm1374_vm6, %v4519_v13, 0.0  ;;  %v1986_v52 = vpop.xlane.xlu1 %1985 }
 0x4d0   : > { %v4523_v14 = vpop.eup %3719  ;;  %1784 = vadd.xlane.f32.xlu1 %v1783_v16  ;;  %v1998_v29 = vsub.f32 %v4429_v55, %v1986_v52 }
 0x4d1   : > { %v1786_v19 = vsel %vm1390_vm7, %v4523_v14, 0.0  ;;  %v1989_v24 = vpop.xlane.xlu0 %1988 }
 0x4d2   : > { %1787 = vadd.xlane.f32.xlu0 %v1786_v19  ;;  %v1999_v3 = vsub.f32 %v4431_v28, %v1989_v24  ;;  %v2006_v43 = vmul.f32 1.442695, %v1998_v29 }
 0x4d4   : > { %v2008_v56 = vmul.f32 1.442695, %v1999_v3 }
 0x4d6   : > { %3725 = vpow2.f32 %v2008_v56  ;;  %v4540_v52 = vpop.eup %3721 }
 0x4d7   : > { %v1992_v60 = vpop.xlane.xlu1 %1991  ;;  %3727 = vpow2.f32 %v2006_v43 }
 0x4d8   : > { %v2000_v62 = vsub.f32 %v4437_v37, %v1992_v60  ;;  %v4543_v25 = vpop.eup %3723 }
 0x4d9   : > { %v1995_v27 = vpop.xlane.xlu0 %1994 }
 0x4da   : > { %v2001_v6 = vsub.f32 %v4439_v46, %v1995_v27  ;;  %v2010_v16 = vmul.f32 1.442695, %v2000_v62 }
 0x4dc   : > { %v2012_v23 = vmul.f32 1.442695, %v2001_v6 }
 0x4de   : > { %3729 = vpow2.f32 %v2012_v23 }
 0x4df   : > { %v2219_v47 = vpop.xlane.xlu1 %2218  ;;  %3731 = vpow2.f32 %v2010_v16 }
 0x4e0   : > { %v2235_v31 = vsub.f32 %v4445_v53, %v2219_v47  ;;  %v4548_v32 = vpop.eup %3725 }
 0x4e1   : > { %2290 = vrot.lane.b32.xlu1 %v4297_v7, %s3866_s29  ;;  %v2222_v48 = vpop.xlane.xlu0 %2221  ;;  %v4553_v3 = vpop.eup %3727 }
 0x4e2   : > { %v2236_v55 = vsub.f32 %v4447_v59, %v2222_v48  ;;  %v2241_v19 = vmul.f32 1.442695, %v2235_v31  ;;  %v2014_v59 = vsel %vm1374_vm6, %v4540_v52, 0.0  ;;  %v2023_v48 = vsel %vm1374_vm6, %v4548_v32, 0.0 }
 0x4e3   : > { %v2020_v56 = vsel %vm1374_vm6, %v4553_v3, 0.0 }
 0x4e4   : > { %v2243_v37 = vmul.f32 1.442695, %v2236_v55  ;;  %3733 = vpow2.f32 %v2241_v19 }
 0x4e6   : > { %3735 = vpow2.f32 %v2243_v37 }
 0x4e7   : > { %v2225_v57 = vpop.xlane.xlu1 %2224 }
 0x4e8   : > { %2288 = vrot.lane.b32.xlu0 %v4292_v58, %s3866_s29  ;;  %v2237_v24 = vsub.f32 %v4453_v8, %v2225_v57  ;;  %v2017_v8 = vsel %vm1374_vm6, %v4543_v25, 0.0  ;;  %v4558_v54 = vpop.eup %3729 }
 0x4e9   : > { %v2228_v9 = vpop.xlane.xlu0 %2227  ;;  %v4563_v6 = vpop.eup %3731 }
 0x4ea   : > { %v2238_v0 = vsub.f32 %v4455_v12, %v2228_v9  ;;  %v2026_v23 = vsel %vm1374_vm6, %v4563_v6, 0.0 }
 0x4ec   : > { %v2247_v29 = vmul.f32 1.442695, %v2238_v0 }
 0x4ee   : > { %v4567_v9 = vpop.eup %3733 }
 0x4ef   : > { %v2231_v28 = vpop.xlane.xlu1 %2230 }
 0x4f0   : > { %v2239_v46 = vsub.f32 %v4461_v18, %v2231_v28  ;;  %v2245_v18 = vmul.f32 1.442695, %v2237_v24  ;;  %v4572_v31 = vpop.eup %3735  ;;  %v2253_v28 = vsel %vm1374_vm6, %v4567_v9, 0.0 }
 0x4f1   : > { %v2234_v40 = vpop.xlane.xlu0 %2233  ;;  %v2256_v19 = vsel %vm1374_vm6, %v4572_v31, 0.0 }
 0x4f2   : > { %v2249_v53 = vmul.f32 1.442695, %v2239_v46  ;;  %v2240_v12 = vsub.f32 %v4463_v21, %v2234_v40 }
 0x4f4   : > { %3737 = vpow2.f32 %v2249_v53  ;;  %v2251_v43 = vmul.f32 1.442695, %v2240_v12 }
 0x4f5   : > { %3739 = vpow2.f32 %v2245_v18 }
 0x4f7   : > { %v2458_v20 = vpop.xlane.xlu1 %2457 }
 0x4f8   : > { %v2474_v60 = vsub.f32 %v4469_v61, %v2458_v20 }
 0x4f9   : > { %v2461_v22 = vpop.xlane.xlu0 %2460 }
 0x4fa   : > { %v2480_v47 = vmul.f32 1.442695, %v2474_v60  ;;  %v2475_v62 = vsub.f32 %v4471_v30, %v2461_v22 }
 0x4fc   : > { %3741 = vpow2.f32 %v2480_v47  ;;  %v2482_v16 = vmul.f32 1.442695, %v2475_v62 }
 0x4fd   : > { %3743 = vpow2.f32 %v2247_v29 }
 0x4fe   : > { %v4576_v40 = vpop.eup %3737 }
 0x4ff   : > { %v2464_v21 = vpop.xlane.xlu1 %2463  ;;  %v4581_v46 = vpop.eup %3739  ;;  %v2265_v20 = vsel %vm1374_vm6, %v4576_v40, 0.0 }
 0x500   : > { %v2476_v55 = vsub.f32 %v4477_v44, %v2464_v21  ;;  %v2259_v44 = vsel %vm1374_vm6, %v4581_v46, 0.0 }
 0x501   : > { %v2467_v27 = vpop.xlane.xlu0 %2466 }
 0x502   : > { %v2477_v61 = vsub.f32 %v4479_v50, %v2467_v27  ;;  %v2029_v50 = vsel %vm1390_vm7, %v4558_v54, 0.0  ;;  %v2484_v37 = vmul.f32 1.442695, %v2476_v55 }
 0x504   : > { %v2486_v57 = vmul.f32 1.442695, %v2477_v61 }
 0x505   : > { %2015 = vadd.xlane.f32.xlu1 %v2014_v59 }
 0x506   : > { %3745 = vpow2.f32 %v2486_v57  ;;  %v4585_v22 = vpop.eup %3741 }
 0x507   : > { %2018 = vadd.xlane.f32.xlu0 %v2017_v8  ;;  %3747 = vpow2.f32 %v2251_v43  ;;  %v2470_v30 = vpop.xlane.xlu1 %2469  ;;  %v4590_v53 = vpop.eup %3743  ;;  %v2492_v60 = vsel %vm1374_vm6, %v4585_v22, 0.0 }
 0x508   : > { %3749 = vpow2.f32 %v2482_v16  ;;  %v2478_v24 = vsub.f32 %v4485_v1, %v2470_v30  ;;  %v2262_v18 = vsel %vm1374_vm6, %v4590_v53, 0.0 }
 0x509   : > { %2024 = vadd.xlane.f32.xlu1 %v2023_v48  ;;  %3751 = vpow2.f32 %v2484_v37  ;;  %v2473_v57 = vpop.xlane.xlu0 %2472 }
 0x50a   : > { %v2488_v59 = vmul.f32 1.442695, %v2478_v24 }
 0x50b   : > { %2021 = vadd.xlane.f32.xlu0 %v2020_v56 }
 0x50c   : > { %3753 = vpow2.f32 %v2488_v59 }
 0x50d   : > { %2030 = vadd.xlane.f32.xlu1 %v2029_v50  ;;  %v2479_v50 = vsub.f32 %v4487_v10, %v2473_v57 }
 0x50f   : > { %2027 = vadd.xlane.f32.xlu0 %v2026_v23  ;;  %v2490_v43 = vmul.f32 1.442695, %v2479_v50 }
 0x510   : > { %v4594_v27 = vpop.eup %3745 }
 0x511   : > { %2254 = vadd.xlane.f32.xlu1 %v2253_v28  ;;  %v4598_v0 = vpop.eup %3747  ;;  %v2501_v1 = vsel %vm1374_vm6, %v4594_v27, 0.0  ;;  %3755 = vpow2.f32 %v2490_v43 }
 0x512   : > { %v2268_v8 = vsel %vm1390_vm7, %v4598_v0, 0.0  ;;  %v4604_v47 = vpop.eup %3749 }
 0x513   : > { %2257 = vadd.xlane.f32.xlu0 %v2256_v19  ;;  %v2495_v61 = vsel %vm1374_vm6, %v4604_v47, 0.0  ;;  %v4608_v48 = vpop.eup %3751 }
 0x514   : > { %v2498_v29 = vsel %vm1374_vm6, %v4608_v48, 0.0 }
 0x515   : > { %2266 = vadd.xlane.f32.xlu1 %v2265_v20 }
 0x516   : > { %v4612_v12 = vpop.eup %3753 }
 0x517   : > { %2260 = vadd.xlane.f32.xlu0 %v2259_v44  ;;  %v2504_v56 = vsel %vm1374_vm6, %v4612_v12, 0.0 }
 0x519   : > { %2493 = vadd.xlane.f32.xlu1 %v2492_v60 }
 0x51b   : > { %2263 = vadd.xlane.f32.xlu0 %v2262_v18  ;;  %v4621_v21 = vpop.eup %3755 }
 0x51c   : > { %v2507_v28 = vsel %vm1390_vm7, %v4621_v21, 0.0 }
 0x51d   : > { %2502 = vadd.xlane.f32.xlu1 %v2501_v1 }
 0x51f   : > { %2269 = vadd.xlane.f32.xlu0 %v2268_v8 }
 0x523   : > { %2496 = vadd.xlane.f32.xlu0 %v2495_v61 }
 0x527   : > { %2499 = vadd.xlane.f32.xlu0 %v2498_v29 }
 0x52b   : > { %2505 = vadd.xlane.f32.xlu0 %v2504_v56 }
 0x52e   : > { %2527 = vrot.lane.b32.xlu1 %v4292_v58, %s3868_s15 }
 0x541   : > { %2525 = vrot.lane.b32.xlu0 %v4289_v49, %s3868_s15 }
 0x54d   : > { %v1773_v62 = vpop.xlane.xlu1 %1772 }
 0x54e   : > { %3757 = vrcp.f32 %v1773_v62 }
 0x54f   : > { %v1776_v23 = vpop.xlane.xlu0 %1775 }
 0x550   : > { %3759 = vrcp.f32 %v1776_v23 }
 0x552   : > { %2508 = vadd.xlane.f32.xlu1 %v2507_v28 }
 0x555   : > { %v1779_v16 = vpop.xlane.xlu1 %1778 }
 0x556   : > { %3761 = vrcp.f32 %v1779_v16 }
 0x558   : > { %v3758_v58 = vpop.eup %3757 }
 0x559   : > { %v1782_v55 = vpop.xlane.xlu0 %1781  ;;  %v1790_v30 = vmul.f32 %v3758_v58, %v4501_v41 }
 0x55a   : > { %v3760_v10 = vpop.eup %3759  ;;  %3763 = vrcp.f32 %v1782_v55 }
 0x55b   : > { %v1792_v49 = vmul.f32 %v3760_v10, %v4505_v51 }
 0x55d   : > { %v1801_v19 = vpack.c.bf16 %v1792_v49, %v1790_v30  ;;  %v1785_v20 = vpop.xlane.xlu1 %1784 }
 0x55e   : > { %3765 = vrcp.f32 %v1785_v20 }
 0x55f   : > { %v1788_v37 = vpop.xlane.xlu0 %1787  ;;  %3378 = vmatmul.mubr.msk.bf16.vlgmr.msra.gmra.mrb[32].mxu1 %vm1374_vm6, %v1801_v19 }
 0x560   : > { %3767 = vrcp.f32 %v1788_v37  ;;  %3408 = vmatpush3.bf16.msra.mxu1 %v4495_v17  ;;  %3381 = vmatprep.mubr.msk.bf16.mxu1 %vm3856_vm3, %v3855_v5  ;;  %v3762_v24 = vpop.eup %3761  ;;  %v2065_v17 = vand.u32 %v4493_v15, %v4366_v45 }
 0x561   : > { %3409 = vmatprep.subr.bf16.mxu1 %v3855_v5  ;;  %v1794_v51 = vmul.f32 %v3762_v24, %v4511_v4  ;;  %v2291_v15 = vpop.permute.xlu1 %2290 }
 0x562   : > { %v2304_v19 = vand.u32 %v2291_v15, %v4366_v45 }
 0x563   : > { %2529 = vrot.lane.b32.xlu1 %v4297_v7, %s3868_s15  ;;  %s492_s15 = scalar_lea.vmem %s4910_s13, %s4913_s18 }
 0x564   : > { %v3764_v41 = vpop.eup %3763  ;;  %3410 = vmatpush3.bf16.msra.mxu1 %v4359_v35 }
 0x565   : > { %3411 = vmatprep.subr.bf16.mxu1 %v3855_v5  ;;  %v1796_v44 = vmul.f32 %v3764_v41, %v4515_v11  ;;  %v2289_v11 = vpop.permute.xlu0 %2288 }
 0x567   : > { %v1802_v60 = vpack.c.bf16 %v1796_v44, %v1794_v51 }
 0x568   : > { %3412 = vmatpush3.bf16.msra.mxu1 %v2065_v17  ;;  %v3766_v59 = vpop.eup %3765 }
 0x569   : > { %3382 = vmatmul.mubr.msk.bf16.gmra.mrb[36].mxu1 %vm1374_vm6, %v1802_v60  ;;  %3443 = vmatprep.subr.bf16.mxu1 %v3855_v5  ;;  %v1798_v4 = vmul.f32 %v3766_v59, %v4519_v13 }
 0x56a   : > { %v3768_v7 = vpop.eup %3767  ;;  %3385 = vmatprep.mubr.msk.bf16.mxu1 %vm3856_vm3, %v3855_v5 }
 0x56b   : > { %v1800_v35 = vmul.f32 %v3768_v7, %v4523_v14 }
 0x56d   : > { %v1803_v18 = vpack.c.bf16 %v1800_v35, %v1798_v4 }
 0x571   : > { %3386 = vmatmul.mubr.msk.bf16.gmra.mrb[40].mxu1 %vm1374_vm6, %v1803_v18 }
 0x572   : > { %3413 = vmatprep.mubr.msk.bf16.mxu1 %vm3856_vm3, %v3855_v5 }
 0x592   : > { %v2016_v1 = vpop.xlane.xlu1 %2015 }
 0x593   : > { %3769 = vrcp.f32 %v2016_v1 }
 0x594   : > { %v2019_v8 = vpop.xlane.xlu0 %2018 }
 0x595   : > { %3771 = vrcp.f32 %v2019_v8 }
 0x596   : > { %v2025_v61 = vpop.xlane.xlu1 %2024 }
 0x598   : > { %v2022_v29 = vpop.xlane.xlu0 %2021 }
 0x599   : > { %3773 = vrcp.f32 %v2022_v29 }
 0x59a   : > { %3775 = vrcp.f32 %v2025_v61  ;;  %v2031_v43 = vpop.xlane.xlu1 %2030 }
 0x59c   : > { %v2028_v56 = vpop.xlane.xlu0 %2027 }
 0x59d   : > { %v3770_v14 = vpop.eup %3769  ;;  %3777 = vrcp.f32 %v2028_v56 }
 0x59e   : > { %v2033_v13 = vmul.f32 %v3770_v14, %v4540_v52  ;;  %3779 = vrcp.f32 %v2031_v43 }
 0x59f   : > { %v3772_v57 = vpop.eup %3771 }
 0x5a0   : > { %v2035_v50 = vmul.f32 %v3772_v57, %v4543_v25  ;;  %v2258_v62 = vpop.xlane.xlu0 %2257  ;;  %v2255_v25 = vpop.xlane.xlu1 %2254 }
 0x5a1   : > { %3781 = vrcp.f32 %v2258_v62 }
 0x5a2   : > { %v2044_v23 = vpack.c.bf16 %v2035_v50, %v2033_v13  ;;  %3783 = vrcp.f32 %v2255_v25 }
 0x5a3   : > { %v3774_v28 = vpop.eup %3773 }
 0x5a4   : > { %v2261_v16 = vpop.xlane.xlu0 %2260  ;;  %3414 = vmatmul.mubr.msk.bf16.vlgmr.msra.gmra.mrb[44].mxu1 %vm1374_vm6, %v2044_v23  ;;  %v3776_v58 = vpop.eup %3775  ;;  %v2037_v52 = vmul.f32 %v3774_v28, %v4553_v3 }
 0x5a5   : > { %3444 = vmatpush3.bf16.msra.mxu1 %v4362_v42  ;;  %3417 = vmatprep.mubr.msk.bf16.mxu1 %vm3856_vm3, %v3855_v5  ;;  %v2039_v10 = vmul.f32 %v3776_v58, %v4548_v32  ;;  %v2267_v3 = vpop.xlane.xlu1 %2266 }
 0x5a6   : > { %3445 = vmatprep.subr.bf16.mxu1 %v3855_v5 }
 0x5a7   : > { %v2045_v30 = vpack.c.bf16 %v2039_v10, %v2037_v52  ;;  %v3778_v49 = vpop.eup %3777 }
 0x5a8   : > { %v2264_v55 = vpop.xlane.xlu0 %2263  ;;  %v3780_v20 = vpop.eup %3779  ;;  %v2041_v32 = vmul.f32 %v3778_v49, %v4563_v6 }
 0x5a9   : > { %3446 = vmatpush3.bf16.msra.mxu1 %v2289_v11  ;;  %v2043_v24 = vmul.f32 %v3780_v20, %v4558_v54  ;;  %3785 = vrcp.f32 %v2264_v55  ;;  %v2494_v44 = vpop.xlane.xlu1 %2493 }
 0x5aa   : > { %3447 = vmatprep.subr.bf16.mxu1 %v3855_v5  ;;  %3787 = vrcp.f32 %v2261_v16 }
 0x5ab   : > { %v2046_v41 = vpack.c.bf16 %v2043_v24, %v2041_v32  ;;  %v3782_v51 = vpop.eup %3781 }
 0x5ac   : > { %v2270_v42 = vpop.xlane.xlu0 %2269  ;;  %3418 = vmatmul.mubr.msk.bf16.gmra.mrb[48].mxu1 %vm1374_vm6, %v2045_v30  ;;  %v3784_v60 = vpop.eup %3783  ;;  %v2274_v59 = vmul.f32 %v3782_v51, %v4572_v31 }
 0x5ad   : > { %3448 = vmatpush3.bf16.msra.mxu1 %v2304_v19  ;;  %3421 = vmatprep.mubr.msk.bf16.mxu1 %vm3856_vm3, %v3855_v5  ;;  %v2272_v6 = vmul.f32 %v3784_v60, %v4567_v9  ;;  %3789 = vrcp.f32 %v2270_v42  ;;  %v2503_v54 = vpop.xlane.xlu1 %2502 }
 0x5ae   : > { %3479 = vmatprep.subr.bf16.mxu1 %v3855_v5  ;;  %3791 = vrcp.f32 %v2267_v3 }
 0x5af   : > { %v2283_v35 = vpack.c.bf16 %v2274_v59, %v2272_v6 }
 0x5b0   : > { %v2497_v37 = vpop.xlane.xlu0 %2496 }
 0x5b1   : > { %v2528_v11 = vpop.permute.xlu1 %2527  ;;  %3793 = vrcp.f32 %v2497_v37 }
 0x5b2   : > { %3795 = vrcp.f32 %v2494_v44 }
 0x5b3   : > { %v3786_v4 = vpop.eup %3785 }
 0x5b4   : > { %v2500_v17 = vpop.xlane.xlu0 %2499  ;;  %3422 = vmatmul.mubr.msk.bf16.gmra.mrb[52].mxu1 %vm1374_vm6, %v2046_v41  ;;  %v3788_v15 = vpop.eup %3787  ;;  %v2278_v31 = vmul.f32 %v3786_v4, %v4590_v53 }
 0x5b5   : > { %3449 = vmatprep.mubr.msk.bf16.mxu1 %vm3856_vm3, %v3855_v5  ;;  %v2276_v9 = vmul.f32 %v3788_v15, %v4581_v46  ;;  %3797 = vrcp.f32 %v2500_v17  ;;  %v3677_v15 = vld [vmem:[%s4904_s7] sm:$0xff]  }
 0x5b6   : > { %3799 = vrcp.f32 %v2503_v54  ;;  %3498 = vmatpush3.bf16.msra.mxu0 %v3677_v15 }
 0x5b7   : > { %v2284_v1 = vpack.c.bf16 %v2278_v31, %v2276_v9  ;;  %v3790_v8 = vpop.eup %3789  ;;  %3499 = vmatprep.subr.bf16.mxu0 %v3855_v5 }
 0x5b8   : > { %v2506_v7 = vpop.xlane.xlu0 %2505  ;;  %v3792_v61 = vpop.eup %3791  ;;  %v2282_v29 = vmul.f32 %v3790_v8, %v4598_v0 }
 0x5b9   : > { %v2280_v56 = vmul.f32 %v3792_v61, %v4576_v40 }
 0x5bb   : > { %v2285_v14 = vpack.c.bf16 %v2282_v29, %v2280_v56  ;;  %v3794_v53 = vpop.eup %3793 }
 0x5bc   : > { %v2526_v18 = vpop.permute.xlu0 %2525  ;;  %3450 = vmatmul.mubr.msk.bf16.vlgmr.msra.gmra.mrb[56].mxu1 %vm1374_vm6, %v2283_v35  ;;  %v3796_v57 = vpop.eup %3795  ;;  %v2513_v13 = vmul.f32 %v3794_v53, %v4604_v47 }
 0x5bd   : > { %3480 = vmatpush3.bf16.msra.mxu1 %v2526_v18  ;;  %3453 = vmatprep.mubr.msk.bf16.mxu1 %vm3856_vm3, %v3855_v5  ;;  %v2511_v40 = vmul.f32 %v3796_v57, %v4585_v22 }
 0x5be   : > { %3481 = vmatprep.subr.bf16.mxu1 %v3855_v5 }
 0x5bf   : > { %v2522_v43 = vpack.c.bf16 %v2513_v13, %v2511_v40  ;;  %v3798_v62 = vpop.eup %3797 }
 0x5c0   : > { %v3800_v23 = vpop.eup %3799  ;;  %v2515_v47 = vmul.f32 %v3798_v62, %v4608_v48 }
 0x5c1   : > { %3482 = vmatpush3.bf16.msra.mxu1 %v2528_v11  ;;  %v2517_v28 = vmul.f32 %v3800_v23, %v4594_v27  ;;  %v3678_v11 = vld [vmem:[%s4904_s7 + $0x8] sm:$0xff]  }
 0x5c2   : > { %3483 = vmatprep.subr.bf16.mxu1 %v3855_v5  ;;  %3500 = vmatpush3.bf16.msra.mxu0 %v3678_v11 }
 0x5c4   : > { %3454 = vmatmul.mubr.msk.bf16.gmra.mrb[60].mxu1 %vm1374_vm6, %v2284_v1 }
 0x5c5   : > { %3457 = vmatprep.mubr.msk.bf16.mxu1 %vm3856_vm3, %v3855_v5 }
 0x5cc   : > { %3458 = vmatmul.mubr.msk.bf16.gmra.mrb[64].mxu1 %vm1374_vm6, %v2285_v14 }
 0x5cd   : > { %3485 = vmatprep.mubr.msk.bf16.mxu1 %vm3856_vm3, %v3855_v5 }
 0x5df   : > { %v2509_v46 = vpop.xlane.xlu1 %2508 }
 0x5e0   : > { %3801 = vrcp.f32 %v2509_v46 }
 0x5e1   : > { %3803 = vrcp.f32 %v2506_v7 }
 0x5e3   : > { %v2530_v50 = vpop.permute.xlu1 %2529 }
 0x5e4   : > { %v2543_v0 = vand.u32 %v2530_v50, %v4366_v45  ;;  %v2523_v45 = vpack.c.bf16 %v2517_v28, %v2515_v47 }
 0x5e6   : > { %3484 = vmatpush3.bf16.msra.mxu1 %v2543_v0 }
 0x5e7   : > { %3513 = vmatprep.subr.bf16.mxu1 %v3855_v5 }
 0x5e9   : > { %3486 = vmatmul.mubr.msk.bf16.vlgmr.msra.gmra.mrb[68].mxu1 %vm1374_vm6, %v2522_v43 }
 0x5ea   : > { %3489 = vmatprep.mubr.msk.bf16.mxu1 %vm3856_vm3, %v3855_v5  ;;  %v3802_v16 = vpop.eup %3801 }
 0x5eb   : > { %v3804_v22 = vpop.eup %3803  ;;  %v2521_v58 = vmul.f32 %v3802_v16, %v4621_v21 }
 0x5ec   : > { %v2519_v52 = vmul.f32 %v3804_v22, %v4612_v12 }
 0x5ee   : > { %v2524_v25 = vpack.c.bf16 %v2521_v58, %v2519_v52 }
 0x5f1   : > { %3490 = vmatmul.mubr.msk.bf16.gmra.mrb[72].mxu1 %vm1374_vm6, %v2523_v45 }
 0x5f2   : > { %3493 = vmatprep.mubr.msk.bf16.mxu1 %vm3856_vm3, %v3855_v5 }
 0x5f9   : > { %3494 = vmatmul.mubr.msk.bf16.gmra.mrb[76].mxu1 %vm1374_vm6, %v2524_v25 }
 0x5fa   : > { %3517 = vmatprep.mubr.msk.bf16.mxu1 %vm3856_vm3, %v3855_v5 }
 0x632   : > { %v4703_v48 = vpop.f32.mrb[32].mxu1 }
 0x633   : > { %v3379_v27 = vpop.f32.mrb[33].mxu1 }
 0x634   : > { %v4705_v55 = vpop.f32.mrb[34].mxu1 }
 0x635   : > { %v3380_v10 = vpop.f32.mrb[35].mxu1 }
 0x63c   : > { %v4707_v30 = vpop.f32.mrb[36].mxu1 }
 0x63d   : > { %v3383_v49 = vpop.f32.mrb[37].mxu1 }
 0x63e   : > { %v4709_v19 = vpop.f32.mrb[38].mxu1 }
 0x63f   : > { %v3384_v21 = vpop.f32.mrb[39].mxu1 }
 0x644   : > { %v4711_v42 = vpop.f32.mrb[40].mxu1 }
 0x645   : > { %v3387_v12 = vpop.f32.mrb[41].mxu1 }
 0x646   : > { %v4713_v20 = vpop.f32.mrb[42].mxu1  ;;  %v4727_v12 = vmul.f32 %v4268_v63, %v4273_v34 }
 0x647   : > { %v3388_v3 = vpop.f32.mrb[43].mxu1 }
 0x648   : > { %v4731_v3 = vmul.f32 %v4268_v63, %v4284_v39 }
 0x677   : > { %v2101_v32 = vpop.f32.mrb[44].mxu1 }
 0x678   : > { %v3415_v37 = vpop.f32.mrb[45].mxu1 }
 0x679   : > { %v2104_v24 = vpop.f32.mrb[46].mxu1  ;;  %v4740_v37 = vsel %vm1374_vm6, %v4731_v3, -inf }
 0x67a   : > { %v3582_v41 = vpack.i.bf16 %v2104_v24, %v2101_v32  ;;  %v3416_v51 = vpop.f32.mrb[47].mxu1  ;;  %v4735_v32 = vsel %vm1374_vm6, %v4727_v12, -inf }
 0x67c   : > { %3583 = vrot.lane.b32.xlu1 %v3582_v41, %s3869_s16 }
 0x67f   : > { %v2109_v44 = vpop.f32.mrb[48].mxu1 }
 0x680   : > { %v3419_v17 = vpop.f32.mrb[49].mxu1 }
 0x681   : > { %v2112_v60 = vpop.f32.mrb[50].mxu1 }
 0x682   : > { %v3597_v59 = vpack.i.bf16 %v2112_v60, %v2109_v44  ;;  %v3420_v6 = vpop.f32.mrb[51].mxu1 }
 0x687   : > { %v2117_v7 = vpop.f32.mrb[52].mxu1 }
 0x688   : > { %v3423_v35 = vpop.f32.mrb[53].mxu1 }
 0x689   : > { %v2120_v54 = vpop.f32.mrb[54].mxu1 }
 0x68a   : > { %v3612_v4 = vpack.i.bf16 %v2120_v54, %v2117_v7  ;;  %v3424_v18 = vpop.f32.mrb[55].mxu1 }
 0x68f   : > { %v2340_v31 = vpop.f32.mrb[56].mxu1 }
 0x690   : > { %v3451_v9 = vpop.f32.mrb[57].mxu1 }
 0x691   : > { %v2343_v1 = vpop.f32.mrb[58].mxu1 }
 0x692   : > { %v3587_v8 = vpack.i.bf16 %v2343_v1, %v2340_v31  ;;  %v3452_v61 = vpop.f32.mrb[59].mxu1 }
 0x694   : > { %3588 = vrot.lane.b32.xlu0 %v3587_v8, %s3870_s22 }
 0x697   : > { %v2348_v29 = vpop.f32.mrb[60].mxu1 }
 0x698   : > { %3598 = vrot.lane.b32.xlu0 %v3597_v59, %s3869_s16  ;;  %v3455_v56 = vpop.f32.mrb[61].mxu1 }
 0x699   : > { %v2351_v14 = vpop.f32.mrb[62].mxu1 }
 0x69a   : > { %v3602_v46 = vpack.i.bf16 %v2351_v14, %v2348_v29  ;;  %v3456_v53 = vpop.f32.mrb[63].mxu1 }
 0x69f   : > { %v2356_v57 = vpop.f32.mrb[64].mxu1 }
 0x6a0   : > { %v3459_v13 = vpop.f32.mrb[65].mxu1 }
 0x6a1   : > { %v2359_v50 = vpop.f32.mrb[66].mxu1 }
 0x6a2   : > { %v3617_v0 = vpack.i.bf16 %v2359_v50, %v2356_v57  ;;  %v3460_v40 = vpop.f32.mrb[67].mxu1 }
 0x6bc   : > { %v2579_v43 = vpop.f32.mrb[68].mxu1 }
 0x6bd   : > { %v3487_v62 = vpop.f32.mrb[69].mxu1 }
 0x6be   : > { %v2582_v23 = vpop.f32.mrb[70].mxu1 }
 0x6bf   : > { %v3592_v47 = vpack.i.bf16 %v2582_v23, %v2579_v43  ;;  %v3488_v28 = vpop.f32.mrb[71].mxu1 }
 0x6c1   : > { %3593 = vrot.lane.b32.xlu1 %v3592_v47, %s3871_s23 }
 0x6c4   : > { %v2587_v45 = vpop.f32.mrb[72].mxu1 }
 0x6c5   : > { %3603 = vrot.lane.b32.xlu1 %v3602_v46, %s3870_s22  ;;  %v3491_v16 = vpop.f32.mrb[73].mxu1 }
 0x6c6   : > { %v2590_v22 = vpop.f32.mrb[74].mxu1 }
 0x6c7   : > { %v3607_v58 = vpack.i.bf16 %v2590_v22, %v2587_v45  ;;  %v3492_v52 = vpop.f32.mrb[75].mxu1 }
 0x6c9   : > { %3613 = vrot.lane.b32.xlu1 %v3612_v4, %s3869_s16  ;;  %3608 = vrot.lane.b32.xlu0 %v3607_v58, %s3871_s23 }
 0x6cc   : > { %v2595_v25 = vpop.f32.mrb[76].mxu1 }
 0x6cd   : > { %3618 = vrot.lane.b32.xlu0 %v3617_v0, %s3870_s22  ;;  %v3495_v27 = vpop.f32.mrb[77].mxu1 }
 0x6ce   : > { %v2598_v10 = vpop.f32.mrb[78].mxu1 }
 0x6cf   : > { %v3622_v49 = vpack.i.bf16 %v2598_v10, %v2595_v25  ;;  %v3496_v21 = vpop.f32.mrb[79].mxu1 }
 0x6d0   : > { %v3124_v21 = vld [vmem:[%s4905_s8] ss:$0 sm:$0xff] }
 0x6d1   : > { %3623 = vrot.lane.b32.xlu1 %v3622_v49, %s3871_s23 }
 0x6ee   : > { %v3584_v24 = vpop.permute.xlu1 %3583 }
 0x6ef   : > { %v3586_v34 = vunpack.i.h.bf16 %v3584_v24  ;;  %v3585_v51 = vunpack.i.l.bf16 %v3584_v24 }
 0x6f1   : > { %v2675_v39 = vsel %vm1653_vm2, %v4705_v55, %v3586_v34  ;;  %v2674_v60 = vsel %vm1653_vm2, %v4703_v48, %v3585_v51 }
 0x6f5   : > { %1376 = vmax.xlane.f32.xlu1 %v4735_v32 }
 0x6f9   : > { %1388 = vmax.xlane.f32.xlu1 %v4740_v37 }
 0x706   : > { %v3589_v41 = vpop.permute.xlu0 %3588 }
 0x707   : > { %v3591_v44 = vunpack.i.h.bf16 %v3589_v41  ;;  %v3590_v17 = vunpack.i.l.bf16 %v3589_v41 }
 0x709   : > { %v2682_v7 = vsel %vm2680_vm8, %v2675_v39, %v3591_v44  ;;  %v2681_v35 = vsel %vm2680_vm8, %v2674_v60, %v3590_v17 }
 0x70a   : > { %v3599_v54 = vpop.permute.xlu0 %3598 }
 0x70b   : > { %v3601_v11 = vunpack.i.h.bf16 %v3599_v54  ;;  %v3600_v9 = vunpack.i.l.bf16 %v3599_v54 }
 0x70d   : > { %v2677_v8 = vsel %vm1653_vm2, %v4709_v19, %v3601_v11  ;;  %v2676_v61 = vsel %vm1653_vm2, %v4707_v30, %v3600_v9 }
 0x733   : > { %v3594_v63 = vpop.permute.xlu1 %3593 }
 0x734   : > { %v3596_v59 = vunpack.i.h.bf16 %v3594_v63  ;;  %v3595_v6 = vunpack.i.l.bf16 %v3594_v63 }
 0x736   : > { %v2689_v4 = vsel %vm2687_vm9, %v2682_v7, %v3596_v59  ;;  %v2688_v18 = vsel %vm2687_vm9, %v2681_v35, %v3595_v6 }
 0x737   : > { %v2698_v15 = vpack.c.bf16 %v2689_v4, %v2688_v18  ;;  %v3604_v31 = vpop.permute.xlu1 %3603 }
 0x738   : > { %v3606_v1 = vunpack.i.h.bf16 %v3604_v31  ;;  %v3605_v55 = vunpack.i.l.bf16 %v3604_v31 }
 0x739   : > { %3502 = vmatmul.mubr.msk.bf16.vlgmr.msra.gmra.mrb[72].mxu0 %vm1119_vm0, %v2698_v15 }
 0x73a   : > { %3505 = vmatprep.mubr.msk.bf16.mxu0 %vm3856_vm3, %v3855_v5  ;;  %v2684_v14 = vsel %vm2680_vm8, %v2677_v8, %v3606_v1  ;;  %v2683_v46 = vsel %vm2680_vm8, %v2676_v61, %v3605_v55 }
 0x73b   : > { %v3609_v48 = vpop.permute.xlu0 %3608  ;;  %v3614_v53 = vpop.permute.xlu1 %3613 }
 0x73c   : > { %v3611_v29 = vunpack.i.h.bf16 %v3609_v48  ;;  %v3610_v56 = vunpack.i.l.bf16 %v3609_v48  ;;  %v3616_v40 = vunpack.i.h.bf16 %v3614_v53  ;;  %v3615_v43 = vunpack.i.l.bf16 %v3614_v53 }
 0x73e   : > { %v2691_v57 = vsel %vm2687_vm9, %v2684_v14, %v3611_v29  ;;  %v2690_v13 = vsel %vm2687_vm9, %v2683_v46, %v3610_v56  ;;  %v2679_v23 = vsel %vm1653_vm2, %v4713_v20, %v3616_v40  ;;  %v2678_v47 = vsel %vm1653_vm2, %v4711_v42, %v3615_v43 }
 0x73f   : > { %v2699_v50 = vpack.c.bf16 %v2691_v57, %v2690_v13  ;;  %v3619_v0 = vpop.permute.xlu0 %3618 }
 0x740   : > { %v3621_v62 = vunpack.i.h.bf16 %v3619_v0  ;;  %v3620_v19 = vunpack.i.l.bf16 %v3619_v0 }
 0x741   : > { %3506 = vmatmul.mubr.msk.bf16.gmra.mrb[76].mxu0 %vm1119_vm0, %v2699_v50 }
 0x742   : > { %3509 = vmatprep.mubr.msk.bf16.mxu0 %vm3856_vm3, %v3855_v5  ;;  %v2686_v16 = vsel %vm2680_vm8, %v2679_v23, %v3621_v62  ;;  %v2685_v22 = vsel %vm2680_vm8, %v2678_v47, %v3620_v19  ;;  %v1378_v19 = vsel %vm1374_vm6, %v4271_v33, -inf  ;;  %v1384_v23 = vsel %vm1374_vm6, %v4276_v2, -inf }
 0x743   : > { %v3624_v30 = vpop.permute.xlu1 %3623  ;;  %v1391_v47 = vsel %vm1390_vm7, %v4282_v38, -inf }
 0x744   : > { %v3626_v28 = vunpack.i.h.bf16 %v3624_v30  ;;  %v3625_v45 = vunpack.i.l.bf16 %v3624_v30  ;;  %v1381_v30 = vsel %vm1374_vm6, %v4279_v36, -inf }
 0x746   : > { %v2693_v58 = vsel %vm2687_vm9, %v2686_v16, %v3626_v28  ;;  %v2692_v52 = vsel %vm2687_vm9, %v2685_v22, %v3625_v45  ;;  %v3679_v28 = vld [vmem:[%s4906_s9] sm:$0xff]   ;;  %v3680_v45 = vld [vmem:[%s4906_s9 + $0x8] sm:$0xff]   ;;  %v1448_v16 = vmax.f32 %v4735_v32, %v4740_v37  ;;  %v1449_v22 = vmax.f32 %v1378_v19, %v1391_v47 }
 0x747   : > { %v2700_v25 = vpack.c.bf16 %v2693_v58, %v2692_v52  ;;  %3514 = vmatpush3.bf16.msra.mxu1 %v3679_v28  ;;  %v1451_v52 = vmax.f32 %v1381_v30, %v1384_v23 }
 0x748   : > { %3515 = vmatprep.subr.bf16.mxu1 %v3855_v5  ;;  %v1450_v58 = vmax.f32 %v1448_v16, %v1449_v22 }
 0x749   : > { %3510 = vmatmul.mubr.msk.bf16.gmra.mrb[80].mxu0 %vm1119_vm0, %v2700_v25 }
 0x74a   : > { %v1452_v25 = vmax.f32 %v1450_v58, %v1451_v52 }
 0x74b   : > { %3516 = vmatpush3.bf16.msra.mxu1 %v3680_v45 }
 0x74c   : > { %3521 = vmatprep.subr.bf16.mxu1 %v3855_v5 }
 0x782   : > { %v4774_v27 = vpop.xlane.xlu1 %1376 }
 0x783   : > { %v1394_v20 = vsub.f32 %v4727_v12, %v4774_v27 }
 0x785   : > { %v1400_v10 = vmul.f32 1.442695, %v1394_v20  ;;  %v1453_v20 = vrot.slane %v1452_v25, 4 }
 0x787   : > { %3805 = vpow2.f32 %v1400_v10  ;;  %v1454_v10 = vmax.f32 %v1452_v25, %v1453_v20 }
 0x791   : > { %v3806_v42 = vpop.eup %3805 }
 0x792   : > { %v1412_v49 = vsel %vm1374_vm6, %v3806_v42, 0.0  ;;  %v1455_v42 = vrot.slane %v1454_v10, 2 }
 0x793   : > { %1413 = vadd.xlane.f32.xlu1 %v1412_v49 }
 0x794   : > { %v1456_v49 = vmax.f32 %v1454_v10, %v1455_v42 }
 0x80c   : > { %v2763_v24 = vpop.f32.mrb[72].mxu0 }
 0x80d   : > { %v2764_v41 = vadd.f32 %v3124_v21, %v2763_v24  ;;  %v3503_v34 = vpop.f32.mrb[73].mxu0 }
 0x80e   : > { %v2766_v51 = vpop.f32.mrb[74].mxu0 }
 0x80f   : > { %v2767_v44 = vadd.f32 %v3124_v21, %v2766_v51  ;;  %v3504_v17 = vpop.f32.mrb[75].mxu0  ;;  %v2786_v63 = vsel %vm1119_vm0, %v2764_v41, 0.0 }
 0x811   : > { %v2787_v39 = vsel %vm1119_vm0, %v2767_v44, 0.0 }
 0x812   : > { %v2788_v60 = vadd.f32 %v2787_v39, %v2786_v63 }
 0x814   : > { %v2771_v59 = vpop.f32.mrb[76].mxu0 }
 0x815   : > { %v2772_v6 = vadd.f32 %v3124_v21, %v2771_v59  ;;  %v3507_v7 = vpop.f32.mrb[77].mxu0 }
 0x816   : > { %v2774_v35 = vpop.f32.mrb[78].mxu0 }
 0x817   : > { %v2789_v54 = vsel %vm1119_vm0, %v2772_v6, 0.0  ;;  %v2775_v4 = vadd.f32 %v3124_v21, %v2774_v35  ;;  %v3508_v18 = vpop.f32.mrb[79].mxu0 }
 0x818   : > { %v2790_v15 = vadd.f32 %v2789_v54, %v2788_v60 }
 0x819   : > { %v2791_v31 = vsel %vm1119_vm0, %v2775_v4, 0.0 }
 0x81a   : > { %v2792_v11 = vadd.f32 %v2791_v31, %v2790_v15 }
 0x81c   : > { %v2779_v9 = vpop.f32.mrb[80].mxu0 }
 0x81d   : > { %v2780_v1 = vadd.f32 %v3124_v21, %v2779_v9  ;;  %v3511_v55 = vpop.f32.mrb[81].mxu0 }
 0x81e   : > { %v2782_v48 = vpop.f32.mrb[82].mxu0 }
 0x81f   : > { %v2793_v8 = vsel %vm1119_vm0, %v2780_v1, 0.0  ;;  %v2783_v61 = vadd.f32 %v3124_v21, %v2782_v48  ;;  %v3512_v29 = vpop.f32.mrb[83].mxu0  ;;  %v1457_v21 = vrot.slane %v1456_v49, 1 }
 0x820   : > { %v2794_v56 = vadd.f32 %v2793_v8, %v2792_v11 }
 0x821   : > { %v2795_v14 = vsel %vm1135_vm1, %v2783_v61, 0.0  ;;  %v4811_v24 = vmax.f32 %v1456_v49, %v1457_v21 }
 0x822   : > { %v2796_v46 = vadd.f32 %v2795_v14, %v2794_v56 }
 0x823   : > { %v1459_v41 = vsub.f32 %v4727_v12, %v4811_v24  ;;  %v1460_v34 = vsub.f32 %v4271_v33, %v4811_v24  ;;  %v1461_v32 = vsub.f32 %v4279_v36, %v4811_v24  ;;  %v1462_v37 = vsub.f32 %v4276_v2, %v4811_v24 }
 0x824   : > { %v2797_v53 = vrot.slane %v2796_v46, 4  ;;  %v1463_v63 = vsub.f32 %v4731_v3, %v4811_v24  ;;  %v1464_v59 = vsub.f32 %v4282_v38, %v4811_v24 }
 0x825   : > { %v1465_v51 = vmul.f32 1.442695, %v1459_v41  ;;  %v1467_v44 = vmul.f32 1.442695, %v1460_v34  ;;  %v1469_v17 = vmul.f32 1.442695, %v1461_v32 }
 0x826   : > { %v2798_v57 = vadd.f32 %v2797_v53, %v2796_v46  ;;  %v1471_v39 = vmul.f32 1.442695, %v1462_v37  ;;  %v1473_v6 = vmul.f32 1.442695, %v1463_v63  ;;  %v1475_v54 = vmul.f32 1.442695, %v1464_v59 }
 0x827   : > { %3807 = vpow2.f32 %v1465_v51 }
 0x828   : > { %v2799_v13 = vrot.slane %v2798_v57, 2  ;;  %3809 = vpow2.f32 %v1467_v44 }
 0x829   : > { %3811 = vpow2.f32 %v1469_v17 }
 0x82a   : > { %v2800_v50 = vadd.f32 %v2799_v13, %v2798_v57  ;;  %3813 = vpow2.f32 %v1471_v39  ;;  %v4831_v13 = vpop.xlane.xlu1 %1388 }
 0x82b   : > { %3815 = vpow2.f32 %v1473_v6 }
 0x82c   : > { %v2801_v0 = vrot.slane %v2800_v50, 1  ;;  %3817 = vpow2.f32 %v1475_v54  ;;  %v3682_v54 = vld [vmem:[%s4908_s11 + $0x8] sm:$0xff]  }
 0x82e   : > { %v4788_v40 = vadd.f32 %v2801_v0, %v2800_v50 }
 0x830   : > { %v2803_v43 = vmul.f32 %v4788_v40, %v4788_v40 }
 0x831   : > { %v3808_v12 = vpop.eup %3807 }
 0x832   : > { %v2804_v62 = vsel %vm1119_vm0, %v2803_v43, 0.0  ;;  %v3810_v60 = vpop.eup %3809  ;;  %v1477_v7 = vsel %vm1374_vm6, %v3808_v12, 0.0 }
 0x833   : > { %2805 = vadd.xlane.f32.xlu0 %v2804_v62  ;;  %v1478_v35 = vsel %vm1374_vm6, %v3810_v60, 0.0  ;;  %v3812_v4 = vpop.eup %3811  ;;  %v1398_v62 = vsub.f32 %v4731_v3, %v4831_v13 }
 0x834   : > { %v1479_v18 = vadd.f32 %v1478_v35, %v1477_v7  ;;  %v1480_v15 = vsel %vm1374_vm6, %v3812_v4, 0.0  ;;  %v3814_v31 = vpop.eup %3813 }
 0x835   : > { %v1482_v9 = vsel %vm1374_vm6, %v3814_v31, 0.0  ;;  %v3816_v1 = vpop.eup %3815  ;;  %v1408_v45 = vmul.f32 1.442695, %v1398_v62 }
 0x836   : > { %v1481_v11 = vadd.f32 %v1480_v15, %v1479_v18  ;;  %v1484_v48 = vsel %vm1374_vm6, %v3816_v1, 0.0  ;;  %v3818_v8 = vpop.eup %3817 }
 0x837   : > { %1379 = vmax.xlane.f32.xlu0 %v1378_v19  ;;  %v1486_v29 = vsel %vm1390_vm7, %v3818_v8, 0.0 }
 0x838   : > { %v1483_v55 = vadd.f32 %v1482_v9, %v1481_v11 }
 0x83a   : > { %v1485_v61 = vadd.f32 %v1484_v48, %v1483_v55 }
 0x83b   : > { %1382 = vmax.xlane.f32.xlu0 %v1381_v30 }
 0x83c   : > { %v1487_v56 = vadd.f32 %v1486_v29, %v1485_v61 }
 0x83e   : > { %v1488_v14 = vrot.slane %v1487_v56, 4 }
 0x83f   : > { %1385 = vmax.xlane.f32.xlu0 %v1384_v23 }
 0x840   : > { %v1489_v46 = vadd.f32 %v1488_v14, %v1487_v56 }
 0x842   : > { %v1490_v57 = vrot.slane %v1489_v46, 2 }
 0x843   : > { %1392 = vmax.xlane.f32.xlu0 %v1391_v47 }
 0x844   : > { %v1491_v0 = vadd.f32 %v1490_v57, %v1489_v46 }
 0x846   : > { %v1492_v23 = vrot.slane %v1491_v0, 1 }
 0x848   : > { %v1493_v52 = vadd.f32 %v1492_v23, %v1491_v0 }
 0x8c0   : > { %v2806_v53 = vpop.xlane.xlu0 %2805 }
 0x8c1   : > { %3819 = vrsqrt.f32 %v2806_v53  ;;  %vm2809_vm1 = vcmp.eq.f32.partialorder %v2806_v53, inf  ;;  %vm2811_vm10 = vcmp.eq.f32.partialorder %v2806_v53, 0.0 }
 0x8c4   : > { %v4833_v50 = vpop.xlane.xlu0 %1379 }
 0x8c5   : > { %v1395_v43 = vsub.f32 %v4271_v33, %v4833_v50  ;;  %v2812_v33 = vand.u32 2147483648, %v2806_v53 }
 0x8c7   : > { %v1402_v19 = vmul.f32 1.442695, %v1395_v43 }
 0x8c8   : > { %v4839_v30 = vpop.xlane.xlu0 %1382 }
 0x8c9   : > { %3821 = vpow2.f32 %v1402_v19  ;;  %v1396_v47 = vsub.f32 %v4279_v36, %v4839_v30 }
 0x8cb   : > { %v3820_v28 = vpop.eup %3819  ;;  %v1404_v16 = vmul.f32 1.442695, %v1396_v47 }
 0x8cc   : > { %v2808_v22 = vmul.f32 %v3820_v28, %v2806_v53  ;;  %v4843_v58 = vpop.xlane.xlu0 %1385 }
 0x8cd   : > { %3823 = vpow2.f32 %v1404_v16  ;;  %v1397_v3 = vsub.f32 %v4276_v2, %v4843_v58 }
 0x8ce   : > { %v2810_v25 = vsel %vm2809_vm1, %v2806_v53, %v2808_v22  ;;  %3825 = vpow2.f32 %v1408_v45 }
 0x8cf   : > { %v2813_v20 = vsel %vm2811_vm10, %v2812_v33, %v2810_v25  ;;  %v1406_v10 = vmul.f32 1.442695, %v1397_v3  ;;  %3827 = vlog2.f32 %v1493_v52 }
 0x8d0   : > { %v2814_v42 = vmax.f32 %v2813_v20, 1e-12  ;;  %v4847_v36 = vpop.xlane.xlu0 %1392 }
 0x8d1   : > { %3829 = vpow2.f32 %v1406_v10  ;;  %v1399_v49 = vsub.f32 %v4282_v38, %v4847_v36 }
 0x8d2   : > { %3831 = vrcp.f32 %v2814_v42 }
 0x8d3   : > { %v3822_v21 = vpop.eup %3821  ;;  %v1410_v41 = vmul.f32 1.442695, %v1399_v49 }
 0x8d4   : > { %v1415_v34 = vsel %vm1374_vm6, %v3822_v21, 0.0 }
 0x8d5   : > { %3833 = vpow2.f32 %v1410_v41  ;;  %1416 = vadd.xlane.f32.xlu0 %v1415_v34 }
 0x8d7   : > { %v3824_v2 = vpop.eup %3823 }
 0x8d8   : > { %v1418_v51 = vsel %vm1374_vm6, %v3824_v2, 0.0  ;;  %v3826_v44 = vpop.eup %3825 }
 0x8d9   : > { %1419 = vadd.xlane.f32.xlu1 %v1418_v51  ;;  %v3828_v32 = vpop.eup %3827  ;;  %v1424_v39 = vsel %vm1374_vm6, %v3826_v44, 0.0 }
 0x8da   : > { %v1495_v12 = vmul.f32 0.6931472, %v3828_v32 }
 0x8db   : > { %v3830_v37 = vpop.eup %3829 }
 0x8dc   : > { %v3832_v17 = vpop.eup %3831  ;;  %v1421_v63 = vsel %vm1374_vm6, %v3830_v37, 0.0  ;;  %v1496_v7 = vadd.f32 %v1495_v12, %v4811_v24  ;;  %v1414_v24 = vpop.xlane.xlu1 %1413 }
 0x8dd   : > { %1422 = vadd.xlane.f32.xlu0 %v1421_v63  ;;  %1425 = vadd.xlane.f32.xlu1 %v1424_v39  ;;  %v2816_v38 = vmul.f32 %v3832_v17, %v4788_v40  ;;  %v3681_v40 = vld [vmem:[%s4908_s11] sm:$0xff]   ;;  %3835 = vlog2.f32 %v1414_v24 }
 0x8de   : > { %v1524_v35 = vsel %vm1523_vm11, %v1496_v7, 0.0 }
 0x8df   : > { %v3834_v60 = vpop.eup %3833  ;;  %v2821_v59 = vpack.c.bf16 %v2816_v38, %v2816_v38 }
 0x8e0   : > { %v1427_v6 = vsel %vm1390_vm7, %v3834_v60, 0.0 }
 0x8e1   : > { %3518 = vmatmul.mubr.msk.bf16.vlgmr.msra.gmra.mrb[80].mxu1 %vm1119_vm0, %v2821_v59  ;;  %1428 = vadd.xlane.f32.xlu0 %v1427_v6 }
 0x8e2   : > { %1364 = vadd.xlane.f32.xlu1 %v4250_v26  ;;  %3525 = vmatprep.mubr.msk.bf16.mxu1 %vm3856_vm3, %v3855_v5  ;;  %vm1497_vm3 = vcmask 7168  }
 0x8e3   : > { %3522 = vmatpush3.bf16.msra.mxu1 %v3681_v40 }
 0x8e4   : > { %3523 = vmatprep.subr.bf16.mxu1 %v3855_v5 }
 0x8e6   : > { %1525 = vadd.xlane.f32.xlu1 %v1524_v35 }
 0x8e7   : > { %3524 = vmatpush3.bf16.msra.mxu1 %v3682_v54  ;;  %v3836_v31 = vpop.eup %3835 }
 0x8e8   : > { %v1431_v9 = vmul.f32 0.6931472, %v3836_v31 }
 0x8ea   : > { %v1442_v29 = vadd.f32 %v1431_v9, %v4774_v27 }
 0x8ec   : > { %v1498_v62 = vsel %vm1497_vm3, %v1442_v29, 0.0 }
 0x962   : > { %v1417_v26 = vpop.xlane.xlu0 %1416 }
 0x963   : > { %3837 = vlog2.f32 %v1417_v26 }
 0x966   : > { %v1420_v4 = vpop.xlane.xlu1 %1419 }
 0x967   : > { %3839 = vlog2.f32 %v1420_v4 }
 0x96a   : > { %v1423_v18 = vpop.xlane.xlu0 %1422  ;;  %v1426_v15 = vpop.xlane.xlu1 %1425 }
 0x96b   : > { %3841 = vlog2.f32 %v1423_v18  ;;  %v2884_v18 = vld [vmem:[#allocation3] sm:$0x1] }
 0x96c   : > { %3843 = vlog2.f32 %v1426_v15 }
 0x96d   : > { %v3838_v11 = vpop.eup %3837 }
 0x96e   : > { %v1433_v1 = vmul.f32 0.6931472, %v3838_v11  ;;  %v1429_v55 = vpop.xlane.xlu0 %1428 }
 0x96f   : > { %3845 = vlog2.f32 %v1429_v55  ;;  %v1365_v48 = vpop.xlane.xlu1 %1364 }
 0x970   : > { %v1443_v5 = vadd.f32 %v1433_v1, %v4833_v50  ;;  %v1366_v8 = vrot.slane %v1365_v48, 4 }
 0x971   : > { %v3840_v61 = vpop.eup %3839 }
 0x972   : > { %v1435_v56 = vmul.f32 0.6931472, %v3840_v61  ;;  %v1367_v14 = vadd.f32 %v1366_v8, %v1365_v48  ;;  %v1499_v46 = vsel %vm1497_vm3, %v1443_v5, 0.0 }
 0x973   : > { %v1500_v47 = vadd.f32 %v1499_v46, %v1498_v62 }
 0x974   : > { %v1444_v53 = vadd.f32 %v1435_v56, %v4839_v30  ;;  %v1368_v57 = vrot.slane %v1367_v14, 2 }
 0x975   : > { %v3842_v0 = vpop.eup %3841 }
 0x976   : > { %v3844_v43 = vpop.eup %3843  ;;  %v1501_v19 = vsel %vm1497_vm3, %v1444_v53, 0.0  ;;  %v1437_v23 = vmul.f32 0.6931472, %v3842_v0  ;;  %v1369_v50 = vadd.f32 %v1368_v57, %v1367_v14 }
 0x977   : > { %v1439_v28 = vmul.f32 0.6931472, %v3844_v43  ;;  %v1502_v22 = vadd.f32 %v1501_v19, %v1500_v47 }
 0x978   : > { %v1445_v27 = vadd.f32 %v1437_v23, %v4843_v58  ;;  %v1370_v45 = vrot.slane %v1369_v50, 1  ;;  %v2822_v58 = vld [vmem:[%s4907_s10] sm:$0x1] }
 0x979   : > { %v3846_v16 = vpop.eup %3845  ;;  %v1446_v52 = vadd.f32 %v1439_v28, %v4831_v13 }
 0x97a   : > { %v1503_v30 = vsel %vm1497_vm3, %v1445_v27, 0.0  ;;  %v1441_v33 = vmul.f32 0.6931472, %v3846_v16  ;;  %v1371_v3 = vadd.f32 %v1370_v45, %v1369_v50 }
 0x97b   : > { %v1504_v25 = vadd.f32 %v1503_v30, %v1502_v22  ;;  %v1505_v10 = vsel %vm1497_vm3, %v1446_v52, 0.0 }
 0x97c   : > { %v1447_v20 = vadd.f32 %v1441_v33, %v4847_v36  ;;  %3551 = vpush %v1371_v3  ;;  %v1526_v36 = vpop.xlane.xlu1 %1525 }
 0x97d   : > { %v1506_v42 = vadd.f32 %v1505_v10, %v1504_v25  ;;  %v1527_v37 = vrot.slane %v1526_v36, 4 }
 0x97e   : > { %v1508_v49 = vsel %vm1507_vm12, %v1447_v20, 0.0 }
 0x97f   : > { %v1509_v21 = vadd.f32 %v1508_v49, %v1506_v42  ;;  %v1528_v17 = vadd.f32 %v1527_v37, %v1526_v36 }
 0x981   : > { %1510 = vadd.xlane.f32.xlu0 %v1509_v21  ;;  %v1529_v63 = vrot.slane %v1528_v17, 2 }
 0x983   : > { %v1530_v60 = vadd.f32 %v1529_v63, %v1528_v17 }
 0x985   : > { %v1531_v7 = vrot.slane %v1530_v60, 1 }
 0x987   : > { %v1532_v54 = vadd.f32 %v1531_v7, %v1530_v60 }
 0x9ad   : > { %s3552_s21 = spop %3551 }
 0x9ae   : > { %s1373_s22 = smul.f32 %s3552_s21, %s4265_s19  ;;  %s495_s19 = scalar_lea.vmem %s4911_s14, %s4913_s18 }
 0x9b4   : > { %v2872_v13 = vpop.f32.mrb[80].mxu1 }
 0x9b5   : > { %v2873_v41 = vadd.f32 %v2872_v13, %v2822_v58  ;;  %v3519_v34 = vpop.f32.mrb[81].mxu1 }
 0x9b6   : > { %v2875_v2 = vpop.f32.mrb[82].mxu1 }
 0x9b7   : > { %v2878_v51 = vmax.f32 %v2873_v41, 0.0  ;;  %v3520_v44 = vpop.f32.mrb[83].mxu1 }
 0x9b9   : > { %v2883_v32 = vpack.c.bf16 %v2878_v51, %v2878_v51 }
 0x9bb   : > { %3526 = vmatmul.mubr.msk.bf16.vlgmr.msra.gmra.mrb[84].mxu1 %vm1119_vm0, %v2883_v32  ;;  %vm1541_vm0 = vcmask 8192  }
 0xa0e   : > { %v1511_v39 = vpop.xlane.xlu0 %1510 }
 0xa0f   : > { %v1512_v38 = vrot.slane %v1511_v39, 4 }
 0xa11   : > { %v1513_v12 = vadd.f32 %v1512_v38, %v1511_v39 }
 0xa13   : > { %v1514_v59 = vrot.slane %v1513_v12, 2 }
 0xa15   : > { %v1515_v6 = vadd.f32 %v1514_v59, %v1513_v12 }
 0xa17   : > { %v1516_v35 = vrot.slane %v1515_v6, 1 }
 0xa19   : > { %v1517_v40 = vadd.f32 %v1516_v35, %v1515_v6 }
 0xa1b   : > { %3553 = vpush %v1517_v40 }
 0xa1c   : > { %3555 = vpush %v1532_v54 }
 0xa4c   : > { %s3554_s23 = spop %3553 }
 0xa4d   : > { %s1519_s24 = ssub.f32 %s1373_s22, %s3554_s23  ;;  %s3556_s30 = spop %3555 }
 0xa4e   : > { %s1534_s25 = ssub.f32 %s1373_s22, %s3556_s30 }
 0xa4f   : > { %s1522_s26 = smul.f32 0.022222223, %s1519_s24 }
 0xa50   : > { %s1537_s27 = smul.f32 0.022222223, %s1534_s25 }
 0xa51   : > { %v1538_v24 = vstv %s1522_s26 }
 0xa52   : > { %v1539_v26 = vstv %s1537_s27 }
 0xa53   : > { %v1540_v4 = vsel %vm1497_vm3, %v1538_v24, %v1539_v26 }
 0xa54   : > { %1542 = vst.msk [vmem:[%s492_s15] sm:$0x1] %vm1541_vm0, %v1540_v4 }
 0xa8e   : > { %v2934_v15 = vpop.f32.mrb[84].mxu1 }
 0xa8f   : > { %v2935_v31 = vadd.f32 %v2934_v15, %v2884_v18  ;;  %v3527_v11 = vpop.f32.mrb[85].mxu1 }
 0xa90   : > { %v2937_v9 = vpop.f32.mrb[86].mxu1 }
 0xa91   : > { %2941 = vst.msk [vmem:[%s495_s19] sm:$0x1] %vm2940_vm13, %v2935_v31  ;;  %v3528_v1 = vpop.f32.mrb[87].mxu1 }
 0xa92 PF: > { %s28_s17 = sadd.s32 1, %s3853_s17  }
 0xa93   : > { %p25_p4 = scmp.ge.s32.totalorder %s28_s17, 4  }
 0xa95   :  { %27 = sbr.rel (!%p25_p4) target bundleno = 3 (0x3), region = 117 }

</bundles_post_ra>
